<compile_context>
chip_gen: v7x
topology: tpu7x:2x2x1
jax: 0.10.0
libtpu: 0.0.40
codegen_flags: <defaults>
</compile_context>

<pallas_src>
import jax
import jax.numpy as jnp
from jax import lax
from jax.experimental import pallas as pl
from jax.experimental.pallas import tpu as pltpu

LANE = 128
SUB = 16          # row-tile granularity (bf16-friendly sublane packing)


def _round_up(x, m):
    return ((x + m - 1) // m) * m


# ----------------------------------------------------------------------------
# Pallas kernels
# ----------------------------------------------------------------------------
def _conv_bn_relu_pool_kernel(x_ref, w_ref, b_ref, o_ref):
    """One 2x2-maxpool tap:  y = relu(x @ w + b);  o = max(o, y) over 4 taps.

    Grid = (row_tiles, 4).  Axis 1 indexes the (dy, dx) pooling tap; the output
    block index is constant along it, so the pooled tile stays resident in VMEM
    and is max-accumulated in place (P3 accumulator pattern).
    """
    t = pl.program_id(1)
    y = jnp.dot(x_ref[0], w_ref[...], preferred_element_type=jnp.float32)
    y = jnp.maximum(y + b_ref[...], 0.0).astype(o_ref.dtype)

    @pl.when(t == 0)
    def _init():
        o_ref[...] = y

    @pl.when(t > 0)
    def _acc():
        o_ref[...] = jnp.maximum(o_ref[...], y)


def _mlp_head_kernel(x_ref, w1_ref, b1_ref, w2_ref, b2_ref, o_ref):
    # fc1 (bf16 x bf16, f32 accumulation) + ReLU; nn.Dropout(0.5) is identity
    # in eval mode; fc2 kept in f32 (tiny) for clean final logits.
    h = jnp.dot(x_ref[...], w1_ref[...], preferred_element_type=jnp.float32)
    h = jnp.maximum(h + b1_ref[...], 0.0)
    o = jnp.dot(h, w2_ref[...], preferred_element_type=jnp.float32) + b2_ref[...]
    o_ref[...] = o.astype(o_ref.dtype)


# ----------------------------------------------------------------------------
# Pallas wrappers
# ----------------------------------------------------------------------------
def conv_bn_relu_pool(banks, w_col, bias):
    """banks: (4, M, K) bf16 im2col rows grouped by pooling tap.
    w_col: (K, 128) bf16, BN scale folded, Cout zero-padded to 128.
    bias:  (1, 128) f32 (folded conv bias + BN shift, zero-padded).
    Returns (Mp, 128) bf16 pooled activations; caller slices [:M, :C_real]."""
    T, M, K = banks.shape
    C = w_col.shape[1]

    # Large row tiles (less per-step overhead) but keep >=2 row tiles so both
    # v7x TensorCores get work on the "parallel" axis.
    tm = max(SUB, min(512, _round_up(pl.cdiv(M, 2), SUB)))
    Mp = _round_up(M, tm)
    if Mp != M:
        banks = jnp.pad(banks, ((0, 0), (0, Mp - M), (0, 0)))
    grid = (Mp // tm, T)

    flops = 2 * T * Mp * K * C
    bytes_accessed = (T * Mp * K + K * C + Mp * C) * 2 + C * 4

    return pl.pallas_call(
        _conv_bn_relu_pool_kernel,
        out_shape=jax.ShapeDtypeStruct((Mp, C), jnp.bfloat16),
        grid=grid,
        in_specs=[
            pl.BlockSpec((1, tm, K), lambda i, t: (t, i, 0)),
            pl.BlockSpec((K, C), lambda i, t: (0, 0)),
            pl.BlockSpec((1, C), lambda i, t: (0, 0)),
        ],
        out_specs=pl.BlockSpec((tm, C), lambda i, t: (i, 0)),
        compiler_params=pltpu.CompilerParams(
            dimension_semantics=("parallel", "arbitrary"),
            vmem_limit_bytes=64 * 1024 * 1024),
        cost_estimate=pl.CostEstimate(flops=flops, transcendentals=0,
                                      bytes_accessed=bytes_accessed),
    )(banks, w_col, bias)


def mlp_head(x, w1, b1, w2, b2, n_classes):
    """x: (N, 3136) bf16; w1: (3136, 256) bf16; w2: (256, 128) f32 (padded).
    Batch-tiled fused fc1+relu+fc2 with weights resident in VMEM."""
    N, Din = x.shape
    Hid = w1.shape[1]
    Cp = w2.shape[1]

    tn = max(SUB, min(512, _round_up(pl.cdiv(N, 2), SUB)))
    Np = _round_up(N, tn)
    if Np != N:
        x = jnp.pad(x, ((0, Np - N), (0, 0)))
    grid = (Np // tn,)

    flops = 2 * Np * Din * Hid + 2 * Np * Hid * Cp
    bytes_accessed = (Np * Din + Din * Hid) * 2 + (Hid + Hid * Cp + Cp + Np * Cp) * 4

    out = pl.pallas_call(
        _mlp_head_kernel,
        out_shape=jax.ShapeDtypeStruct((Np, Cp), jnp.float32),
        grid=grid,
        in_specs=[
            pl.BlockSpec((tn, Din), lambda i: (i, 0)),
            pl.BlockSpec((Din, Hid), lambda i: (0, 0)),
            pl.BlockSpec((1, Hid), lambda i: (0, 0)),
            pl.BlockSpec((Hid, Cp), lambda i: (0, 0)),
            pl.BlockSpec((1, Cp), lambda i: (0, 0)),
        ],
        out_specs=pl.BlockSpec((tn, Cp), lambda i: (i, 0)),
        compiler_params=pltpu.CompilerParams(
            dimension_semantics=("parallel",),
            vmem_limit_bytes=64 * 1024 * 1024),
        cost_estimate=pl.CostEstimate(flops=flops, transcendentals=0,
                                      bytes_accessed=bytes_accessed),
    )(x, w1, b1, w2, b2)
    return out[:N, :n_classes]


# ----------------------------------------------------------------------------
# XLA layout plumbing (im2col + pooling-tap banking only)
# ----------------------------------------------------------------------------
def im2col_3x3_same(x_nhwc):
    """3x3, padding=1 patches; feature order (ky, kx, ci) -> (N, H, W, 9*C)."""
    N, H, W, C = x_nhwc.shape
    xp = jnp.pad(x_nhwc, ((0, 0), (1, 1), (1, 1), (0, 0)))
    patches = [xp[:, ky:ky + H, kx:kx + W, :] for ky in range(3) for kx in range(3)]
    return jnp.concatenate(patches, axis=-1)


def pool_taps(cols_nhwk):
    """Group im2col rows by 2x2 max-pool tap: (N,H,W,K) -> (4, N*H/2*W/2, K)."""
    N, H, W, K = cols_nhwk.shape
    taps = [cols_nhwk[:, dy::2, dx::2, :] for dy in range(2) for dx in range(2)]
    return jnp.stack(taps, axis=0).reshape(4, N * (H // 2) * (W // 2), K)


# ----------------------------------------------------------------------------
# Parameters (deterministic, PyTorch-shaped) + BN folding (eval semantics)
# ----------------------------------------------------------------------------
def init_params(key):
    eps = 1e-5
    ks = jax.random.split(key, 16)

    def uni(k, shape, fan_in):
        lim = 1.0 / float(fan_in) ** 0.5
        return jax.random.uniform(k, shape, jnp.float32, -lim, lim)

    conv1_w = uni(ks[0], (32, 1, 3, 3), 1 * 9)        # (Cout, Cin, KH, KW)
    conv1_b = uni(ks[1], (32,), 1 * 9)
    bn1 = (1.0 + 0.1 * jax.random.normal(ks[2], (32,), jnp.float32),   # gamma
           0.1 * jax.random.normal(ks[3], (32,), jnp.float32),         # beta
           0.1 * jax.random.normal(ks[4], (32,), jnp.float32),         # running_mean
           jax.random.uniform(ks[5], (32,), jnp.float32, 0.5, 1.5))    # running_var

    conv2_w = uni(ks[6], (64, 32, 3, 3), 32 * 9)
    conv2_b = uni(ks[7], (64,), 32 * 9)
    bn2 = (1.0 + 0.1 * jax.random.normal(ks[8], (64,), jnp.float32),
           0.1 * jax.random.normal(ks[9], (64,), jnp.float32),
           0.1 * jax.random.normal(ks[10], (64,), jnp.float32),
           jax.random.uniform(ks[11], (64,), jnp.float32, 0.5, 1.5))

    fc1_w = uni(ks[12], (256, 64 * 7 * 7), 64 * 7 * 7)  # PyTorch (out, in)
    fc1_b = uni(ks[13], (256,), 64 * 7 * 7)
    fc2_w = uni(ks[14], (10, 256), 256)
    fc2_b = uni(ks[15], (10,), 256)

    def fold_bn(conv_b, bn):
        gamma, beta, mean, var = bn
        scale = gamma / jnp.sqrt(var + eps)
        bias = beta + (conv_b - mean) * scale
        return scale, bias

    s1, fb1 = fold_bn(conv1_b, bn1)
    s2, fb2 = fold_bn(conv2_b, bn2)

    def conv_cols(w, scale, k_pad, c_pad):
        # w[co,ci,ky,kx] -> w_col[(ky*3+kx)*Cin + ci, co] (matches im2col order),
        # BN scale folded in, zero-padded to (k_pad, c_pad) for lane-dense MXU.
        co, ci = w.shape[0], w.shape[1]
        wc = jnp.transpose(w, (2, 3, 1, 0)).reshape(9 * ci, co) * scale[None, :]
        return jnp.pad(wc, ((0, k_pad - 9 * ci), (0, c_pad - co))).astype(jnp.bfloat16)

    params = {
        "conv1_wcol": conv_cols(conv1_w, s1, 128, LANE),
        "conv1_bias": jnp.pad(fb1, (0, LANE - 32)).reshape(1, LANE),
        "conv2_wcol": conv_cols(conv2_w, s2, 288, LANE),
        "conv2_bias": jnp.pad(fb2, (0, LANE - 64)).reshape(1, LANE),
        # fc1 input dim permuted from PyTorch (C,H,W) order to NHWC (H,W,C)
        # order so the flatten in the forward pass is a plain reshape.
        "fc1_w": jnp.transpose(fc1_w.reshape(256, 64, 7, 7),
                               (2, 3, 1, 0)).reshape(7 * 7 * 64, 256).astype(jnp.bfloat16),
        "fc1_b": fc1_b.reshape(1, 256),
        "fc2_w": jnp.pad(fc2_w.T, ((0, 0), (0, LANE - 10))),
        "fc2_b": jnp.pad(fc2_b, (0, LANE - 10)).reshape(1, LANE),
    }
    raw = dict(conv1_w=conv1_w, conv1_b=conv1_b, bn1=bn1,
               conv2_w=conv2_w, conv2_b=conv2_b, bn2=bn2,
               fc1_w=fc1_w, fc1_b=fc1_b, fc2_w=fc2_w, fc2_b=fc2_b, eps=eps)
    return params, raw


# ----------------------------------------------------------------------------
# Net3 forward (Pallas pipeline)
# ----------------------------------------------------------------------------
def net3_forward(x_nchw, params):
    N = x_nchw.shape[0]
    x = jnp.transpose(x_nchw, (0, 2, 3, 1)).astype(jnp.bfloat16)     # NHWC bf16

    # conv1(1->32, 3x3, pad 1) + bn1 + relu + 2x2 max-pool (one fused kernel)
    cols1 = im2col_3x3_same(x)                                       # (N,28,28,9)
    cols1 = jnp.pad(cols1, ((0, 0), (0, 0), (0, 0), (0, 128 - 9)))   # lane-dense K
    y1 = conv_bn_relu_pool(pool_taps(cols1),
                           params["conv1_wcol"], params["conv1_bias"])
    y1 = y1[:N * 196, :32].reshape(N, 14, 14, 32)                    # (N,14,14,32)

    # conv2(32->64, 3x3, pad 1) + bn2 + relu + 2x2 max-pool (one fused kernel)
    # TODO(synk): fuse the 9-tap im2col into the kernel (K-grid over shifted
    # windows) so the 9x-expanded cols2 never round-trips HBM.
    cols2 = im2col_3x3_same(y1)                                      # (N,14,14,288)
    y2 = conv_bn_relu_pool(pool_taps(cols2),
                           params["conv2_wcol"], params["conv2_bias"])
    flat = y2[:N * 49, :64].reshape(N, 7 * 7 * 64)                   # NHWC flatten

    # fc1 -> relu -> dropout(identity, eval) -> fc2  (fused, batch-tiled)
    return mlp_head(flat, params["fc1_w"], params["fc1_b"],
                    params["fc2_w"], params["fc2_b"], n_classes=10)


# ----------------------------------------------------------------------------
# Pure-JAX f32 reference (mirrors the PyTorch forward, eval mode)
# ----------------------------------------------------------------------------
def net3_reference(x, raw):
    eps = raw["eps"]

    def conv(h, w, b):
        y = lax.conv_general_dilated(h, w, (1, 1), ((1, 1), (1, 1)),
                                     dimension_numbers=("NCHW", "OIHW", "NCHW"))
        return y + b[None, :, None, None]

    def bn(h, p):
        g, beta, m, v = p
        return ((h - m[None, :, None, None]) /
                jnp.sqrt(v[None, :, None, None] + eps)) * g[None, :, None, None] \
               + beta[None, :, None, None]

    def pool(h):
        n, c, hh, ww = h.shape
        return jnp.max(h.reshape(n, c, hh // 2, 2, ww // 2, 2), axis=(3, 5))

    h = jax.nn.relu(bn(conv(x, raw["conv1_w"], raw["conv1_b"]), raw["bn1"]))
    h = pool(h)
    h = jax.nn.relu(bn(conv(h, raw["conv2_w"], raw["conv2_b"]), raw["bn2"]))
    h = pool(h)
    h = h.reshape(h.shape[0], -1)
    h = jax.nn.relu(h @ raw["fc1_w"].T + raw["fc1_b"])
    return h @ raw["fc2_w"].T + raw["fc2_b"]


if __name__ == "__main__":
    key = jax.random.PRNGKey(0)
    k_x, k_p = jax.random.split(key)

    # fc1 = Linear(64*7*7, 256) pins the spatial size to 28x28 (FashionMNIST).
    x = jax.random.normal(k_x, (2, 1, 28, 28), dtype=jnp.float32)

    params, raw = init_params(k_p)

    out = jax.jit(net3_forward)(x, params)
    out = jax.block_until_ready(out)
    assert out.shape == (2, 10), out.shape

    ref = jax.block_until_ready(net3_reference(x, raw))
    # bf16 operands with f32 accumulation: expected logit error ~1e-3.
    if not jnp.allclose(out, ref, rtol=2e-2, atol=2e-2):
        raise AssertionError(
            f"Mismatch vs reference, max abs diff = {jnp.max(jnp.abs(out - ref))}")

    print("KERNEL_OK")
</pallas_src>

<mosaic_0001>
module attributes {stable_mosaic.version = 11 : i64} {
  func.func @_conv_bn_relu_pool_kernel(%arg0: i32, %arg1: i32, %arg2: memref<1x208x128xbf16, #tpu.memory_space<vmem>>, %arg3: memref<128x128xbf16, #tpu.memory_space<vmem>>, %arg4: memref<1x128xf32, #tpu.memory_space<vmem>>, %arg5: memref<208x128xbf16, #tpu.memory_space<vmem>>) attributes {dimension_semantics = [#tpu.dimension_semantics<parallel>, #tpu.dimension_semantics<arbitrary>], iteration_bounds = array<i64: 2, 4>, scalar_prefetch = 0 : i64, scratch_operands = 0 : i64, tpu.core_type = #tpu.core_type<tc>, window_params = [{transform_indices = @transform_0, window_bounds = array<i64: 1, 208, 128>}, {pipeline_mode = #tpu.pipeline_mode<synchronous>, transform_indices = @transform_1, window_bounds = array<i64: 128, 128>}, {pipeline_mode = #tpu.pipeline_mode<synchronous>, transform_indices = @transform_2, window_bounds = array<i64: 1, 128>}, {transform_indices = @transform_3, window_bounds = array<i64: 208, 128>}]} {
    %c0 = arith.constant 0 : index
    %c0_0 = arith.constant 0 : index
    %c0_1 = arith.constant 0 : index
    %0 = vector.load %arg2[%c0, %c0_0, %c0_1] : memref<1x208x128xbf16, #tpu.memory_space<vmem>>, vector<1x208x128xbf16>
    %1 = vector.shape_cast %0 : vector<1x208x128xbf16> to vector<208x128xbf16>
    %c0_2 = arith.constant 0 : index
    %c0_3 = arith.constant 0 : index
    %2 = vector.load %arg3[%c0_2, %c0_3] : memref<128x128xbf16, #tpu.memory_space<vmem>>, vector<128x128xbf16>
    %cst = arith.constant dense<0.000000e+00> : vector<208x128xf32>
    %3 = tpu.matmul %1, %2, %cst {dimension_numbers = #tpu.dot_dimension_numbers<[1], [0], [0], [1], [0, 0, 1, 1], [], []>} : vector<208x128xbf16>, vector<128x128xbf16>, vector<208x128xf32> -> vector<208x128xf32>
    %c0_4 = arith.constant 0 : index
    %c0_5 = arith.constant 0 : index
    %4 = vector.load %arg4[%c0_4, %c0_5] : memref<1x128xf32, #tpu.memory_space<vmem>>, vector<1x128xf32>
    %5 = vector.broadcast %4 : vector<1x128xf32> to vector<208x128xf32>
    %6 = arith.addf %3, %5 : vector<208x128xf32>
    %cst_6 = arith.constant 0.000000e+00 : f32
    %7 = vector.broadcast %cst_6 : f32 to vector<208x128xf32>
    %8 = arith.maximumf %6, %7 : vector<208x128xf32>
    %9 = arith.truncf %8 : vector<208x128xf32> to vector<208x128xbf16>
    %c0_i32 = arith.constant 0 : i32
    %10 = arith.cmpi eq, %arg1, %c0_i32 : i32
    %11 = arith.extui %10 : i1 to i32
    %c0_i32_7 = arith.constant 0 : i32
    %12 = arith.cmpi ne, %11, %c0_i32_7 : i32
    scf.if %12 {
      %c0_10 = arith.constant 0 : index
      %c0_11 = arith.constant 0 : index
      %16 = vector.load %arg5[%c0_10, %c0_11] : memref<208x128xbf16, #tpu.memory_space<vmem>>, vector<208x128xbf16>
      tpu.vector_store %arg5[%c0_10, %c0_11], %9 {strides = array<i32>} : memref<208x128xbf16, #tpu.memory_space<vmem>>, vector<208x128xbf16>,
    } else {
    }
    %c0_i32_8 = arith.constant 0 : i32
    %13 = arith.cmpi sgt, %arg1, %c0_i32_8 : i32
    %14 = arith.extui %13 : i1 to i32
    %c0_i32_9 = arith.constant 0 : i32
    %15 = arith.cmpi ne, %14, %c0_i32_9 : i32
    scf.if %15 {
      %c0_10 = arith.constant 0 : index
      %c0_11 = arith.constant 0 : index
      %16 = vector.load %arg5[%c0_10, %c0_11] : memref<208x128xbf16, #tpu.memory_space<vmem>>, vector<208x128xbf16>
      %17 = arith.maximumf %16, %9 : vector<208x128xbf16>
      %c0_12 = arith.constant 0 : index
      %c0_13 = arith.constant 0 : index
      %18 = vector.load %arg5[%c0_12, %c0_13] : memref<208x128xbf16, #tpu.memory_space<vmem>>, vector<208x128xbf16>
      tpu.vector_store %arg5[%c0_12, %c0_13], %17 {strides = array<i32>} : memref<208x128xbf16, #tpu.memory_space<vmem>>, vector<208x128xbf16>,
    } else {
    }
    return
  }
  func.func @transform_0(%arg0: i32, %arg1: i32) -> (i32, i32, i32) {
    %c0_i32 = arith.constant 0 : i32
    %c0_i32_0 = arith.constant 0 : i32
    return %arg1, %arg0, %c0_i32 : i32, i32, i32
  }
  func.func @transform_1(%arg0: i32, %arg1: i32) -> (i32, i32) {
    %c0_i32 = arith.constant 0 : i32
    %c0_i32_0 = arith.constant 0 : i32
    %c0_i32_1 = arith.constant 0 : i32
    return %c0_i32, %c0_i32_0 : i32, i32
  }
  func.func @transform_2(%arg0: i32, %arg1: i32) -> (i32, i32) {
    %c0_i32 = arith.constant 0 : i32
    %c0_i32_0 = arith.constant 0 : i32
    %c0_i32_1 = arith.constant 0 : i32
    return %c0_i32, %c0_i32_0 : i32, i32
  }
  func.func @transform_3(%arg0: i32, %arg1: i32) -> (i32, i32) {
    %c0_i32 = arith.constant 0 : i32
    %c0_i32_0 = arith.constant 0 : i32
    return %arg0, %c0_i32 : i32, i32
  }
}

module attributes {stable_mosaic.version = 11 : i64} {
  func.func @_conv_bn_relu_pool_kernel(%arg0: i32, %arg1: i32, %arg2: memref<1x64x288xbf16, #tpu.memory_space<vmem>>, %arg3: memref<288x128xbf16, #tpu.memory_space<vmem>>, %arg4: memref<1x128xf32, #tpu.memory_space<vmem>>, %arg5: memref<64x128xbf16, #tpu.memory_space<vmem>>) attributes {dimension_semantics = [#tpu.dimension_semantics<parallel>, #tpu.dimension_semantics<arbitrary>], iteration_bounds = array<i64: 2, 4>, scalar_prefetch = 0 : i64, scratch_operands = 0 : i64, tpu.core_type = #tpu.core_type<tc>, window_params = [{transform_indices = @transform_0, window_bounds = array<i64: 1, 64, 288>}, {pipeline_mode = #tpu.pipeline_mode<synchronous>, transform_indices = @transform_1, window_bounds = array<i64: 288, 128>}, {pipeline_mode = #tpu.pipeline_mode<synchronous>, transform_indices = @transform_2, window_bounds = array<i64: 1, 128>}, {transform_indices = @transform_3, window_bounds = array<i64: 64, 128>}]} {
    %c0 = arith.constant 0 : index
    %c0_0 = arith.constant 0 : index
    %c0_1 = arith.constant 0 : index
    %0 = vector.load %arg2[%c0, %c0_0, %c0_1] : memref<1x64x288xbf16, #tpu.memory_space<vmem>>, vector<1x64x288xbf16>
    %1 = vector.shape_cast %0 : vector<1x64x288xbf16> to vector<64x288xbf16>
    %c0_2 = arith.constant 0 : index
    %c0_3 = arith.constant 0 : index
    %2 = vector.load %arg3[%c0_2, %c0_3] : memref<288x128xbf16, #tpu.memory_space<vmem>>, vector<288x128xbf16>
    %cst = arith.constant dense<0.000000e+00> : vector<64x128xf32>
    %3 = tpu.matmul %1, %2, %cst {dimension_numbers = #tpu.dot_dimension_numbers<[1], [0], [0], [1], [0, 0, 1, 1], [], []>} : vector<64x288xbf16>, vector<288x128xbf16>, vector<64x128xf32> -> vector<64x128xf32>
    %c0_4 = arith.constant 0 : index
    %c0_5 = arith.constant 0 : index
    %4 = vector.load %arg4[%c0_4, %c0_5] : memref<1x128xf32, #tpu.memory_space<vmem>>, vector<1x128xf32>
    %5 = vector.broadcast %4 : vector<1x128xf32> to vector<64x128xf32>
    %6 = arith.addf %3, %5 : vector<64x128xf32>
    %cst_6 = arith.constant 0.000000e+00 : f32
    %7 = vector.broadcast %cst_6 : f32 to vector<64x128xf32>
    %8 = arith.maximumf %6, %7 : vector<64x128xf32>
    %9 = arith.truncf %8 : vector<64x128xf32> to vector<64x128xbf16>
    %c0_i32 = arith.constant 0 : i32
    %10 = arith.cmpi eq, %arg1, %c0_i32 : i32
    %11 = arith.extui %10 : i1 to i32
    %c0_i32_7 = arith.constant 0 : i32
    %12 = arith.cmpi ne, %11, %c0_i32_7 : i32
    scf.if %12 {
      %c0_10 = arith.constant 0 : index
      %c0_11 = arith.constant 0 : index
      %16 = vector.load %arg5[%c0_10, %c0_11] : memref<64x128xbf16, #tpu.memory_space<vmem>>, vector<64x128xbf16>
      tpu.vector_store %arg5[%c0_10, %c0_11], %9 {strides = array<i32>} : memref<64x128xbf16, #tpu.memory_space<vmem>>, vector<64x128xbf16>,
    } else {
    }
    %c0_i32_8 = arith.constant 0 : i32
    %13 = arith.cmpi sgt, %arg1, %c0_i32_8 : i32
    %14 = arith.extui %13 : i1 to i32
    %c0_i32_9 = arith.constant 0 : i32
    %15 = arith.cmpi ne, %14, %c0_i32_9 : i32
    scf.if %15 {
      %c0_10 = arith.constant 0 : index
      %c0_11 = arith.constant 0 : index
      %16 = vector.load %arg5[%c0_10, %c0_11] : memref<64x128xbf16, #tpu.memory_space<vmem>>, vector<64x128xbf16>
      %17 = arith.maximumf %16, %9 : vector<64x128xbf16>
      %c0_12 = arith.constant 0 : index
      %c0_13 = arith.constant 0 : index
      %18 = vector.load %arg5[%c0_12, %c0_13] : memref<64x128xbf16, #tpu.memory_space<vmem>>, vector<64x128xbf16>
      tpu.vector_store %arg5[%c0_12, %c0_13], %17 {strides = array<i32>} : memref<64x128xbf16, #tpu.memory_space<vmem>>, vector<64x128xbf16>,
    } else {
    }
    return
  }
  func.func @transform_0(%arg0: i32, %arg1: i32) -> (i32, i32, i32) {
    %c0_i32 = arith.constant 0 : i32
    %c0_i32_0 = arith.constant 0 : i32
    return %arg1, %arg0, %c0_i32 : i32, i32, i32
  }
  func.func @transform_1(%arg0: i32, %arg1: i32) -> (i32, i32) {
    %c0_i32 = arith.constant 0 : i32
    %c0_i32_0 = arith.constant 0 : i32
    %c0_i32_1 = arith.constant 0 : i32
    return %c0_i32, %c0_i32_0 : i32, i32
  }
  func.func @transform_2(%arg0: i32, %arg1: i32) -> (i32, i32) {
    %c0_i32 = arith.constant 0 : i32
    %c0_i32_0 = arith.constant 0 : i32
    %c0_i32_1 = arith.constant 0 : i32
    return %c0_i32, %c0_i32_0 : i32, i32
  }
  func.func @transform_3(%arg0: i32, %arg1: i32) -> (i32, i32) {
    %c0_i32 = arith.constant 0 : i32
    %c0_i32_0 = arith.constant 0 : i32
    return %arg0, %c0_i32 : i32, i32
  }
}

module attributes {stable_mosaic.version = 11 : i64} {
  func.func @_mlp_head_kernel(%arg0: i32, %arg1: memref<16x3136xbf16, #tpu.memory_space<vmem>>, %arg2: memref<3136x256xbf16, #tpu.memory_space<vmem>>, %arg3: memref<1x256xf32, #tpu.memory_space<vmem>>, %arg4: memref<256x128xf32, #tpu.memory_space<vmem>>, %arg5: memref<1x128xf32, #tpu.memory_space<vmem>>, %arg6: memref<16x128xf32, #tpu.memory_space<vmem>>) attributes {dimension_semantics = [#tpu.dimension_semantics<parallel>], iteration_bounds = array<i64: 1>, scalar_prefetch = 0 : i64, scratch_operands = 0 : i64, tpu.core_type = #tpu.core_type<tc>, window_params = [{transform_indices = @transform_0, window_bounds = array<i64: 16, 3136>}, {pipeline_mode = #tpu.pipeline_mode<synchronous>, transform_indices = @transform_1, window_bounds = array<i64: 3136, 256>}, {pipeline_mode = #tpu.pipeline_mode<synchronous>, transform_indices = @transform_2, window_bounds = array<i64: 1, 256>}, {pipeline_mode = #tpu.pipeline_mode<synchronous>, transform_indices = @transform_3, window_bounds = array<i64: 256, 128>}, {pipeline_mode = #tpu.pipeline_mode<synchronous>, transform_indices = @transform_4, window_bounds = array<i64: 1, 128>}, {transform_indices = @transform_5, window_bounds = array<i64: 16, 128>}]} {
    %c0 = arith.constant 0 : index
    %c0_0 = arith.constant 0 : index
    %0 = vector.load %arg1[%c0, %c0_0] : memref<16x3136xbf16, #tpu.memory_space<vmem>>, vector<16x3136xbf16>
    %c0_1 = arith.constant 0 : index
    %c0_2 = arith.constant 0 : index
    %1 = vector.load %arg2[%c0_1, %c0_2] : memref<3136x256xbf16, #tpu.memory_space<vmem>>, vector<3136x256xbf16>
    %cst = arith.constant dense<0.000000e+00> : vector<16x256xf32>
    %2 = tpu.matmul %0, %1, %cst {dimension_numbers = #tpu.dot_dimension_numbers<[1], [0], [0], [1], [0, 0, 1, 1], [], []>} : vector<16x3136xbf16>, vector<3136x256xbf16>, vector<16x256xf32> -> vector<16x256xf32>
    %c0_3 = arith.constant 0 : index
    %c0_4 = arith.constant 0 : index
    %3 = vector.load %arg3[%c0_3, %c0_4] : memref<1x256xf32, #tpu.memory_space<vmem>>, vector<1x256xf32>
    %4 = vector.broadcast %3 : vector<1x256xf32> to vector<16x256xf32>
    %5 = arith.addf %2, %4 : vector<16x256xf32>
    %cst_5 = arith.constant 0.000000e+00 : f32
    %6 = vector.broadcast %cst_5 : f32 to vector<16x256xf32>
    %7 = arith.maximumf %5, %6 : vector<16x256xf32>
    %c0_6 = arith.constant 0 : index
    %c0_7 = arith.constant 0 : index
    %8 = vector.load %arg4[%c0_6, %c0_7] : memref<256x128xf32, #tpu.memory_space<vmem>>, vector<256x128xf32>
    %cst_8 = arith.constant dense<0.000000e+00> : vector<16x128xf32>
    %9 = tpu.matmul %7, %8, %cst_8 {dimension_numbers = #tpu.dot_dimension_numbers<[1], [0], [0], [1], [0, 0, 1, 1], [], []>} : vector<16x256xf32>, vector<256x128xf32>, vector<16x128xf32> -> vector<16x128xf32>
    %c0_9 = arith.constant 0 : index
    %c0_10 = arith.constant 0 : index
    %10 = vector.load %arg5[%c0_9, %c0_10] : memref<1x128xf32, #tpu.memory_space<vmem>>, vector<1x128xf32>
    %11 = vector.broadcast %10 : vector<1x128xf32> to vector<16x128xf32>
    %12 = arith.addf %9, %11 : vector<16x128xf32>
    %c0_11 = arith.constant 0 : index
    %c0_12 = arith.constant 0 : index
    %13 = vector.load %arg6[%c0_11, %c0_12] : memref<16x128xf32, #tpu.memory_space<vmem>>, vector<16x128xf32>
    tpu.vector_store %arg6[%c0_11, %c0_12], %12 {strides = array<i32>} : memref<16x128xf32, #tpu.memory_space<vmem>>, vector<16x128xf32>,
    return
  }
  func.func @transform_0(%arg0: i32) -> (i32, i32) {
    %c0_i32 = arith.constant 0 : i32
    %c0_i32_0 = arith.constant 0 : i32
    return %arg0, %c0_i32 : i32, i32
  }
  func.func @transform_1(%arg0: i32) -> (i32, i32) {
    %c0_i32 = arith.constant 0 : i32
    %c0_i32_0 = arith.constant 0 : i32
    %c0_i32_1 = arith.constant 0 : i32
    return %c0_i32, %c0_i32_0 : i32, i32
  }
  func.func @transform_2(%arg0: i32) -> (i32, i32) {
    %c0_i32 = arith.constant 0 : i32
    %c0_i32_0 = arith.constant 0 : i32
    %c0_i32_1 = arith.constant 0 : i32
    return %c0_i32, %c0_i32_0 : i32, i32
  }
  func.func @transform_3(%arg0: i32) -> (i32, i32) {
    %c0_i32 = arith.constant 0 : i32
    %c0_i32_0 = arith.constant 0 : i32
    %c0_i32_1 = arith.constant 0 : i32
    return %c0_i32, %c0_i32_0 : i32, i32
  }
  func.func @transform_4(%arg0: i32) -> (i32, i32) {
    %c0_i32 = arith.constant 0 : i32
    %c0_i32_0 = arith.constant 0 : i32
    %c0_i32_1 = arith.constant 0 : i32
    return %c0_i32, %c0_i32_0 : i32, i32
  }
  func.func @transform_5(%arg0: i32) -> (i32, i32) {
    %c0_i32 = arith.constant 0 : i32
    %c0_i32_0 = arith.constant 0 : i32
    return %arg0, %c0_i32 : i32, i32
  }
}

</mosaic_0001>

<bundles_post_ra>
// kernel: net3_forward.3
= control target key start
LH: loop header
LB: loop body
LE: loop exit
PB: predicated region body
PF: predicated region fallthrough
CT: control target
= control target key end

     0   :  { %s2395_s0 = inlined_call_operand.hbm [shape: bf16[4,416,128], index: 0, kind: input, shape index: {}]   ;;  %s2396_s1 = inlined_call_operand.hbm [shape: bf16[128,128], index: 1, kind: input, shape index: {}]   ;;  %s2397_s2 = inlined_call_operand.hbm [shape: f32[1,128], index: 2, kind: input, shape index: {}]   ;;  %s2398_s3 = inlined_call_operand.hbm [shape: bf16[416,128], index: 3, kind: output, shape index: {}]  }
   0x1   :  { %2412 = sst [smem:[#allocation18_spill]] %s2396_s1 }
   0x2   :  { %2413 = sst [smem:[#allocation19_spill]] %s2397_s2 }
   0x3   :  { %2414 = sst [smem:[#allocation20_spill]] %s2398_s3 }
   0x4   :  { %8 = vsyncpa [#allocation3], 0 }
   0x5   :  { %10 = vsyncpa [#allocation3 + $0x1], 0 }
   0x6   :  { %11 = vsyncpa [#allocation6], 0 }
   0x7   :  { %12 = vsyncpa [#allocation4], 0 }
   0x8   :  { %14 = vsyncpa [#allocation4 + $0x1], 0  ;;  %s1812_s12 = smov 0   ;;  %s1814_s13 = smov 0  }
   0x9   :  { %s1816_s14 = smov 0   ;;  %s1818_s15 = smov 0  }
   0xa   :  { %s1820_s16 = smov 0   ;;  %s1822_s17 = smov 0  }
   0xb   :  { %s1824_s18 = smov 0   ;;  %s1826_s19 = smov 0  }
   0xc   :  { %s1828_s20 = smov 0   ;;  %s1830_s21 = smov 0  }
   0xd   :  { %s1832_s22 = smov 0  }
   0xe LB: > { %2415 = sst [smem:[#allocation12_spill]] %s1740_s12  ;;  %s1000_s23 = sadd.s32 4294967295, %s1780_s22   ;;  %s1780_s22 = sphi %s1832_s22, %s20_s22   ;;  %s1776_s21 = sphi %s1830_s21, %s2457_s21   ;;  %s1772_s20 = sphi %s1828_s20, %s2456_s20   ;;  %s1768_s19 = sphi %s1826_s19, %s2455_s19   ;;  %s1764_s18 = sphi %s1824_s18, %s2454_s18   ;;  %s1760_s17 = sphi %s1822_s17, %s2453_s17   ;;  %s1756_s16 = sphi %s1820_s16, %s2452_s16   ;;  %s1752_s15 = sphi %s1818_s15, %s2451_s15   ;;  %s1748_s14 = sphi %s1816_s14, %s2450_s14   ;;  %s1744_s13 = sphi %s1814_s13, %s2449_s13   ;;  %s1740_s12 = sphi %s1812_s12, %s2448_s12  }
   0xf   : > { %2416 = sst [smem:[#allocation13_spill]] %s1764_s18  ;;  %s1001_s24 = sadd.s32 4294967294, %s1780_s22  }
  0x10   : > { %2417 = sst [smem:[#allocation14_spill]] %s1768_s19  ;;  %p54_p0 = scmp.ne.s32.totalorder %s1756_s16, %s1752_s15 }
  0x11   : > { %p1868_p1 = scmp.eq.s32.totalorder %s1000_s23, 0  ;;  %p119_p2 = scmp.ne.s32.totalorder %s1748_s14, %s1744_s13 }
  0x12   : > { %p120_p4 = scmp.eq.s32.totalorder %s1000_s23, 7  ;;  %p125_p5 = scmp.ne.s32.totalorder %s1744_s13, %s1740_s12 }
  0x13   : > { %s2418_s25 = scalar_select %p1868_p1, 1, 0 }
  0x14   : > { %p1877_p3 = por %p1868_p1, %p54_p0  ;;  %p126_p6 = scmp.eq.s32.totalorder %s1001_s24, 7 }
  0x15   : > { %p1883_p7 = por %p120_p4, %p119_p2  ;;  %p1002_p8 = scmp.ge.s32.totalorder %s1780_s22, 1 }
  0x16   : > { %s2419_s27 = scalar_select %p1877_p3, 1, 0 }
  0x17   : > { %s2420_s28 = scalar_select %p1883_p7, 1, 0 }
  0x18   : > { %p1888_p9 = por %p126_p6, %p125_p5  ;;  %p133_p10 = scmp.lt.s32.totalorder %s1780_s22, 9 }
  0x19   : > { %2421 = sst [smem:[#allocation15_spill]] %s2420_s28  ;;  %s1782_s4 = smov [#allocation5]  }
  0x1a   : > { %s2422_s29 = scalar_select %p1888_p9, 1, 0 }
  0x1b   : > { %p1893_p11 = pnand %p1002_p8, %p133_p10  ;;  %s145_s5 = sshll.u32 %s1782_s4, 4  ;;  %s146_s5 = int_to_ptr.vmem [resolvable:$true] %s145_s5 }
  0x1c   : > { %2423 = sst [smem:[#allocation16_spill]] %s2422_s29  ;;  %s1783_s7 = smov [#allocation7]  }
  0x1d   : > { %s2424_s30 = scalar_select %p1893_p11, 1, 0 }
  0x1e   : > { %p1430_p12 = pneg %p1893_p11  ;;  %s159_s8 = sshll.u32 %s1783_s7, 4  ;;  %s1905_s8 = int_to_ptr.vmem [resolvable:$true] %s159_s8 }
  0x1f   : > { %s2426_s1 = sld [smem:[#allocation18_spill]] }
  0x20   : > { %p1901_p13 = pnand %p1430_p12, %p1868_p1 }
  0x22   : > { %p1570_p2 = pneg %p1901_p13 }
  0x25   : > { %s1568_s11 = scalar_lea.hbm %s2426_s1, 1024 }
  0x26   : > { %p1569_p0 = scmp.ne.s32.totalorder %s2426_s1, %s1568_s11  ;;  %p1575_p6 = scmp.lt.u32.totalorder %s1568_s11, %s2426_s1 }
  0x28   : > { %p1571_p4 = pnand %p1570_p2, %p1569_p0 }
  0x2a   : > { %p1572_p5 = pneg %p1571_p4 }
  0x2c   : > { %p1577_p8 = pnand %p1575_p6, %p1572_p5 }
  0x2e   : > { %1580 = shalt.err (!%p1577_p8)
}
  0x2f   : > { %s1581_s7 = scalar_lea.vmem %s146_s5, 1024  ;;  %p1589_p7 = scmp.lt.s32.totalorder %s146_s5, %s146_s5 }
  0x30   : > { %p1582_p10 = scmp.ne.s32.totalorder %s146_s5, %s1581_s7  ;;  %p1590_p1 = scmp.lt.s32.totalorder %s1581_s7, %s1581_s7 }
  0x32   : > { %p1584_p12 = pnand %p1582_p10, %p1570_p2  ;;  %p1591_p3 = por %p1590_p1, %p1589_p7 }
  0x34   : > { %p1585_p9 = pneg %p1584_p12 }
  0x36   : > { %p1592_p11 = pnand %p1591_p3, %p1585_p9 }
  0x38   : > { %1595 = shalt.err (!%p1592_p11)
}
  0x39   : > { %s2406_s9 = smov 64   ;;  %s2407_s10 = smov 4  }
  0x3a   : > { %1433 = dma.hbm_to_vmem [thread:$0]  (!%p1901_p13), %s2426_s1, 1024, %s146_s5, [#allocation6], %s2406_s9, %s2406_s9, %s2407_s10  }
  0x3b   : > { %s2427_s2 = sld [smem:[#allocation19_spill]] }
  0x41   : > { %s1596_s4 = scalar_lea.hbm %s2427_s2, 16 }
  0x42   : > { %p1597_p1 = scmp.ne.s32.totalorder %s2427_s2, %s1596_s4  ;;  %p1603_p9 = scmp.lt.u32.totalorder %s1596_s4, %s2427_s2 }
  0x44   : > { %p1599_p3 = pnand %p1597_p1, %p1570_p2 }
  0x46   : > { %p1600_p7 = pneg %p1599_p3 }
  0x48   : > { %p1605_p11 = pnand %p1603_p9, %p1600_p7 }
  0x4a   : > { %1608 = shalt.err (!%p1605_p11)
}
  0x4b   : > { %s1609_s5 = scalar_lea.vmem %s1905_s8, 16  ;;  %s1616_s26 = scalar_lea.vmem %s1905_s8, 32 }
  0x4c   : > { %p1610_p0 = scmp.ne.s32.totalorder %s1905_s8, %s1609_s5  ;;  %p1617_p6 = scmp.lt.s32.totalorder %s1905_s8, %s1905_s8 }
  0x4d   : > { %p1618_p8 = scmp.lt.s32.totalorder %s1616_s26, %s1609_s5 }
  0x4e   : > { %p1612_p4 = pnand %p1610_p0, %p1570_p2 }
  0x4f   : > { %p1619_p10 = por %p1618_p8, %p1617_p6 }
  0x50   : > { %p1613_p5 = pneg %p1612_p4 }
  0x52   : > { %p1620_p12 = pnand %p1619_p10, %p1613_p5 }
  0x54   : > { %1623 = shalt.err (!%p1620_p12)
}
  0x55   : > { %1436 = dma.hbm_to_vmem [thread:$0]  (!%p1901_p13), %s2427_s2, 16, %s1905_s8, [#allocation6]  }
  0x56   : > { %s29_s11 = sadd.s32 1, %s1772_s20  ;;  %s32_s15 = sadd.s32 1, %s1776_s21 }
  0x57   : > { %p30_p2 = scmp.ge.s32.totalorder %s29_s11, 4  ;;  %s41_s6 = sadd.s32 1, %s1760_s17 }
  0x58   : > { %p48_p1 = scmp.ne.s32.totalorder %s1760_s17, %s1756_s16  ;;  %p49_p3 = scmp.eq.s32.totalorder %s1780_s22, 0 }
  0x59   : > { %s2459_s11 = smov (%p30_p2, %s29_s11), 0  ;;  %s2461_s15 = smov (!%p30_p2, %s32_s15), %s1776_s21 }
  0x5a   : > { %2428 = sst [smem:[#allocation17_spill]] %s2459_s11  ;;  %s36_s23 = ssub.s32 %s1772_s20, %s2459_s11 }
  0x5b   : > { %p1969_p7 = por %p49_p3, %p48_p1  ;;  %p34_p13 = scmp.ge.s32.totalorder %s2461_s15, 2 }
  0x5c   : > { %p1447_p9 = scmp.lt.s32.totalorder %s1780_s22, 8  ;;  %s170_s8 = sand.u32 1, %s1760_s17  }
  0x5d   : > { %s175_s4 = smul.u32 26, %s1776_s21  ;;  %s2463_s15 = smov (%p34_p13, %s2461_s15), 0 }
  0x5e   : > { %s1414_s7 = smul.u32 104, %s170_s8  ;;  %s37_s5 = ssub.s32 %s1776_s21, %s2463_s15 }
  0x5f   : > { %s1415_s26 = smul.u32 52, %s1772_s20  ;;  %s38_s12 = sor.u32 %s37_s5, %s36_s23 }
  0x60   : > { %p107_p11 = scmp.eq.s32.totalorder %s37_s5, 0  ;;  %p39_p0 = scmp.eq.s32.totalorder %s38_s12, 0 }
  0x61   : > { %s2430_s29 = sadd.s32 1, %s1748_s14  ;;  %s180_s1 = sadd.s32 %s1415_s26, %s175_s4 }
  0x62   : > { %s1984_s9 = scalar_select %p107_p11, %s1748_s14, %s2430_s29  }
  0x63   : > { %s1987_s10 = scalar_select %p39_p0, %s1760_s17, %s41_s6  }
  0x64   : > { %s174_s2 = scalar_lea.vmem [#allocation2], %s1414_s7  ;;  %s1006_s3 = sshll.u32 %s180_s1, 6 }
  0x65   : > { %s183_s11 = sshll.u32 %s174_s2, 4  ;;  %s1994_s18 = scalar_lea.hbm %s2395_s0, %s1006_s3  ;;  %s1989_s11 = int_to_ptr.vmem [resolvable:$true] %s183_s11 }
  0x66   : > { %p2000_p4 = pnand %p1447_p9, %p1969_p7  ;;  %s2004_s1 = scalar_lea.sflag [#allocation3], %s170_s8 }
  0x67   : > { %s1624_s2 = scalar_lea.hbm %s1994_s18, 1664  ;;  %s1629_s28 = scalar_lea.hbm %s2395_s0, 13312 }
  0x68   : > { %p1625_p5 = scmp.ne.s32.totalorder %s1994_s18, %s1624_s2  ;;  %p1626_p6 = pneg %p2000_p4 }
  0x69   : > { %p1630_p12 = scmp.lt.u32.totalorder %s1994_s18, %s2395_s0  ;;  %p1631_p2 = scmp.lt.u32.totalorder %s1629_s28, %s1624_s2 }
  0x6a   : > { %p1627_p8 = pnand %p1626_p6, %p1625_p5  ;;  %p1633_p3 = scmp.lt.u32.totalorder %s1624_s2, %s1994_s18 }
  0x6b   : > { %p1632_p1 = por %p1631_p2, %p1630_p12 }
  0x6c   : > { %p1628_p10 = pneg %p1627_p8 }
  0x6d   : > { %p1634_p7 = por %p1633_p3, %p1632_p1 }
  0x6f   : > { %p1635_p13 = pnand %p1634_p7, %p1628_p10 }
  0x71   : > { %1638 = shalt.err (!%p1635_p13)
}
  0x72   : > { %s1639_s8 = scalar_lea.vmem %s1989_s11, 1664  ;;  %s1786_s4 = smov [#allocation2]  }
  0x73   : > { %p1640_p9 = scmp.ne.s32.totalorder %s1989_s11, %s1639_s8  ;;  %s1644_s7 = sshll.u32 %s1786_s4, 4  ;;  %s1645_s7 = int_to_ptr.vmem [resolvable:$false] %s1644_s7 }
  0x74   : > { %s1646_s5 = scalar_lea.vmem %s1645_s7, 3328  ;;  %p1647_p5 = scmp.lt.s32.totalorder %s1989_s11, %s1645_s7 }
  0x75   : > { %p1642_p11 = pnand %p1640_p9, %p1626_p6  ;;  %p1648_p8 = scmp.lt.s32.totalorder %s1646_s5, %s1639_s8 }
  0x77   : > { %p1643_p0 = pneg %p1642_p11  ;;  %p1649_p12 = por %p1648_p8, %p1647_p5 }
  0x79   : > { %p1650_p2 = pnand %p1649_p12, %p1643_p0 }
  0x7b   : > { %1653 = shalt.err (!%p1650_p2)
}
  0x7c   : > { %s2432_s26 = smov 4   ;;  %s2433_s12 = smov 64  }
  0x7d   : > { %1440 = dma.hbm_to_vmem [thread:$0]  (!%p2000_p4), %s1994_s18, 1664, %s1989_s11, %s2004_s1, %s2433_s12, %s2433_s12, %s2432_s26  }
  0x7e   : > { %p2434_p6 = scmp.ne.s32.totalorder %s2424_s30, 0 }
  0x7f   : > { %s197_s29 = sand.u32 (!%p2434_p6), 1, %s1756_s16   ;;  %p2435_p10 = scmp.ne.s32.totalorder (!%p2434_p6), %s2419_s27, 0 }
  0x80   : > { %195 = sbr.rel (%p2434_p6) target bundleno = 498 (0x1f2), region = 32  ;;  %s198_s3 = scalar_lea.sflag (!%p2434_p6), [#allocation3], %s197_s29 }
  0x81   : > { %s1416_s2 = smul.u32 (!%p2434_p6), 104, %s197_s29 }
  0x83   : > { %s2038_s19 = scalar_lea.vmem (!%p2434_p6), [#allocation2], %s1416_s2 }
  0x87   : > { %1727 = dma.done.wait (%p2435_p10), %s198_s3, 1664  }
  0x88   : > { %1729 = vsyncadd (%p2435_p10), %s198_s3, 4294965632  ;;  %p2436_p1 = scmp.ne.s32.totalorder %s2418_s25, 0 }
  0x8a   : > { %1731 = dma.done.wait (%p2436_p1), [#allocation6], 1040  }
  0x8b   : > { %1733 = vsyncadd (%p2436_p1), [#allocation6], 4294966256  ;;  %s229_s18 = sand.u32 1, %s1744_s13   ;;  %v1787_v0 = vmov 0.0   ;;  %vm1788_vm0 = vmmov 0   ;;  %v1547_v1 = vld [vmem:[#allocation5] sm:$0xff]  }
  0x8c   : > { %s2051_s30 = smul.u32 104, %s229_s18  ;;  %1330 = vmatprep.subr.bf16.mxu0 %v1787_v0  ;;  %1398 = vmatprep.subr.bf16.mxu1 %v1787_v0  ;;  %v1548_v2 = vld [vmem:[#allocation5 + $0x8] sm:$0xff]   ;;  %v1549_v3 = vld [vmem:[#allocation5 + $0x10] sm:$0xff]   ;;  %v1550_v4 = vld [vmem:[#allocation5 + $0x18] sm:$0xff]   ;;  %s2437_s27 = sld [smem:[#allocation13_spill]] }
  0x8d   : > { %1346 = vmatprep.mubr.msk.bf16.mxu0 %vm1788_vm0, %v1787_v0  ;;  %1374 = vmatprep.mubr.msk.bf16.mxu1 %vm1788_vm0, %v1787_v0  ;;  %v1551_v5 = vld [vmem:[#allocation5 + $0x20] sm:$0xff]   ;;  %v1552_v6 = vld [vmem:[#allocation5 + $0x28] sm:$0xff]   ;;  %v1553_v7 = vld [vmem:[#allocation5 + $0x30] sm:$0xff]  }
  0x8e   : > { %1331 = vmatpush3.bf16.msra.mxu0 %v1547_v1  ;;  %1406 = vmatpush3.bf16.msra.mxu1 %v1547_v1  ;;  %v1554_v8 = vld [vmem:[#allocation5 + $0x38] sm:$0xff]   ;;  %v1556_v10 = vld [vmem:[%s2038_s19 + $0x38] sm:$0xff]   ;;  %v1559_v13 = vld [vmem:[%s2038_s19 + $0x10] sm:$0xff]   ;;  %s2189_s25 = scalar_lea.vmem [#allocation8], %s2051_s30 }
  0x8f   : > { %1332 = vmatprep.subr.bf16.mxu0 %v1787_v0  ;;  %1399 = vmatprep.subr.bf16.mxu1 %v1787_v0  ;;  %v1555_v9 = vld [vmem:[%s2038_s19] sm:$0xff]   ;;  %v1557_v11 = vld [vmem:[%s2038_s19 + $0x8] sm:$0xff]   ;;  %v1561_v15 = vld [vmem:[%s2038_s19 + $0x18] sm:$0xff]  }
  0x90   : > { %v1558_v12 = vld [vmem:[%s2038_s19 + $0x40] sm:$0xff]   ;;  %v1560_v14 = vld [vmem:[%s2038_s19 + $0x48] sm:$0xff]   ;;  %v1562_v16 = vld [vmem:[%s2038_s19 + $0x50] sm:$0xff]  }
  0x91   : > { %v1563_v17 = vld [vmem:[%s2038_s19 + $0x20] sm:$0xff]   ;;  %v1564_v18 = vld [vmem:[%s2038_s19 + $0x58] sm:$0xff]   ;;  %v1565_v19 = vld [vmem:[%s2038_s19 + $0x28] sm:$0xff]  }
  0x92   : > { %1333 = vmatpush3.bf16.msra.mxu0 %v1548_v2  ;;  %1407 = vmatpush3.bf16.msra.mxu1 %v1548_v2  ;;  %v1566_v20 = vld [vmem:[%s2038_s19 + $0x60] sm:$0xff]   ;;  %v1567_v21 = vld [vmem:[%s2038_s19 + $0x30] sm:$0xff]   ;;  %p1032_p4 = scmp.ne.s32.totalorder %s2437_s27, 0 }
  0x93   : > { %1334 = vmatprep.subr.bf16.mxu0 %v1787_v0  ;;  %1400 = vmatprep.subr.bf16.mxu1 %v1787_v0  ;;  %v2108_v22 = vld [vmem:[#allocation7] ss:$0 sm:$0xff] }
  0x96   : > { %1335 = vmatpush3.bf16.msra.mxu0 %v1549_v3  ;;  %1408 = vmatpush3.bf16.msra.mxu1 %v1549_v3 }
  0x97   : > { %1336 = vmatprep.subr.bf16.mxu0 %v1787_v0  ;;  %1401 = vmatprep.subr.bf16.mxu1 %v1787_v0 }
  0x9a   : > { %1337 = vmatpush3.bf16.msra.mxu0 %v1550_v4  ;;  %1409 = vmatpush3.bf16.msra.mxu1 %v1550_v4 }
  0x9b   : > { %1338 = vmatprep.subr.bf16.mxu0 %v1787_v0  ;;  %1402 = vmatprep.subr.bf16.mxu1 %v1787_v0 }
  0x9e   : > { %1339 = vmatpush3.bf16.msra.mxu0 %v1551_v5  ;;  %1410 = vmatpush3.bf16.msra.mxu1 %v1551_v5 }
  0x9f   : > { %1340 = vmatprep.subr.bf16.mxu0 %v1787_v0  ;;  %1403 = vmatprep.subr.bf16.mxu1 %v1787_v0 }
  0xa2   : > { %1341 = vmatpush3.bf16.msra.mxu0 %v1552_v6  ;;  %1411 = vmatpush3.bf16.msra.mxu1 %v1552_v6 }
  0xa3   : > { %1342 = vmatprep.subr.bf16.mxu0 %v1787_v0  ;;  %1404 = vmatprep.subr.bf16.mxu1 %v1787_v0 }
  0xa6   : > { %1343 = vmatpush3.bf16.msra.mxu0 %v1553_v7  ;;  %1412 = vmatpush3.bf16.msra.mxu1 %v1553_v7 }
  0xa7   : > { %1344 = vmatprep.subr.bf16.mxu0 %v1787_v0  ;;  %1405 = vmatprep.subr.bf16.mxu1 %v1787_v0 }
  0xaa   : > { %1345 = vmatpush3.bf16.msra.mxu0 %v1554_v8  ;;  %1413 = vmatpush3.bf16.msra.mxu1 %v1554_v8 }
  0xad   : > { %1347 = vmatmul.mubr.bf16.vlgmr.msra.gmra.mrb[0].mxu0 %v1555_v9  ;;  %1375 = vmatmul.mubr.bf16.vlgmr.msra.gmra.mrb[0].mxu1 %v1556_v10 }
  0xae   : > { %1350 = vmatprep.mubr.msk.bf16.mxu0 %vm1788_vm0, %v1787_v0  ;;  %1378 = vmatprep.mubr.msk.bf16.mxu1 %vm1788_vm0, %v1787_v0 }
  0xb5   : > { %1351 = vmatmul.mubr.bf16.gmra.mrb[4].mxu0 %v1557_v11  ;;  %1379 = vmatmul.mubr.bf16.gmra.mrb[4].mxu1 %v1558_v12 }
  0xb6   : > { %1354 = vmatprep.mubr.msk.bf16.mxu0 %vm1788_vm0, %v1787_v0  ;;  %1382 = vmatprep.mubr.msk.bf16.mxu1 %vm1788_vm0, %v1787_v0 }
  0xbd   : > { %1355 = vmatmul.mubr.bf16.gmra.mrb[8].mxu0 %v1559_v13  ;;  %1383 = vmatmul.mubr.bf16.gmra.mrb[8].mxu1 %v1560_v14 }
  0xbe   : > { %1358 = vmatprep.mubr.msk.bf16.mxu0 %vm1788_vm0, %v1787_v0  ;;  %1386 = vmatprep.mubr.msk.bf16.mxu1 %vm1788_vm0, %v1787_v0 }
  0xc5   : > { %1359 = vmatmul.mubr.bf16.gmra.mrb[12].mxu0 %v1561_v15  ;;  %1387 = vmatmul.mubr.bf16.gmra.mrb[12].mxu1 %v1562_v16 }
  0xc6   : > { %1362 = vmatprep.mubr.msk.bf16.mxu0 %vm1788_vm0, %v1787_v0  ;;  %1390 = vmatprep.mubr.msk.bf16.mxu1 %vm1788_vm0, %v1787_v0 }
  0xcd   : > { %1363 = vmatmul.mubr.bf16.gmra.mrb[16].mxu0 %v1563_v17  ;;  %1391 = vmatmul.mubr.bf16.gmra.mrb[16].mxu1 %v1564_v18 }
  0xce   : > { %1366 = vmatprep.mubr.msk.bf16.mxu0 %vm1788_vm0, %v1787_v0  ;;  %1394 = vmatprep.mubr.msk.bf16.mxu1 %vm1788_vm0, %v1787_v0 }
  0xd5   : > { %1367 = vmatmul.mubr.bf16.gmra.mrb[20].mxu0 %v1565_v19  ;;  %1395 = vmatmul.mubr.bf16.gmra.mrb[20].mxu1 %v1566_v20 }
  0xd6   : > { %1370 = vmatprep.mubr.msk.bf16.mxu0 %vm1788_vm0, %v1787_v0 }
  0xdd   : > { %1371 = vmatmul.mubr.bf16.gmra.mrb[24].mxu0 %v1567_v21 }
 0x180   : > { %v444_v23 = vpop.f32.mrb[0].mxu0  ;;  %v500_v24 = vpop.f32.mrb[0].mxu1 }
 0x181   : > { %v445_v25 = vadd.f32 %v2108_v22, %v444_v23  ;;  %v1348_v26 = vpop.f32.mrb[1].mxu0  ;;  %v501_v27 = vadd.f32 %v2108_v22, %v500_v24  ;;  %v1376_v28 = vpop.f32.mrb[1].mxu1 }
 0x182   : > { %v447_v29 = vpop.f32.mrb[2].mxu0  ;;  %v503_v30 = vpop.f32.mrb[2].mxu1 }
 0x183   : > { %v2112_v31 = vmax.f32 %v445_v25, 0.0  ;;  %v448_v32 = vadd.f32 %v2108_v22, %v447_v29  ;;  %v1349_v33 = vpop.f32.mrb[3].mxu0  ;;  %v2115_v34 = vmax.f32 %v501_v27, 0.0  ;;  %v504_v35 = vadd.f32 %v2108_v22, %v503_v30  ;;  %v1377_v36 = vpop.f32.mrb[3].mxu1 }
 0x185   : > { %v2118_v37 = vmax.f32 %v448_v32, 0.0  ;;  %v2120_v38 = vmax.f32 %v504_v35, 0.0 }
 0x188   : > { %v452_v39 = vpop.f32.mrb[4].mxu0  ;;  %v508_v40 = vpop.f32.mrb[4].mxu1 }
 0x189   : > { %v453_v41 = vadd.f32 %v2108_v22, %v452_v39  ;;  %v1352_v42 = vpop.f32.mrb[5].mxu0  ;;  %v509_v43 = vadd.f32 %v2108_v22, %v508_v40  ;;  %v1380_v44 = vpop.f32.mrb[5].mxu1 }
 0x18a   : > { %v455_v45 = vpop.f32.mrb[6].mxu0  ;;  %v511_v46 = vpop.f32.mrb[6].mxu1 }
 0x18b   : > { %v2124_v47 = vmax.f32 %v453_v41, 0.0  ;;  %v456_v48 = vadd.f32 %v2108_v22, %v455_v45  ;;  %v1353_v49 = vpop.f32.mrb[7].mxu0  ;;  %v2127_v50 = vmax.f32 %v509_v43, 0.0  ;;  %v512_v51 = vadd.f32 %v2108_v22, %v511_v46  ;;  %v1381_v52 = vpop.f32.mrb[7].mxu1 }
 0x18d   : > { %v2130_v53 = vmax.f32 %v456_v48, 0.0  ;;  %v2132_v54 = vmax.f32 %v512_v51, 0.0 }
 0x190   : > { %v460_v55 = vpop.f32.mrb[8].mxu0  ;;  %v516_v56 = vpop.f32.mrb[8].mxu1 }
 0x191   : > { %v461_v57 = vadd.f32 %v2108_v22, %v460_v55  ;;  %v1356_v58 = vpop.f32.mrb[9].mxu0  ;;  %v517_v59 = vadd.f32 %v2108_v22, %v516_v56  ;;  %v1384_v60 = vpop.f32.mrb[9].mxu1 }
 0x192   : > { %v463_v61 = vpop.f32.mrb[10].mxu0  ;;  %v519_v62 = vpop.f32.mrb[10].mxu1 }
 0x193   : > { %v2136_v63 = vmax.f32 %v461_v57, 0.0  ;;  %v464_v0 = vadd.f32 %v2108_v22, %v463_v61  ;;  %v1357_v1 = vpop.f32.mrb[11].mxu0  ;;  %v2139_v2 = vmax.f32 %v517_v59, 0.0  ;;  %v520_v3 = vadd.f32 %v2108_v22, %v519_v62  ;;  %v1385_v4 = vpop.f32.mrb[11].mxu1 }
 0x195   : > { %v2142_v5 = vmax.f32 %v464_v0, 0.0  ;;  %v2144_v6 = vmax.f32 %v520_v3, 0.0 }
 0x198   : > { %v468_v7 = vpop.f32.mrb[12].mxu0  ;;  %v524_v8 = vpop.f32.mrb[12].mxu1 }
 0x199   : > { %v469_v9 = vadd.f32 %v2108_v22, %v468_v7  ;;  %v1360_v10 = vpop.f32.mrb[13].mxu0  ;;  %v525_v11 = vadd.f32 %v2108_v22, %v524_v8  ;;  %v1388_v12 = vpop.f32.mrb[13].mxu1 }
 0x19a   : > { %v471_v13 = vpop.f32.mrb[14].mxu0  ;;  %v527_v14 = vpop.f32.mrb[14].mxu1  ;;  %v1145_v12 = vpack.c.bf16 (!%p1032_p4), %v2118_v37, %v2112_v31 }
 0x19b   : > { %v2148_v15 = vmax.f32 %v469_v9, 0.0  ;;  %v472_v16 = vadd.f32 %v2108_v22, %v471_v13  ;;  %v1361_v17 = vpop.f32.mrb[15].mxu0  ;;  %v2151_v18 = vmax.f32 %v525_v11, 0.0  ;;  %v528_v19 = vadd.f32 %v2108_v22, %v527_v14  ;;  %v1389_v20 = vpop.f32.mrb[15].mxu1 }
 0x19c   : > { %v1150_v13 = vpack.c.bf16 (!%p1032_p4), %v2130_v53, %v2124_v47  ;;  %v1180_v20 = vpack.c.bf16 (!%p1032_p4), %v2120_v38, %v2115_v34  ;;  %1146 = vst [vmem:[%s2189_s25] sm:$0xff] (!%p1032_p4), %v1145_v12  }
 0x19d   : > { %v2154_v21 = vmax.f32 %v472_v16, 0.0  ;;  %v2156_v23 = vmax.f32 %v528_v19, 0.0 }
 0x19e   : > { %1272 = vst [vmem:[%s2189_s25 + $0x8] sm:$0xff] (!%p1032_p4), %v1150_v13   ;;  %1278 = vst [vmem:[%s2189_s25 + $0x38] sm:$0xff] (!%p1032_p4), %v1180_v20  }
 0x19f   : > { %v1160_v14 = vpack.c.bf16 (!%p1032_p4), %v2154_v21, %v2148_v15 }
 0x1a0   : > { %v476_v24 = vpop.f32.mrb[16].mxu0  ;;  %v532_v25 = vpop.f32.mrb[16].mxu1 }
 0x1a1   : > { %v477_v26 = vadd.f32 %v2108_v22, %v476_v24  ;;  %v1364_v27 = vpop.f32.mrb[17].mxu0  ;;  %v533_v28 = vadd.f32 %v2108_v22, %v532_v25  ;;  %v1392_v29 = vpop.f32.mrb[17].mxu1  ;;  %1274 = vst [vmem:[%s2189_s25 + $0x18] sm:$0xff] (!%p1032_p4), %v1160_v14   ;;  %v1185_v24 = vpack.c.bf16 (!%p1032_p4), %v2132_v54, %v2127_v50  ;;  %v1190_v25 = vpack.c.bf16 (!%p1032_p4), %v2144_v6, %v2139_v2 }
 0x1a2   : > { %v479_v30 = vpop.f32.mrb[18].mxu0  ;;  %v535_v32 = vpop.f32.mrb[18].mxu1 }
 0x1a3   : > { %v2160_v33 = vmax.f32 %v477_v26, 0.0  ;;  %v480_v35 = vadd.f32 %v2108_v22, %v479_v30  ;;  %v1365_v36 = vpop.f32.mrb[19].mxu0  ;;  %v2163_v39 = vmax.f32 %v533_v28, 0.0  ;;  %v536_v40 = vadd.f32 %v2108_v22, %v535_v32  ;;  %v1393_v41 = vpop.f32.mrb[19].mxu1  ;;  %1279 = vst [vmem:[%s2189_s25 + $0x40] sm:$0xff] (!%p1032_p4), %v1185_v24   ;;  %1280 = vst [vmem:[%s2189_s25 + $0x48] sm:$0xff] (!%p1032_p4), %v1190_v25  }
 0x1a4   : > { %v1195_v26 = vpack.c.bf16 (!%p1032_p4), %v2156_v23, %v2151_v18 }
 0x1a5   : > { %v2166_v42 = vmax.f32 %v480_v35, 0.0  ;;  %v2168_v43 = vmax.f32 %v536_v40, 0.0 }
 0x1a6   : > { %1281 = vst [vmem:[%s2189_s25 + $0x50] sm:$0xff] (!%p1032_p4), %v1195_v26  }
 0x1a7   : > { %v1165_v16 = vpack.c.bf16 (!%p1032_p4), %v2166_v42, %v2160_v33  ;;  %v1200_v27 = vpack.c.bf16 (!%p1032_p4), %v2168_v43, %v2163_v39 }
 0x1a8   : > { %v484_v44 = vpop.f32.mrb[20].mxu0  ;;  %v540_v45 = vpop.f32.mrb[20].mxu1 }
 0x1a9   : > { %v485_v46 = vadd.f32 %v2108_v22, %v484_v44  ;;  %v1368_v48 = vpop.f32.mrb[21].mxu0  ;;  %v541_v49 = vadd.f32 %v2108_v22, %v540_v45  ;;  %v1396_v51 = vpop.f32.mrb[21].mxu1  ;;  %1275 = vst [vmem:[%s2189_s25 + $0x20] sm:$0xff] (!%p1032_p4), %v1165_v16   ;;  %1282 = vst [vmem:[%s2189_s25 + $0x58] sm:$0xff] (!%p1032_p4), %v1200_v27  }
 0x1aa   : > { %v487_v52 = vpop.f32.mrb[22].mxu0  ;;  %v543_v55 = vpop.f32.mrb[22].mxu1 }
 0x1ab   : > { %v2172_v56 = vmax.f32 %v485_v46, 0.0  ;;  %v488_v57 = vadd.f32 %v2108_v22, %v487_v52  ;;  %v1369_v58 = vpop.f32.mrb[23].mxu0  ;;  %v2175_v59 = vmax.f32 %v541_v49, 0.0  ;;  %v544_v60 = vadd.f32 %v2108_v22, %v543_v55  ;;  %v1397_v61 = vpop.f32.mrb[23].mxu1 }
 0x1ad   : > { %v2178_v62 = vmax.f32 %v488_v57, 0.0  ;;  %v2180_v0 = vmax.f32 %v544_v60, 0.0 }
 0x1af   : > { %589 = sbr.rel (%p1032_p4) target bundleno = 442 (0x1ba), region = 48  ;;  %v1170_v17 = vpack.c.bf16 (!%p1032_p4), %v2178_v62, %v2172_v56  ;;  %v1205_v28 = vpack.c.bf16 (!%p1032_p4), %v2180_v0, %v2175_v59 }
 0x1b0   : > { %v492_v1 = vpop.f32.mrb[24].mxu0 }
 0x1b1   : > { %v493_v3 = vadd.f32 %v2108_v22, %v492_v1  ;;  %v1372_v4 = vpop.f32.mrb[25].mxu0  ;;  %1276 = vst [vmem:[%s2189_s25 + $0x28] sm:$0xff] (!%p1032_p4), %v1170_v17   ;;  %1283 = vst [vmem:[%s2189_s25 + $0x60] sm:$0xff] (!%p1032_p4), %v1205_v28  }
 0x1b2   : > { %v495_v7 = vpop.f32.mrb[26].mxu0 }
 0x1b3   : > { %v2183_v8 = vmax.f32 %v493_v3, 0.0  ;;  %v496_v9 = vadd.f32 %v2108_v22, %v495_v7  ;;  %v1373_v10 = vpop.f32.mrb[27].mxu0  ;;  %v1155_v22 = vpack.c.bf16 (!%p1032_p4), %v2142_v5, %v2136_v63 }
 0x1b5   : > { %v2186_v11 = vmax.f32 %v496_v9, 0.0  ;;  %1273 = vst [vmem:[%s2189_s25 + $0x10] sm:$0xff] (!%p1032_p4), %v1155_v22  }
 0x1b7   : > { %v1175_v19 = vpack.c.bf16 %v2186_v11, %v2183_v8 }
 0x1b9   : > { %1277 = vst [vmem:[%s2189_s25 + $0x30] sm:$0xff] %v1175_v19  }
 0x1ba PF: > { %s2438_s11 = sld [smem:[#allocation13_spill]] }
 0x1c0   : > { %p1059_p3 = scmp.le.s32.totalorder %s2438_s11, 0 }
 0x1c1   : > { %v711_v29 = vld [vmem:[%s2189_s25] sm:$0xf] (!%p1059_p3)  ;;  %v712_v30 = vld [vmem:[%s2189_s25 + $0x4] sm:$0xf] (!%p1059_p3)  ;;  %v1115_v32 = vpack.c.bf16 (!%p1059_p3), %v2112_v31, %v2112_v31  ;;  %v1116_v35 = vpack.c.bf16 (!%p1059_p3), %v2118_v37, %v2118_v37  ;;  %v713_v36 = vld [vmem:[%s2189_s25 + $0x8] sm:$0xf] (!%p1059_p3)  ;;  %v1117_v40 = vpack.c.bf16 (!%p1059_p3), %v2124_v47, %v2124_v47  ;;  %v1118_v41 = vpack.c.bf16 (!%p1059_p3), %v2130_v53, %v2130_v53 }
 0x1c2   : > { %710 = sbr.rel (%p1059_p3) target bundleno = 470 (0x1d6), region = 52  ;;  %v714_v44 = vld [vmem:[%s2189_s25 + $0xc] sm:$0xf] (!%p1059_p3)  ;;  %v715_v45 = vld [vmem:[%s2189_s25 + $0x10] sm:$0xf] (!%p1059_p3)  ;;  %v1119_v31 = vpack.c.bf16 (!%p1059_p3), %v2136_v63, %v2136_v63  ;;  %v1120_v48 = vpack.c.bf16 (!%p1059_p3), %v2142_v5, %v2142_v5  ;;  %v1121_v37 = vpack.c.bf16 (!%p1059_p3), %v2148_v15, %v2148_v15  ;;  %v1122_v47 = vpack.c.bf16 (!%p1059_p3), %v2154_v21, %v2154_v21 }
 0x1c3   : > { %v716_v46 = vld [vmem:[%s2189_s25 + $0x14] sm:$0xf] (!%p1059_p3)  ;;  %v828_v49 = vmax.bf16 (!%p1059_p3), %v1115_v32, %v711_v29  ;;  %v829_v53 = vmax.bf16 (!%p1059_p3), %v1116_v35, %v712_v30  ;;  %v830_v51 = vmax.bf16 (!%p1059_p3), %v1117_v40, %v713_v36  ;;  %v831_v52 = vmax.bf16 (!%p1059_p3), %v1118_v41, %v714_v44  ;;  %v717_v55 = vld [vmem:[%s2189_s25 + $0x18] sm:$0xf] (!%p1059_p3)  ;;  %v718_v57 = vld [vmem:[%s2189_s25 + $0x1c] sm:$0xf] (!%p1059_p3) }
 0x1c4   : > { %v832_v58 = vmax.bf16 (!%p1059_p3), %v1119_v31, %v715_v45  ;;  %v833_v63 = vmax.bf16 (!%p1059_p3), %v1120_v48, %v716_v46  ;;  %v834_v60 = vmax.bf16 (!%p1059_p3), %v1121_v37, %v717_v55  ;;  %v835_v5 = vmax.bf16 (!%p1059_p3), %v1122_v47, %v718_v57  ;;  %v719_v15 = vld [vmem:[%s2189_s25 + $0x20] sm:$0xf] (!%p1059_p3)  ;;  %v720_v61 = vld [vmem:[%s2189_s25 + $0x24] sm:$0xf] (!%p1059_p3)  ;;  %v721_v7 = vld [vmem:[%s2189_s25 + $0x28] sm:$0xf] (!%p1059_p3) }
 0x1c5   : > { %v1284_v1 = vcombine.low (!%p1059_p3), %v828_v49, %v829_v53  ;;  %v1285_v21 = vcombine.low (!%p1059_p3), %v830_v51, %v831_v52  ;;  %v1123_v3 = vpack.c.bf16 (!%p1059_p3), %v2160_v33, %v2160_v33  ;;  %v1124_v4 = vpack.c.bf16 (!%p1059_p3), %v2166_v42, %v2166_v42  ;;  %v722_v9 = vld [vmem:[%s2189_s25 + $0x2c] sm:$0xf] (!%p1059_p3)  ;;  %v723_v14 = vld [vmem:[%s2189_s25 + $0x30] sm:$0xf] (!%p1059_p3)  ;;  %v724_v33 = vld [vmem:[%s2189_s25 + $0x34] sm:$0xf] (!%p1059_p3) }
 0x1c6   : > { %v1287_v10 = vcombine.low (!%p1059_p3), %v832_v58, %v833_v63  ;;  %v1289_v12 = vcombine.low (!%p1059_p3), %v834_v60, %v835_v5  ;;  %v1125_v13 = vpack.c.bf16 (!%p1059_p3), %v2172_v56, %v2172_v56  ;;  %v1126_v22 = vpack.c.bf16 (!%p1059_p3), %v2178_v62, %v2178_v62  ;;  %v725_v20 = vld [vmem:[%s2189_s25 + $0x38] sm:$0xf] (!%p1059_p3)  ;;  %v726_v24 = vld [vmem:[%s2189_s25 + $0x3c] sm:$0xf] (!%p1059_p3)  ;;  %v727_v27 = vld [vmem:[%s2189_s25 + $0x40] sm:$0xf] (!%p1059_p3) }
 0x1c7   : > { %1211 = vst [vmem:[%s2189_s25] sm:$0xff] (!%p1059_p3), %v1284_v1   ;;  %1286 = vst [vmem:[%s2189_s25 + $0x8] sm:$0xff] (!%p1059_p3), %v1285_v21   ;;  %v836_v16 = vmax.bf16 (!%p1059_p3), %v1123_v3, %v719_v15  ;;  %v837_v42 = vmax.bf16 (!%p1059_p3), %v1124_v4, %v720_v61  ;;  %v1127_v17 = vpack.c.bf16 (!%p1059_p3), %v2183_v8, %v2183_v8  ;;  %v728_v29 = vld [vmem:[%s2189_s25 + $0x44] sm:$0xf] (!%p1059_p3)  ;;  %v730_v40 = vld [vmem:[%s2189_s25 + $0x4c] sm:$0xf] (!%p1059_p3) }
 0x1c8   : > { %v1128_v19 = vpack.c.bf16 (!%p1059_p3), %v2186_v11, %v2186_v11  ;;  %1288 = vst [vmem:[%s2189_s25 + $0x10] sm:$0xff] (!%p1059_p3), %v1287_v10   ;;  %1290 = vst [vmem:[%s2189_s25 + $0x18] sm:$0xff] (!%p1059_p3), %v1289_v12   ;;  %v838_v56 = vmax.bf16 (!%p1059_p3), %v1125_v13, %v721_v7  ;;  %v839_v62 = vmax.bf16 (!%p1059_p3), %v1126_v22, %v722_v9  ;;  %v731_v46 = vld [vmem:[%s2189_s25 + $0x50] sm:$0xf] (!%p1059_p3)  ;;  %v732_v31 = vld [vmem:[%s2189_s25 + $0x54] sm:$0xf] (!%p1059_p3) }
 0x1c9   : > { %v1129_v25 = vpack.c.bf16 %v2115_v34, %v2115_v34  ;;  %v1130_v26 = vpack.c.bf16 %v2120_v38, %v2120_v38  ;;  %v1291_v8 = vcombine.low %v836_v16, %v837_v42  ;;  %v840_v28 = vmax.bf16 %v1127_v17, %v723_v14  ;;  %v729_v38 = vld [vmem:[%s2189_s25 + $0x48] sm:$0xf]  ;;  %v733_v49 = vld [vmem:[%s2189_s25 + $0x58] sm:$0xf]  ;;  %v734_v53 = vld [vmem:[%s2189_s25 + $0x5c] sm:$0xf] }
 0x1ca   : > { %v841_v11 = vmax.bf16 %v1128_v19, %v724_v33  ;;  %v1131_v30 = vpack.c.bf16 %v2127_v50, %v2127_v50  ;;  %v1293_v32 = vcombine.low %v838_v56, %v839_v62  ;;  %v1132_v34 = vpack.c.bf16 %v2132_v54, %v2132_v54  ;;  %v735_v55 = vld [vmem:[%s2189_s25 + $0x60] sm:$0xf]  ;;  %v736_v58 = vld [vmem:[%s2189_s25 + $0x64] sm:$0xf] }
 0x1cb   : > { %v842_v35 = vmax.bf16 %v1129_v25, %v725_v20  ;;  %v843_v36 = vmax.bf16 %v1130_v26, %v726_v24  ;;  %1292 = vst [vmem:[%s2189_s25 + $0x20] sm:$0xff] %v1291_v8   ;;  %v1133_v45 = vpack.c.bf16 %v2139_v2, %v2139_v2  ;;  %v1134_v50 = vpack.c.bf16 %v2144_v6, %v2144_v6 }
 0x1cc   : > { %v1295_v41 = vcombine.low %v840_v28, %v841_v11  ;;  %v844_v44 = vmax.bf16 %v1131_v30, %v727_v27  ;;  %1294 = vst [vmem:[%s2189_s25 + $0x28] sm:$0xff] %v1293_v32   ;;  %v845_v54 = vmax.bf16 %v1132_v34, %v728_v29  ;;  %v1135_v37 = vpack.c.bf16 %v2151_v18, %v2151_v18 }
 0x1cd   : > { %v1297_v48 = vcombine.low %v842_v35, %v843_v36  ;;  %v1136_v47 = vpack.c.bf16 %v2156_v23, %v2156_v23  ;;  %v846_v2 = vmax.bf16 %v1133_v45, %v729_v38  ;;  %v847_v51 = vmax.bf16 %v1134_v50, %v730_v40 }
 0x1ce   : > { %1296 = vst [vmem:[%s2189_s25 + $0x30] sm:$0xff] %v1295_v41   ;;  %v1137_v6 = vpack.c.bf16 %v2163_v39, %v2163_v39  ;;  %v1138_v52 = vpack.c.bf16 %v2168_v43, %v2168_v43  ;;  %v1299_v18 = vcombine.low %v844_v44, %v845_v54  ;;  %v848_v57 = vmax.bf16 %v1135_v37, %v731_v46 }
 0x1cf   : > { %1298 = vst [vmem:[%s2189_s25 + $0x38] sm:$0xff] %v1297_v48   ;;  %v849_v23 = vmax.bf16 %v1136_v47, %v732_v31  ;;  %v1139_v63 = vpack.c.bf16 %v2175_v59, %v2175_v59  ;;  %v1301_v60 = vcombine.low %v846_v2, %v847_v51  ;;  %v1140_v39 = vpack.c.bf16 %v2180_v0, %v2180_v0 }
 0x1d0   : > { %v850_v5 = vmax.bf16 %v1137_v6, %v733_v49  ;;  %v851_v15 = vmax.bf16 %v1138_v52, %v734_v53  ;;  %1300 = vst [vmem:[%s2189_s25 + $0x40] sm:$0xff] %v1299_v18  }
 0x1d1   : > { %v1303_v43 = vcombine.low %v848_v57, %v849_v23  ;;  %v852_v61 = vmax.bf16 %v1139_v63, %v735_v55  ;;  %1302 = vst [vmem:[%s2189_s25 + $0x48] sm:$0xff] %v1301_v60   ;;  %v853_v21 = vmax.bf16 %v1140_v39, %v736_v58 }
 0x1d2   : > { %v1305_v1 = vcombine.low %v850_v5, %v851_v15 }
 0x1d3   : > { %1304 = vst [vmem:[%s2189_s25 + $0x50] sm:$0xff] %v1303_v43   ;;  %v1307_v3 = vcombine.low %v852_v61, %v853_v21 }
 0x1d4   : > { %1306 = vst [vmem:[%s2189_s25 + $0x58] sm:$0xff] %v1305_v1  }
 0x1d5   : > { %1308 = vst [vmem:[%s2189_s25 + $0x60] sm:$0xff] %v1307_v3  }
 0x1d6 PF: > { %s2439_s6 = sld [smem:[#allocation14_spill]]  ;;  %s2440_s1 = sld [smem:[#allocation15_spill]] }
 0x1d7   : > { %s894_s23 = sshll.u32 %s2189_s25, 4  ;;  %s2441_s4 = sld [smem:[#allocation20_spill]]  ;;  %s2330_s23 = int_to_ptr.vmem [resolvable:$true] %s894_s23 }
 0x1d8   : > { %s2334_s5 = scalar_lea.sflag [#allocation4], %s229_s18  ;;  %s1654_s26 = scalar_lea.vmem %s2330_s23, 1664 }
 0x1d9   : > { %p1655_p7 = scmp.ne.s32.totalorder %s2330_s23, %s1654_s26  ;;  %s1789_s12 = smov [#allocation8]  }
 0x1da   : > { %s1658_s29 = sshll.u32 %s1789_s12, 4  ;;  %s1659_s29 = int_to_ptr.vmem [resolvable:$false] %s1658_s29 }
 0x1db   : > { %s1660_s2 = scalar_lea.vmem %s1659_s29, 3328  ;;  %p1661_p0 = scmp.lt.s32.totalorder %s2330_s23, %s1659_s29 }
 0x1dc   : > { %s1141_s28 = smul.u32 1664, %s2439_s6  ;;  %p2442_p13 = scmp.ne.s32.totalorder %s2440_s1, 0 }
 0x1dd   : > { %p1662_p5 = scmp.lt.s32.totalorder %s1660_s2, %s1654_s26 }
 0x1de   : > { %s2328_s7 = scalar_lea.hbm %s2441_s4, %s1141_s28  ;;  %p1656_p9 = pnand %p1655_p7, %p2442_p13 }
 0x1df   : > { %p1663_p8 = por %p1662_p5, %p1661_p0 }
 0x1e0   : > { %p1657_p11 = pneg %p1656_p9 }
 0x1e2   : > { %p1664_p12 = pnand %p1663_p8, %p1657_p11 }
 0x1e4   : > { %1667 = shalt.err (!%p1664_p12)
}
 0x1e5   : > { %s1668_s3 = scalar_lea.hbm %s2328_s7, 1664  ;;  %s1672_s30 = scalar_lea.hbm %s2441_s4, 3328 }
 0x1e6   : > { %p1669_p2 = scmp.ne.s32.totalorder %s2328_s7, %s1668_s3  ;;  %p1673_p1 = scmp.lt.u32.totalorder %s2328_s7, %s2441_s4 }
 0x1e7   : > { %p1674_p4 = scmp.lt.u32.totalorder %s1672_s30, %s1668_s3  ;;  %p1676_p7 = scmp.lt.u32.totalorder %s1668_s3, %s2328_s7 }
 0x1e8   : > { %p1670_p6 = pnand %p1669_p2, %p2442_p13 }
 0x1e9   : > { %p1675_p3 = por %p1674_p4, %p1673_p1 }
 0x1ea   : > { %p1671_p10 = pneg %p1670_p6 }
 0x1eb   : > { %p1677_p9 = por %p1676_p7, %p1675_p3 }
 0x1ed   : > { %p1678_p11 = pnand %p1677_p9, %p1671_p10 }
 0x1ef   : > { %1681 = shalt.err (!%p1678_p11)
}
 0x1f0   : > { %s1790_s11 = smov 64   ;;  %s1791_s6 = smov 4  }
 0x1f1   : > { %1428 = dma.vmem_to_hbm [thread:$0]  (%p2442_p13), %s2330_s23, 1664, %s2328_s7, %s2334_s5, %s1790_s11, %s1790_s11, %s1791_s6  }
 0x1f2 PF: > { %s2443_s28 = sld [smem:[#allocation12_spill]]  ;;  %s2444_s24 = sld [smem:[#allocation16_spill]] }
 0x1f3   : > { %p1450_p0 = scmp.ge.s32.totalorder %s1780_s22, 2 }
 0x1f8   : > { %s909_s8 = sand.u32 1, %s2443_s28   ;;  %p2445_p5 = scmp.ne.s32.totalorder %s2444_s24, 0 }
 0x1f9   : > { %s910_s26 = scalar_lea.sflag [#allocation4], %s909_s8 }
 0x1fa   : > { %p1442_p8 = pnand %p1450_p0, %p2445_p5 }
 0x1fc   : > { %1735 = dma.done.wait (!%p1442_p8), %s910_s26, 1664  }
 0x1fd   : > { %1737 = vsyncadd (!%p1442_p8), %s910_s26, 4294965632  ;;  %s20_s22 = sadd.s32 1, %s1780_s22   ;;  %s2446_s1 = sld [smem:[#allocation17_spill]] }
 0x1fe   : > { %p17_p12 = scmp.ge.s32.totalorder %s20_s22, 10   ;;  %s2447_s23 = smov %s2463_s15 }
 0x1ff   : > { %s2448_s12 = smov %s1744_s13  ;;  %s2449_s13 = smov %s1748_s14 }
 0x200   : > { %s2450_s14 = smov %s1984_s9  ;;  %s2451_s15 = smov %s1756_s16 }
 0x201   : > { %s2452_s16 = smov %s1760_s17  ;;  %s2453_s17 = smov %s1987_s10 }
 0x202   : > { %s2454_s18 = smov %s1772_s20  ;;  %s2455_s19 = smov %s1776_s21 }
 0x203   : > { %s2456_s20 = smov %s2446_s1  ;;  %s2457_s21 = smov %s2447_s23 }
 0x204   :  { %19 = sbr.rel (!%p17_p12) target bundleno = 14 (0xe), region = 93 }
 0x20b   :  { %915 = vsyncpa [#allocation3], 1 }
 0x20c   :  { %917 = vsyncpa [#allocation3 + $0x1], 1 }
 0x20d   :  { %918 = vsyncpa [#allocation6], 1 }
 0x20e   :  { %919 = vsyncpa [#allocation4], 1 }
 0x20f   :  { %921 = vsyncpa [#allocation4 + $0x1], 1 }

// kernel: net3_forward.4
= control target key start
LH: loop header
LB: loop body
LE: loop exit
PB: predicated region body
PF: predicated region fallthrough
CT: control target
= control target key end

     0   :  { %s1801_s0 = inlined_call_operand.hbm [shape: bf16[4,128,288], index: 0, kind: input, shape index: {}]   ;;  %s1802_s1 = inlined_call_operand.hbm [shape: bf16[288,128], index: 1, kind: input, shape index: {}]   ;;  %s1803_s2 = inlined_call_operand.hbm [shape: f32[1,128], index: 2, kind: input, shape index: {}]   ;;  %s1804_s3 = inlined_call_operand.hbm [shape: bf16[128,128], index: 3, kind: output, shape index: {}]  }
   0x1   :  { %1816 = sst [smem:[#allocation18_spill]] %s1802_s1 }
   0x2   :  { %1817 = sst [smem:[#allocation19_spill]] %s1803_s2 }
   0x3   :  { %1818 = sst [smem:[#allocation20_spill]] %s1804_s3 }
   0x4   :  { %8 = vsyncpa [#allocation3], 0 }
   0x5   :  { %10 = vsyncpa [#allocation3 + $0x1], 0 }
   0x6   :  { %11 = vsyncpa [#allocation6], 0 }
   0x7   :  { %12 = vsyncpa [#allocation4], 0 }
   0x8   :  { %14 = vsyncpa [#allocation4 + $0x1], 0  ;;  %s1457_s12 = smov 0   ;;  %s1459_s13 = smov 0  }
   0x9   :  { %s1461_s14 = smov 0   ;;  %s1463_s15 = smov 0  }
   0xa   :  { %s1465_s16 = smov 0   ;;  %s1467_s17 = smov 0  }
   0xb   :  { %s1469_s18 = smov 0   ;;  %s1471_s19 = smov 0  }
   0xc   :  { %s1473_s20 = smov 0   ;;  %s1475_s21 = smov 0  }
   0xd   :  { %s1477_s22 = smov 0  }
   0xe LB: > { %1819 = sst [smem:[#allocation12_spill]] %s1385_s12  ;;  %s834_s23 = sadd.s32 4294967295, %s1425_s22   ;;  %s1425_s22 = sphi %s1477_s22, %s20_s22   ;;  %s1421_s21 = sphi %s1475_s21, %s1859_s21   ;;  %s1417_s20 = sphi %s1473_s20, %s1858_s20   ;;  %s1413_s19 = sphi %s1471_s19, %s1857_s19   ;;  %s1409_s18 = sphi %s1469_s18, %s1856_s18   ;;  %s1405_s17 = sphi %s1467_s17, %s1855_s17   ;;  %s1401_s16 = sphi %s1465_s16, %s1854_s16   ;;  %s1397_s15 = sphi %s1463_s15, %s1853_s15   ;;  %s1393_s14 = sphi %s1461_s14, %s1852_s14   ;;  %s1389_s13 = sphi %s1459_s13, %s1851_s13   ;;  %s1385_s12 = sphi %s1457_s12, %s1850_s12  }
   0xf   : > { %1820 = sst [smem:[#allocation13_spill]] %s1409_s18  ;;  %s835_s24 = sadd.s32 4294967294, %s1425_s22  }
  0x10   : > { %1821 = sst [smem:[#allocation14_spill]] %s1413_s19  ;;  %p54_p0 = scmp.ne.s32.totalorder %s1401_s16, %s1397_s15 }
  0x11   : > { %p1513_p1 = scmp.eq.s32.totalorder %s834_s23, 0  ;;  %p119_p2 = scmp.ne.s32.totalorder %s1393_s14, %s1389_s13 }
  0x12   : > { %p120_p4 = scmp.eq.s32.totalorder %s834_s23, 7  ;;  %p125_p5 = scmp.ne.s32.totalorder %s1389_s13, %s1385_s12 }
  0x13   : > { %s1822_s25 = scalar_select %p1513_p1, 1, 0 }
  0x14   : > { %p1522_p3 = por %p1513_p1, %p54_p0  ;;  %p126_p6 = scmp.eq.s32.totalorder %s835_s24, 7 }
  0x15   : > { %p1528_p7 = por %p120_p4, %p119_p2  ;;  %p836_p8 = scmp.ge.s32.totalorder %s1425_s22, 1 }
  0x16   : > { %s1823_s27 = scalar_select %p1522_p3, 1, 0 }
  0x17   : > { %s1824_s28 = scalar_select %p1528_p7, 1, 0 }
  0x18   : > { %p1533_p9 = por %p126_p6, %p125_p5  ;;  %p133_p10 = scmp.lt.s32.totalorder %s1425_s22, 9 }
  0x19   : > { %1825 = sst [smem:[#allocation15_spill]] %s1824_s28  ;;  %s1427_s4 = smov [#allocation5]  }
  0x1a   : > { %s1826_s29 = scalar_select %p1533_p9, 1, 0 }
  0x1b   : > { %p1538_p11 = pnand %p836_p8, %p133_p10  ;;  %s145_s5 = sshll.u32 %s1427_s4, 4  ;;  %s146_s5 = int_to_ptr.vmem [resolvable:$true] %s145_s5 }
  0x1c   : > { %1827 = sst [smem:[#allocation16_spill]] %s1826_s29  ;;  %s1428_s7 = smov [#allocation7]  }
  0x1d   : > { %s1828_s30 = scalar_select %p1538_p11, 1, 0 }
  0x1e   : > { %p1062_p12 = pneg %p1538_p11  ;;  %s159_s8 = sshll.u32 %s1428_s7, 4  ;;  %s1550_s8 = int_to_ptr.vmem [resolvable:$true] %s159_s8 }
  0x1f   : > { %s1830_s1 = sld [smem:[#allocation18_spill]] }
  0x20   : > { %p1546_p13 = pnand %p1062_p12, %p1513_p1 }
  0x22   : > { %p1215_p2 = pneg %p1546_p13 }
  0x25   : > { %s1213_s11 = scalar_lea.hbm %s1830_s1, 2304 }
  0x26   : > { %p1214_p0 = scmp.ne.s32.totalorder %s1830_s1, %s1213_s11  ;;  %p1220_p6 = scmp.lt.u32.totalorder %s1213_s11, %s1830_s1 }
  0x28   : > { %p1216_p4 = pnand %p1215_p2, %p1214_p0 }
  0x2a   : > { %p1217_p5 = pneg %p1216_p4 }
  0x2c   : > { %p1222_p8 = pnand %p1220_p6, %p1217_p5 }
  0x2e   : > { %1225 = shalt.err (!%p1222_p8)
}
  0x2f   : > { %s1226_s7 = scalar_lea.vmem %s146_s5, 2304  ;;  %p1234_p7 = scmp.lt.s32.totalorder %s146_s5, %s146_s5 }
  0x30   : > { %p1227_p10 = scmp.ne.s32.totalorder %s146_s5, %s1226_s7  ;;  %p1235_p1 = scmp.lt.s32.totalorder %s1226_s7, %s1226_s7 }
  0x32   : > { %p1229_p12 = pnand %p1227_p10, %p1215_p2  ;;  %p1236_p3 = por %p1235_p1, %p1234_p7 }
  0x34   : > { %p1230_p9 = pneg %p1229_p12 }
  0x36   : > { %p1237_p11 = pnand %p1236_p3, %p1230_p9 }
  0x38   : > { %1240 = shalt.err (!%p1237_p11)
}
  0x39   : > { %s1429_s9 = smov 64   ;;  %s1430_s10 = smov 4  }
  0x3a   : > { %1065 = dma.hbm_to_vmem [thread:$0]  (!%p1546_p13), %s1830_s1, 2304, %s146_s5, [#allocation6], %s1429_s9, %s1429_s9, %s1430_s10  }
  0x3b   : > { %s1831_s2 = sld [smem:[#allocation19_spill]] }
  0x41   : > { %s1241_s4 = scalar_lea.hbm %s1831_s2, 16 }
  0x42   : > { %p1242_p0 = scmp.ne.s32.totalorder %s1831_s2, %s1241_s4  ;;  %p1248_p7 = scmp.lt.u32.totalorder %s1241_s4, %s1831_s2 }
  0x44   : > { %p1244_p1 = pnand %p1242_p0, %p1215_p2 }
  0x46   : > { %p1245_p3 = pneg %p1244_p1 }
  0x48   : > { %p1250_p9 = pnand %p1248_p7, %p1245_p3 }
  0x4a   : > { %1253 = shalt.err (!%p1250_p9)
}
  0x4b   : > { %s1254_s5 = scalar_lea.vmem %s1550_s8, 16  ;;  %s1261_s26 = scalar_lea.vmem %s1550_s8, 32 }
  0x4c   : > { %p1255_p11 = scmp.ne.s32.totalorder %s1550_s8, %s1254_s5  ;;  %p1262_p6 = scmp.lt.s32.totalorder %s1550_s8, %s1550_s8 }
  0x4d   : > { %p1263_p8 = scmp.lt.s32.totalorder %s1261_s26, %s1254_s5 }
  0x4e   : > { %p1257_p4 = pnand %p1255_p11, %p1215_p2 }
  0x4f   : > { %p1264_p10 = por %p1263_p8, %p1262_p6 }
  0x50   : > { %p1258_p5 = pneg %p1257_p4 }
  0x52   : > { %p1265_p12 = pnand %p1264_p10, %p1258_p5 }
  0x54   : > { %1268 = shalt.err (!%p1265_p12)
}
  0x55   : > { %1068 = dma.hbm_to_vmem [thread:$0]  (!%p1546_p13), %s1831_s2, 16, %s1550_s8, [#allocation6]  }
  0x56   : > { %s29_s9 = sadd.s32 1, %s1417_s20  ;;  %s32_s10 = sadd.s32 1, %s1421_s21 }
  0x57   : > { %p30_p2 = scmp.ge.s32.totalorder %s29_s9, 4  ;;  %s41_s6 = sadd.s32 1, %s1405_s17 }
  0x58   : > { %p48_p0 = scmp.ne.s32.totalorder %s1405_s17, %s1401_s16  ;;  %p49_p1 = scmp.eq.s32.totalorder %s1425_s22, 0 }
  0x59   : > { %s1861_s9 = smov (%p30_p2, %s29_s9), 0  ;;  %s1863_s10 = smov (!%p30_p2, %s32_s10), %s1421_s21 }
  0x5a   : > { %1832 = sst [smem:[#allocation17_spill]] %s1861_s9  ;;  %s36_s11 = ssub.s32 %s1417_s20, %s1861_s9 }
  0x5b   : > { %p1611_p3 = por %p49_p1, %p48_p0  ;;  %p34_p13 = scmp.ge.s32.totalorder %s1863_s10, 2 }
  0x5c   : > { %p1079_p7 = scmp.lt.s32.totalorder %s1425_s22, 8  ;;  %s170_s8 = sand.u32 1, %s1405_s17  }
  0x5d   : > { %s1047_s23 = smul.u32 24, %s1421_s21  ;;  %s1865_s10 = smov (%p34_p13, %s1863_s10), 0 }
  0x5e   : > { %s1046_s24 = smul.u32 96, %s170_s8  ;;  %s37_s4 = ssub.s32 %s1421_s21, %s1865_s10 }
  0x5f   : > { %s1048_s7 = smul.u32 48, %s1417_s20  ;;  %s38_s5 = sor.u32 %s37_s4, %s36_s11 }
  0x60   : > { %p107_p9 = scmp.eq.s32.totalorder %s37_s4, 0  ;;  %p39_p11 = scmp.eq.s32.totalorder %s38_s5, 0 }
  0x61   : > { %s1834_s26 = sadd.s32 1, %s1393_s14  ;;  %s181_s1 = sadd.s32 %s1048_s7, %s1047_s23 }
  0x62   : > { %s1626_s12 = scalar_select %p107_p9, %s1393_s14, %s1834_s26  }
  0x63   : > { %s1629_s29 = scalar_select %p39_p11, %s1405_s17, %s41_s6  }
  0x64   : > { %s174_s2 = scalar_lea.vmem [#allocation2], %s1046_s24  ;;  %s842_s3 = sshll.u32 %s181_s1, 6 }
  0x65   : > { %s184_s9 = sshll.u32 %s174_s2, 4  ;;  %s1636_s18 = scalar_lea.hbm %s1801_s0, %s842_s3  ;;  %s1631_s9 = int_to_ptr.vmem [resolvable:$true] %s184_s9 }
  0x66   : > { %p1642_p4 = pnand %p1079_p7, %p1611_p3  ;;  %s1646_s1 = scalar_lea.sflag [#allocation3], %s170_s8 }
  0x67   : > { %s1269_s2 = scalar_lea.hbm %s1636_s18, 1536  ;;  %s1274_s28 = scalar_lea.hbm %s1801_s0, 12288 }
  0x68   : > { %p1270_p5 = scmp.ne.s32.totalorder %s1636_s18, %s1269_s2  ;;  %p1271_p6 = pneg %p1642_p4 }
  0x69   : > { %p1275_p12 = scmp.lt.u32.totalorder %s1636_s18, %s1801_s0  ;;  %p1276_p2 = scmp.lt.u32.totalorder %s1274_s28, %s1269_s2 }
  0x6a   : > { %p1272_p8 = pnand %p1271_p6, %p1270_p5  ;;  %p1278_p1 = scmp.lt.u32.totalorder %s1269_s2, %s1636_s18 }
  0x6b   : > { %p1277_p0 = por %p1276_p2, %p1275_p12 }
  0x6c   : > { %p1273_p10 = pneg %p1272_p8 }
  0x6d   : > { %p1279_p3 = por %p1278_p1, %p1277_p0 }
  0x6f   : > { %p1280_p13 = pnand %p1279_p3, %p1273_p10 }
  0x71   : > { %1283 = shalt.err (!%p1280_p13)
}
  0x72   : > { %s1284_s8 = scalar_lea.vmem %s1631_s9, 1536  ;;  %s1431_s23 = smov [#allocation2]  }
  0x73   : > { %p1285_p7 = scmp.ne.s32.totalorder %s1631_s9, %s1284_s8  ;;  %s1289_s24 = sshll.u32 %s1431_s23, 4  ;;  %s1290_s24 = int_to_ptr.vmem [resolvable:$false] %s1289_s24 }
  0x74   : > { %s1291_s4 = scalar_lea.vmem %s1290_s24, 3072  ;;  %p1292_p5 = scmp.lt.s32.totalorder %s1631_s9, %s1290_s24 }
  0x75   : > { %p1287_p9 = pnand %p1285_p7, %p1271_p6  ;;  %p1293_p8 = scmp.lt.s32.totalorder %s1291_s4, %s1284_s8 }
  0x77   : > { %p1288_p11 = pneg %p1287_p9  ;;  %p1294_p12 = por %p1293_p8, %p1292_p5 }
  0x79   : > { %p1295_p2 = pnand %p1294_p12, %p1288_p11 }
  0x7b   : > { %1298 = shalt.err (!%p1295_p2)
}
  0x7c   : > { %s1432_s7 = smov 192   ;;  %s1433_s5 = smov 12  }
  0x7d   : > { %1072 = dma.hbm_to_vmem [thread:$0]  (!%p1642_p4), %s1636_s18, 1536, %s1631_s9, %s1646_s1, %s1432_s7, %s1432_s7, %s1433_s5  }
  0x7e   : > { %p1836_p6 = scmp.ne.s32.totalorder %s1828_s30, 0 }
  0x7f   : > { %s198_s26 = sand.u32 (!%p1836_p6), 1, %s1401_s16   ;;  %p1837_p10 = scmp.ne.s32.totalorder (!%p1836_p6), %s1823_s27, 0 }
  0x80   : > { %196 = sbr.rel (%p1836_p6) target bundleno = 457 (0x1c9), region = 32  ;;  %s199_s3 = scalar_lea.sflag (!%p1836_p6), [#allocation3], %s198_s26 }
  0x81   : > { %s1049_s2 = smul.u32 (!%p1836_p6), 96, %s198_s26 }
  0x83   : > { %s1677_s19 = scalar_lea.vmem (!%p1836_p6), [#allocation2], %s1049_s2 }
  0x87   : > { %1372 = dma.done.wait (%p1837_p10), %s199_s3, 1536  }
  0x88   : > { %1374 = vsyncadd (%p1837_p10), %s199_s3, 4294965760  ;;  %p1838_p0 = scmp.ne.s32.totalorder %s1822_s25, 0 }
  0x8a   : > { %1376 = dma.done.wait (%p1838_p0), [#allocation6], 2320  }
  0x8b   : > { %1378 = vsyncadd (%p1838_p0), [#allocation6], 4294964976  ;;  %s230_s18 = sand.u32 1, %s1389_s13   ;;  %v1179_v0 = vld [vmem:[#allocation5 + $0x40] sm:$0xff]   ;;  %v1181_v2 = vld [vmem:[#allocation5 + $0x48] sm:$0xff]   ;;  %vm463_vm0 = vcmask 261120  }
  0x8c   : > { %s1690_s30 = sshll.u32 %s230_s18, 5  ;;  %v1180_v1 = vld [vmem:[#allocation5] sm:$0xff]   ;;  %972 = vmatprep.subr.bf16.mxu0 %v1179_v0  ;;  %1030 = vmatprep.subr.bf16.mxu1 %v1179_v0  ;;  %v1182_v3 = vld [vmem:[#allocation5 + $0x8] sm:$0xff]   ;;  %v1183_v4 = vld [vmem:[#allocation5 + $0x50] sm:$0xff]   ;;  %s1839_s27 = sld [smem:[#allocation13_spill]] }
  0x8d   : > { %973 = vmatpush3.bf16.msra.mxu0 %v1180_v1  ;;  %1038 = vmatpush3.bf16.msra.mxu1 %v1180_v1  ;;  %v1184_v5 = vld [vmem:[#allocation5 + $0x10] sm:$0xff]   ;;  %v1185_v6 = vld [vmem:[#allocation5 + $0x58] sm:$0xff]   ;;  %v1187_v8 = vld [vmem:[#allocation5 + $0x60] sm:$0xff]   ;;  %s1709_s25 = scalar_lea.vmem [#allocation8], %s1690_s30 }
  0x8e   : > { %974 = vmatprep.subr.bf16.mxu0 %v1181_v2  ;;  %1031 = vmatprep.subr.bf16.mxu1 %v1181_v2  ;;  %v1186_v7 = vld [vmem:[#allocation5 + $0x18] sm:$0xff]   ;;  %v1188_v9 = vld [vmem:[#allocation5 + $0x20] sm:$0xff]   ;;  %v1189_v10 = vld [vmem:[#allocation5 + $0x68] sm:$0xff]  }
  0x8f   : > { %v1197_v11 = vld [vmem:[%s1677_s19 + $0x4] ss:$12 sps:$4 sm:$0xff]   ;;  %v1200_v12 = vld [vmem:[%s1677_s19 + $0x4c] ss:$12 sps:$4 sm:$0xff]   ;;  %v1198_v20 = vld [vmem:[%s1677_s19 + $0x48] ss:$12 sps:$4 sm:$0xff]  }
  0x90   : > { %v1190_v13 = vld [vmem:[#allocation5 + $0x28] sm:$0xff]   ;;  %v1191_v14 = vld [vmem:[#allocation5 + $0x70] sm:$0xff]   ;;  %508 = vmatprep.mubr.bf16.mxu0 %v1197_v11  ;;  %532 = vmatprep.mubr.bf16.mxu1 %v1200_v12  ;;  %v1193_v16 = vld [vmem:[#allocation5 + $0x78] sm:$0xff]  }
  0x91   : > { %975 = vmatpush3.bf16.msra.mxu0 %v1182_v3  ;;  %1039 = vmatpush3.bf16.msra.mxu1 %v1182_v3  ;;  %v1192_v15 = vld [vmem:[#allocation5 + $0x30] sm:$0xff]   ;;  %v1194_v17 = vld [vmem:[#allocation5 + $0x38] sm:$0xff]   ;;  %v1201_v18 = vld [vmem:[#allocation5 + $0x80] sm:$0xff]  }
  0x92   : > { %976 = vmatprep.subr.bf16.mxu0 %v1183_v4  ;;  %1032 = vmatprep.subr.bf16.mxu1 %v1183_v4  ;;  %v1195_v19 = vld [vmem:[%s1677_s19] ss:$12 sps:$4 sm:$0xff]   ;;  %v1203_v21 = vld [vmem:[%s1677_s19 + $0x1c] ss:$12 sps:$4 sm:$0xff]   ;;  %v1206_v24 = vld [vmem:[%s1677_s19 + $0x18] ss:$12 sps:$4 sm:$0xff]  }
  0x93   : > { %v1202_v22 = vld [vmem:[#allocation5 + $0x88] sm:$0xff]   ;;  %v1208_v26 = vld [vmem:[%s1677_s19 + $0x34] ss:$12 sps:$4 sm:$0xff]   ;;  %v1210_v27 = vld [vmem:[%s1677_s19 + $0x38] ss:$12 sps:$4 sm:$0xff]   ;;  %p882_p4 = scmp.ne.s32.totalorder %s1839_s27, 0 }
  0x94   : > { %v1205_v23 = vld [vmem:[%s1677_s19 + $0x8] ss:$12 sps:$4 sm:$0xff]   ;;  %v1207_v25 = vld [vmem:[%s1677_s19 + $0x20] ss:$12 sps:$4 sm:$0xff]   ;;  %v1211_v28 = vld [vmem:[%s1677_s19 + $0x30] ss:$12 sps:$4 sm:$0xff]  }
  0x95   : > { %977 = vmatpush3.bf16.msra.mxu0 %v1184_v5  ;;  %1040 = vmatpush3.bf16.msra.mxu1 %v1184_v5  ;;  %v1212_v29 = vld [vmem:[%s1677_s19 + $0x50] ss:$12 sps:$4 sm:$0xff]  }
  0x96   : > { %978 = vmatprep.subr.bf16.mxu0 %v1185_v6  ;;  %1033 = vmatprep.subr.bf16.mxu1 %v1185_v6  ;;  %v847_v42 = vld [vmem:[#allocation7] ss:$0 sm:$0xff] }
  0x99   : > { %979 = vmatpush3.bf16.msra.mxu0 %v1186_v7  ;;  %1041 = vmatpush3.bf16.msra.mxu1 %v1186_v7 }
  0x9a   : > { %980 = vmatprep.subr.bf16.mxu0 %v1187_v8  ;;  %1034 = vmatprep.subr.bf16.mxu1 %v1187_v8 }
  0x9d   : > { %981 = vmatpush3.bf16.msra.mxu0 %v1188_v9  ;;  %1042 = vmatpush3.bf16.msra.mxu1 %v1188_v9 }
  0x9e   : > { %982 = vmatprep.subr.bf16.mxu0 %v1189_v10  ;;  %1035 = vmatprep.subr.bf16.mxu1 %v1189_v10 }
  0xa1   : > { %983 = vmatpush3.bf16.msra.mxu0 %v1190_v13  ;;  %1043 = vmatpush3.bf16.msra.mxu1 %v1190_v13 }
  0xa2   : > { %984 = vmatprep.subr.bf16.mxu0 %v1191_v14  ;;  %1036 = vmatprep.subr.bf16.mxu1 %v1191_v14 }
  0xa5   : > { %985 = vmatpush3.bf16.msra.mxu0 %v1192_v15  ;;  %1044 = vmatpush3.bf16.msra.mxu1 %v1192_v15 }
  0xa6   : > { %986 = vmatprep.subr.bf16.mxu0 %v1193_v16  ;;  %1037 = vmatprep.subr.bf16.mxu1 %v1193_v16 }
  0xa9   : > { %987 = vmatpush3.bf16.msra.mxu0 %v1194_v17  ;;  %1045 = vmatpush3.bf16.msra.mxu1 %v1194_v17 }
  0xaa   : > { %1018 = vmatprep.subr.bf16.mxu1 %v1201_v18 }
  0xac   : > { %509 = vmatmul.mubr.bf16.vlgmr.msra.gmra.mrb[0].mxu0 %v1195_v19  ;;  %533 = vmatmul.mubr.bf16.vlgmr.msra.gmra.mrb[0].mxu1 %v1198_v20 }
  0xad   : > { %1019 = vmatpush3.bf16.msra.mxu1 %v1201_v18  ;;  %516 = vmatprep.mubr.bf16.mxu0 %v1203_v21 }
  0xae   : > { %1020 = vmatprep.subr.bf16.mxu1 %v1202_v22  ;;  %1022 = vmatprep.mubr.msk.bf16.mxu1 %vm463_vm0, %v1205_v23 }
  0xb1   : > { %1021 = vmatpush3.bf16.msra.mxu1 %v1202_v22 }
  0xb4   : > { %517 = vmatmul.mubr.bf16.gmra.mrb[4].mxu0 %v1206_v24  ;;  %1023 = vmatmul.mubr.msk.bf16.vlgmr.msra.gmra.mrb[4].mxu1 %vm463_vm0, %v1207_v25 }
  0xb5   : > { %524 = vmatprep.mubr.bf16.mxu0 %v1208_v26  ;;  %1026 = vmatprep.mubr.msk.bf16.mxu1 %vm463_vm0, %v1210_v27 }
  0xbc   : > { %525 = vmatmul.mubr.bf16.gmra.mrb[8].mxu0 %v1211_v28  ;;  %1027 = vmatmul.mubr.msk.bf16.gmra.mrb[8].mxu1 %vm463_vm0, %v1212_v29 }
 0x17f   : > { %v988_v30 = vpop.f32.mrb[0].mxu0  ;;  %v1006_v31 = vpop.f32.mrb[0].mxu1 }
 0x180   : > { %v989_v32 = vpop.f32.mrb[1].mxu0  ;;  %v1007_v33 = vpop.f32.mrb[1].mxu1 }
 0x181   : > { %v990_v34 = vadd.f32 %v989_v32, %v988_v30  ;;  %v991_v35 = vpop.f32.mrb[2].mxu0  ;;  %v1008_v36 = vadd.f32 %v1007_v33, %v1006_v31  ;;  %v1009_v37 = vpop.f32.mrb[2].mxu1 }
 0x182   : > { %v992_v38 = vpop.f32.mrb[3].mxu0  ;;  %v1010_v39 = vpop.f32.mrb[3].mxu1 }
 0x183   : > { %v993_v40 = vadd.f32 %v992_v38, %v991_v35  ;;  %v1011_v41 = vadd.f32 %v1010_v39, %v1009_v37  ;;  %v511_v45 = vadd.f32 %v990_v34, %v847_v42  ;;  %v535_v62 = vadd.f32 %v1008_v36, %v847_v42 }
 0x185   : > { %v514_v52 = vadd.f32 %v993_v40, %v847_v42  ;;  %v538_v6 = vadd.f32 %v1011_v41, %v847_v42 }
 0x187   : > { %v994_v43 = vpop.f32.mrb[4].mxu0  ;;  %v1024_v44 = vpop.f32.mrb[4].mxu1 }
 0x188   : > { %v995_v46 = vpop.f32.mrb[5].mxu0  ;;  %v575_v47 = vpop.f32.mrb[5].mxu1 }
 0x189   : > { %v996_v48 = vadd.f32 %v995_v46, %v994_v43  ;;  %v576_v49 = vadd.f32 %v575_v47, %v511_v45  ;;  %v997_v50 = vpop.f32.mrb[6].mxu0  ;;  %v1025_v51 = vpop.f32.mrb[6].mxu1 }
 0x18a   : > { %v998_v53 = vpop.f32.mrb[7].mxu0  ;;  %v578_v54 = vpop.f32.mrb[7].mxu1 }
 0x18b   : > { %v519_v55 = vadd.f32 %v996_v48, %v847_v42  ;;  %v606_v56 = vmax.f32 %v576_v49, 0.0  ;;  %v999_v57 = vadd.f32 %v998_v53, %v997_v50  ;;  %v579_v58 = vadd.f32 %v578_v54, %v514_v52 }
 0x18d   : > { %v584_v59 = vadd.f32 %v1024_v44, %v519_v55  ;;  %v522_v60 = vadd.f32 %v999_v57, %v847_v42  ;;  %v607_v61 = vmax.f32 %v579_v58, 0.0 }
 0x18f   : > { %v608_v63 = vmax.f32 %v584_v59, 0.0  ;;  %v587_v0 = vadd.f32 %v1025_v51, %v522_v60  ;;  %v1000_v1 = vpop.f32.mrb[8].mxu0  ;;  %v1028_v2 = vpop.f32.mrb[8].mxu1  ;;  %v925_v23 = vpack.c.bf16 (!%p882_p4), %v607_v61, %v606_v56 }
 0x190   : > { %v600_v3 = vadd.f32 %v1028_v2, %v535_v62  ;;  %v1001_v4 = vpop.f32.mrb[9].mxu0  ;;  %v591_v5 = vpop.f32.mrb[9].mxu1 }
 0x191   : > { %v609_v7 = vmax.f32 %v587_v0, 0.0  ;;  %v1002_v8 = vadd.f32 %v1001_v4, %v1000_v1  ;;  %v1003_v9 = vpop.f32.mrb[10].mxu0  ;;  %v1029_v10 = vpop.f32.mrb[10].mxu1  ;;  %926 = vst [vmem:[%s1709_s25] sm:$0xff] (!%p882_p4), %v925_v23  }
 0x192   : > { %v612_v11 = vmax.f32 %v600_v3, 0.0  ;;  %v603_v12 = vadd.f32 %v1029_v10, %v538_v6  ;;  %v1004_v13 = vpop.f32.mrb[11].mxu0  ;;  %v594_v14 = vpop.f32.mrb[11].mxu1 }
 0x193   : > { %v527_v15 = vadd.f32 %v1002_v8, %v847_v42  ;;  %v1005_v16 = vadd.f32 %v1004_v13, %v1003_v9  ;;  %621 = sbr.rel (%p882_p4) target bundleno = 414 (0x19e), region = 48  ;;  %v930_v24 = vpack.c.bf16 (!%p882_p4), %v609_v7, %v608_v63 }
 0x194   : > { %v613_v17 = vmax.f32 %v603_v12, 0.0 }
 0x195   : > { %v592_v18 = vadd.f32 %v591_v5, %v527_v15  ;;  %v530_v19 = vadd.f32 %v1005_v16, %v847_v42  ;;  %962 = vst [vmem:[%s1709_s25 + $0x8] sm:$0xff] (!%p882_p4), %v930_v24  }
 0x196   : > { %v940_v26 = vpack.c.bf16 (!%p882_p4), %v613_v17, %v612_v11 }
 0x197   : > { %v610_v20 = vmax.f32 %v592_v18, 0.0  ;;  %v595_v21 = vadd.f32 %v594_v14, %v530_v19 }
 0x198   : > { %964 = vst [vmem:[%s1709_s25 + $0x18] sm:$0xff] (!%p882_p4), %v940_v26  }
 0x199   : > { %v611_v22 = vmax.f32 %v595_v21, 0.0 }
 0x19b   : > { %v935_v25 = vpack.c.bf16 %v611_v22, %v610_v20 }
 0x19d   : > { %963 = vst [vmem:[%s1709_s25 + $0x10] sm:$0xff] %v935_v25  }
 0x19e PF: > { %s1840_s9 = sld [smem:[#allocation13_spill]] }
 0x1a4   : > { %p891_p1 = scmp.le.s32.totalorder %s1840_s9, 0 }
 0x1a5   : > { %v662_v27 = vld [vmem:[%s1709_s25] sm:$0xf] (!%p891_p1)  ;;  %v663_v28 = vld [vmem:[%s1709_s25 + $0x4] sm:$0xf] (!%p891_p1)  ;;  %v913_v29 = vpack.c.bf16 (!%p891_p1), %v606_v56, %v606_v56  ;;  %v914_v30 = vpack.c.bf16 (!%p891_p1), %v607_v61, %v607_v61  ;;  %v664_v31 = vld [vmem:[%s1709_s25 + $0x8] sm:$0xf] (!%p891_p1)  ;;  %v915_v32 = vpack.c.bf16 (!%p891_p1), %v608_v63, %v608_v63  ;;  %v916_v33 = vpack.c.bf16 (!%p891_p1), %v609_v7, %v609_v7 }
 0x1a6   : > { %661 = sbr.rel (%p891_p1) target bundleno = 429 (0x1ad), region = 52  ;;  %v665_v34 = vld [vmem:[%s1709_s25 + $0xc] sm:$0xf] (!%p891_p1)  ;;  %v666_v35 = vld [vmem:[%s1709_s25 + $0x10] sm:$0xf] (!%p891_p1)  ;;  %v917_v37 = vpack.c.bf16 (!%p891_p1), %v610_v20, %v610_v20  ;;  %v918_v38 = vpack.c.bf16 (!%p891_p1), %v611_v22, %v611_v22  ;;  %v919_v39 = vpack.c.bf16 (!%p891_p1), %v612_v11, %v612_v11  ;;  %v920_v40 = vpack.c.bf16 (!%p891_p1), %v613_v17, %v613_v17 }
 0x1a7   : > { %v667_v36 = vld [vmem:[%s1709_s25 + $0x14] sm:$0xf] (!%p891_p1)  ;;  %v698_v41 = vmax.bf16 (!%p891_p1), %v913_v29, %v662_v27  ;;  %v699_v42 = vmax.bf16 (!%p891_p1), %v914_v30, %v663_v28  ;;  %v700_v43 = vmax.bf16 (!%p891_p1), %v915_v32, %v664_v31  ;;  %v701_v44 = vmax.bf16 (!%p891_p1), %v916_v33, %v665_v34  ;;  %v668_v45 = vld [vmem:[%s1709_s25 + $0x18] sm:$0xf] (!%p891_p1)  ;;  %v669_v46 = vld [vmem:[%s1709_s25 + $0x1c] sm:$0xf] (!%p891_p1) }
 0x1a8   : > { %v702_v47 = vmax.bf16 (!%p891_p1), %v917_v37, %v666_v35  ;;  %v703_v48 = vmax.bf16 (!%p891_p1), %v918_v38, %v667_v36  ;;  %v704_v49 = vmax.bf16 (!%p891_p1), %v919_v39, %v668_v45  ;;  %v705_v50 = vmax.bf16 (!%p891_p1), %v920_v40, %v669_v46 }
 0x1a9   : > { %v965_v51 = vcombine.low (!%p891_p1), %v698_v41, %v699_v42  ;;  %v966_v52 = vcombine.low (!%p891_p1), %v700_v43, %v701_v44 }
 0x1aa   : > { %v968_v53 = vcombine.low (!%p891_p1), %v702_v47, %v703_v48  ;;  %v970_v54 = vcombine.low (!%p891_p1), %v704_v49, %v705_v50 }
 0x1ab   : > { %946 = vst [vmem:[%s1709_s25] sm:$0xff] (!%p891_p1), %v965_v51   ;;  %967 = vst [vmem:[%s1709_s25 + $0x8] sm:$0xff] (!%p891_p1), %v966_v52  }
 0x1ac   : > { %969 = vst [vmem:[%s1709_s25 + $0x10] sm:$0xff] (!%p891_p1), %v968_v53   ;;  %971 = vst [vmem:[%s1709_s25 + $0x18] sm:$0xff] (!%p891_p1), %v970_v54  }
 0x1ad PF: > { %s1841_s6 = sld [smem:[#allocation14_spill]]  ;;  %s1842_s1 = sld [smem:[#allocation15_spill]] }
 0x1ae   : > { %s1843_s8 = sld [smem:[#allocation20_spill]]  ;;  %s728_s24 = sshll.u32 %s1709_s25, 4  ;;  %s1736_s24 = int_to_ptr.vmem [resolvable:$true] %s728_s24 }
 0x1af   : > { %s1740_s4 = scalar_lea.sflag [#allocation4], %s230_s18  ;;  %s1299_s7 = scalar_lea.vmem %s1736_s24, 512 }
 0x1b0   : > { %p1300_p3 = scmp.ne.s32.totalorder %s1736_s24, %s1299_s7  ;;  %s1434_s5 = smov [#allocation8]  }
 0x1b1   : > { %s1303_s26 = sshll.u32 %s1434_s5, 4  ;;  %s1304_s26 = int_to_ptr.vmem [resolvable:$false] %s1303_s26 }
 0x1b2   : > { %s1305_s2 = scalar_lea.vmem %s1304_s26, 1024  ;;  %p1306_p11 = scmp.lt.s32.totalorder %s1736_s24, %s1304_s26 }
 0x1b3   : > { %s921_s28 = sshll.u32 %s1841_s6, 9  ;;  %p1844_p13 = scmp.ne.s32.totalorder %s1842_s1, 0 }
 0x1b4   : > { %s1733_s23 = scalar_lea.hbm %s1843_s8, %s921_s28  ;;  %p1307_p5 = scmp.lt.s32.totalorder %s1305_s2, %s1299_s7 }
 0x1b5   : > { %p1301_p7 = pnand %p1300_p3, %p1844_p13 }
 0x1b6   : > { %p1308_p8 = por %p1307_p5, %p1306_p11 }
 0x1b7   : > { %p1302_p9 = pneg %p1301_p7 }
 0x1b9   : > { %p1309_p12 = pnand %p1308_p8, %p1302_p9 }
 0x1bb   : > { %1312 = shalt.err (!%p1309_p12)
}
 0x1bc   : > { %s1313_s3 = scalar_lea.hbm %s1733_s23, 512  ;;  %s1317_s30 = scalar_lea.hbm %s1843_s8, 1024 }
 0x1bd   : > { %p1314_p2 = scmp.ne.s32.totalorder %s1733_s23, %s1313_s3  ;;  %p1318_p0 = scmp.lt.u32.totalorder %s1733_s23, %s1843_s8 }
 0x1be   : > { %p1319_p4 = scmp.lt.u32.totalorder %s1317_s30, %s1313_s3  ;;  %p1321_p3 = scmp.lt.u32.totalorder %s1313_s3, %s1733_s23 }
 0x1bf   : > { %p1315_p6 = pnand %p1314_p2, %p1844_p13 }
 0x1c0   : > { %p1320_p1 = por %p1319_p4, %p1318_p0 }
 0x1c1   : > { %p1316_p10 = pneg %p1315_p6 }
 0x1c2   : > { %p1322_p7 = por %p1321_p3, %p1320_p1 }
 0x1c4   : > { %p1323_p9 = pnand %p1322_p7, %p1316_p10 }
 0x1c6   : > { %1326 = shalt.err (!%p1323_p9)
}
 0x1c7   : > { %s1435_s9 = smov 64   ;;  %s1436_s6 = smov 4  }
 0x1c8   : > { %1060 = dma.vmem_to_hbm [thread:$0]  (%p1844_p13), %s1736_s24, 512, %s1733_s23, %s1740_s4, %s1435_s9, %s1435_s9, %s1436_s6  }
 0x1c9 PF: > { %s1845_s28 = sld [smem:[#allocation12_spill]]  ;;  %s1846_s11 = sld [smem:[#allocation16_spill]] }
 0x1ca   : > { %p1082_p11 = scmp.ge.s32.totalorder %s1425_s22, 2 }
 0x1cf   : > { %s743_s15 = sand.u32 1, %s1845_s28   ;;  %p1847_p5 = scmp.ne.s32.totalorder %s1846_s11, 0 }
 0x1d0   : > { %s744_s7 = scalar_lea.sflag [#allocation4], %s743_s15 }
 0x1d1   : > { %p1074_p8 = pnand %p1082_p11, %p1847_p5 }
 0x1d3   : > { %1380 = dma.done.wait (!%p1074_p8), %s744_s7, 512  }
 0x1d4   : > { %1382 = vsyncadd (!%p1074_p8), %s744_s7, 4294966784  ;;  %s20_s22 = sadd.s32 1, %s1425_s22   ;;  %s1848_s5 = smov %s1626_s12 }
 0x1d5   : > { %p17_p12 = scmp.ge.s32.totalorder %s20_s22, 10   ;;  %s1849_s1 = sld [smem:[#allocation17_spill]] }
 0x1d6   : > { %s1850_s12 = smov %s1389_s13  ;;  %s1851_s13 = smov %s1393_s14 }
 0x1d7   : > { %s1852_s14 = smov %s1848_s5  ;;  %s1853_s15 = smov %s1401_s16 }
 0x1d8   : > { %s1854_s16 = smov %s1405_s17  ;;  %s1855_s17 = smov %s1629_s29 }
 0x1d9   : > { %s1856_s18 = smov %s1417_s20  ;;  %s1857_s19 = smov %s1421_s21 }
 0x1da   : > { %s1859_s21 = smov %s1865_s10  ;;  %19 = sbr.rel (!%p17_p12) target bundleno = 14 (0xe), region = 93 }
 0x1db   : > { %s1858_s20 = smov %s1849_s1 }
 0x1e1   :  { %749 = vsyncpa [#allocation3], 1 }
 0x1e2   :  { %751 = vsyncpa [#allocation3 + $0x1], 1 }
 0x1e3   :  { %752 = vsyncpa [#allocation6], 1 }
 0x1e4   :  { %753 = vsyncpa [#allocation4], 1 }
 0x1e5   :  { %755 = vsyncpa [#allocation4 + $0x1], 1 }

// kernel: net3_forward.5
= control target key start
LH: loop header
LB: loop body
LE: loop exit
PB: predicated region body
PF: predicated region fallthrough
CT: control target
= control target key end

     0   :  { %10 = vsyncpa [#allocation3], 0  ;;  %s4742_s0 = inlined_call_operand.hbm [shape: bf16[16,3136], index: 0, kind: input, shape index: {}]   ;;  %s4743_s1 = inlined_call_operand.hbm [shape: bf16[3136,256], index: 1, kind: input, shape index: {}]   ;;  %s4744_s2 = inlined_call_operand.hbm [shape: f32[1,256], index: 2, kind: input, shape index: {}]   ;;  %s4745_s3 = inlined_call_operand.hbm [shape: f32[256,128], index: 3, kind: input, shape index: {}]   ;;  %s4746_s4 = inlined_call_operand.hbm [shape: f32[1,128], index: 4, kind: input, shape index: {}]   ;;  %s4747_s5 = inlined_call_operand.hbm [shape: f32[16,128], index: 5, kind: output, shape index: {}]  }
   0x1   :  { %11 = vsyncpa [#allocation6], 0 }
   0x2   :  { %12 = vsyncpa [#allocation9], 0 }
   0x3   :  { %13 = vsyncpa [#allocation4], 0  ;;  %s4620_s18 = smov [#allocation5]   ;;  %s4480_s22 = scalar_lea.hbm %s4743_s1, 50176 }
   0x4   :  { %s31_s19 = sshll.u32 %s4620_s18, 4  ;;  %p4481_p0 = scmp.ne.s32.totalorder %s4743_s1, %s4480_s22  ;;  %s32_s19 = int_to_ptr.vmem [resolvable:$true] %s31_s19 }
   0x5   :  { %p4484_p1 = scmp.lt.u32.totalorder %s4480_s22, %s4743_s1 }
   0x7   :  { %p4486_p2 = pnand %p4484_p1, %p4481_p0 }
   0x9   :  { %4489 = shalt.err (!%p4486_p2)
}
   0xa   :  { %s4490_s27 = scalar_lea.vmem %s32_s19, 50176  ;;  %p4495_p4 = scmp.lt.s32.totalorder %s32_s19, %s32_s19 }
   0xb   :  { %p4491_p3 = scmp.ne.s32.totalorder %s32_s19, %s4490_s27  ;;  %p4496_p5 = scmp.lt.s32.totalorder %s4490_s27, %s4490_s27 }
   0xd   :  { %p4497_p6 = por %p4496_p5, %p4495_p4 }
   0xf   :  { %p4498_p7 = pnand %p4497_p6, %p4491_p3 }
  0x11   :  { %4501 = shalt.err (!%p4498_p7)
}
  0x12   :  { %s4621_s28 = smov 128   ;;  %s4622_s29 = smov 8  }
  0x13   :  { %37 = dma.hbm_to_vmem [thread:$0]  %s4743_s1, 50176, %s32_s19, [#allocation6], %s4621_s28, %s4621_s28, %s4622_s29  }
  0x14   :  { %s4623_s7 = smov [#allocation8]   ;;  %s4624_s9 = smov [#allocation2]  }
  0x15   :  { %s53_s8 = sshll.u32 %s4623_s7, 4  ;;  %s19_s10 = sshll.u32 %s4624_s9, 4  ;;  %s54_s8 = int_to_ptr.vmem [resolvable:$true] %s53_s8  ;;  %s20_s10 = int_to_ptr.vmem [resolvable:$true] %s19_s10 }
  0x16   :  { %s4502_s13 = scalar_lea.hbm %s4745_s3, 4096 }
  0x17   :  { %p4503_p8 = scmp.ne.s32.totalorder %s4745_s3, %s4502_s13  ;;  %p4506_p9 = scmp.lt.u32.totalorder %s4502_s13, %s4745_s3 }
  0x19   :  { %p4508_p10 = pnand %p4506_p9, %p4503_p8 }
  0x1b   :  { %4511 = shalt.err (!%p4508_p10)
}
  0x1c   :  { %s4512_s1 = scalar_lea.vmem %s54_s8, 4096  ;;  %p4517_p12 = scmp.lt.s32.totalorder %s54_s8, %s54_s8 }
  0x1d   :  { %p4513_p11 = scmp.ne.s32.totalorder %s54_s8, %s4512_s1  ;;  %p4518_p13 = scmp.lt.s32.totalorder %s4512_s1, %s4512_s1 }
  0x1f   :  { %p4519_p0 = por %p4518_p13, %p4517_p12 }
  0x21   :  { %p4520_p1 = pnand %p4519_p0, %p4513_p11 }
  0x23   :  { %4523 = shalt.err (!%p4520_p1)
}
  0x24   :  { %59 = dma.hbm_to_vmem [thread:$0]  %s4745_s3, 4096, %s54_s8, [#allocation9], %s4621_s28, %s4621_s28, %s4622_s29  }
  0x25   :  { %s4524_s22 = scalar_lea.hbm %s4742_s0, 3200 }
  0x26   :  { %p4525_p2 = scmp.ne.s32.totalorder %s4742_s0, %s4524_s22  ;;  %p4528_p3 = scmp.lt.u32.totalorder %s4524_s22, %s4742_s0 }
  0x28   :  { %p4530_p4 = pnand %p4528_p3, %p4525_p2 }
  0x2a   :  { %4533 = shalt.err (!%p4530_p4)
}
  0x2b   :  { %s4534_s27 = scalar_lea.vmem %s20_s10, 3200  ;;  %p4539_p6 = scmp.lt.s32.totalorder %s20_s10, %s20_s10 }
  0x2c   :  { %p4535_p5 = scmp.ne.s32.totalorder %s20_s10, %s4534_s27  ;;  %p4540_p7 = scmp.lt.s32.totalorder %s4534_s27, %s4534_s27 }
  0x2e   :  { %p4541_p8 = por %p4540_p7, %p4539_p6 }
  0x30   :  { %p4542_p9 = pnand %p4541_p8, %p4535_p5 }
  0x32   :  { %4545 = shalt.err (!%p4542_p9)
}
  0x33   :  { %s4625_s3 = smov 1600   ;;  %s4626_s30 = smov 100  }
  0x34   :  { %25 = dma.hbm_to_vmem [thread:$0]  %s4742_s0, 3200, %s20_s10, [#allocation3], %s4625_s3, %s4625_s3, %s4626_s30  }
  0x35   :  { %s4627_s8 = smov [#allocation7]   ;;  %s4628_s11 = smov [#allocation10]  }
  0x36   :  { %s44_s9 = sshll.u32 %s4627_s8, 4  ;;  %s66_s12 = sshll.u32 %s4628_s11, 4  ;;  %s45_s9 = int_to_ptr.vmem [resolvable:$true] %s44_s9  ;;  %s67_s12 = int_to_ptr.vmem [resolvable:$true] %s66_s12 }
  0x37   :  { %s4546_s15 = scalar_lea.hbm %s4744_s2, 32 }
  0x38   :  { %p4547_p10 = scmp.ne.s32.totalorder %s4744_s2, %s4546_s15  ;;  %p4550_p11 = scmp.lt.u32.totalorder %s4546_s15, %s4744_s2 }
  0x3a   :  { %p4552_p12 = pnand %p4550_p11, %p4547_p10 }
  0x3c   :  { %4555 = shalt.err (!%p4552_p12)
}
  0x3d   :  { %s4556_s0 = scalar_lea.vmem %s45_s9, 32  ;;  %p4561_p0 = scmp.lt.s32.totalorder %s45_s9, %s45_s9 }
  0x3e   :  { %p4557_p13 = scmp.ne.s32.totalorder %s45_s9, %s4556_s0  ;;  %p4562_p1 = scmp.lt.s32.totalorder %s4556_s0, %s4556_s0 }
  0x40   :  { %p4563_p2 = por %p4562_p1, %p4561_p0 }
  0x42   :  { %p4564_p3 = pnand %p4563_p2, %p4557_p13 }
  0x44   :  { %4567 = shalt.err (!%p4564_p3)
}
  0x45   :  { %47 = dma.hbm_to_vmem [thread:$0]  %s4744_s2, 32, %s45_s9, [#allocation6]  }
  0x46   :  { %s4568_s22 = scalar_lea.hbm %s4746_s4, 16 }
  0x47   :  { %p4569_p4 = scmp.ne.s32.totalorder %s4746_s4, %s4568_s22  ;;  %p4572_p5 = scmp.lt.u32.totalorder %s4568_s22, %s4746_s4 }
  0x49   :  { %p4574_p6 = pnand %p4572_p5, %p4569_p4 }
  0x4b   :  { %4577 = shalt.err (!%p4574_p6)
}
  0x4c   :  { %s4578_s27 = scalar_lea.vmem %s67_s12, 16  ;;  %s4582_s3 = scalar_lea.vmem %s67_s12, 32 }
  0x4d   :  { %p4579_p7 = scmp.ne.s32.totalorder %s67_s12, %s4578_s27  ;;  %p4583_p8 = scmp.lt.s32.totalorder %s67_s12, %s67_s12 }
  0x4e   :  { %p4584_p9 = scmp.lt.s32.totalorder %s4582_s3, %s4578_s27 }
  0x50   :  { %p4585_p10 = por %p4584_p9, %p4583_p8 }
  0x52   :  { %p4586_p11 = pnand %p4585_p10, %p4579_p7 }
  0x54   :  { %4589 = shalt.err (!%p4586_p11)
}
  0x55   :  { %69 = dma.hbm_to_vmem [thread:$0]  %s4746_s4, 16, %s67_s12, [#allocation9]  }
  0x56   :  { %4612 = dma.done.wait [#allocation3], 3200  }
  0x57   :  { %4613 = vsyncadd [#allocation3], 4294964096 }
  0x58   :  { %4614 = dma.done.wait [#allocation6], 50208  }
  0x59   :  { %4615 = vsyncadd [#allocation6], 4294917088 }
  0x5a   :  { %4616 = dma.done.wait [#allocation9], 4112  }
  0x5b   :  { %4617 = vsyncadd [#allocation9], 4294963184  ;;  %v3855_v0 = vld [vmem:[#allocation5 + $0x4] ss:$8 sps:$4 sm:$0xff]   ;;  %v3859_v2 = vld [vmem:[#allocation5] ss:$8 sps:$4 sm:$0xff]  }
  0x5c   :  { %v3857_v1 = vld [vmem:[#allocation5 + $0x604] ss:$8 sps:$4 sm:$0xff]   ;;  %2605 = vmatprep.subr.bf16.mxu1 %v3855_v0  ;;  %v3860_v3 = vld [vmem:[#allocation5 + $0x600] ss:$8 sps:$4 sm:$0xff]   ;;  %v3861_v4 = vld [vmem:[#allocation5 + $0x14] ss:$8 sps:$4 sm:$0xff]  }
  0x5d   :  { %2863 = vmatprep.subr.bf16.mxu0 %v3857_v1  ;;  %2606 = vmatpush1.bf16.msra.mxu1 %v3859_v2  ;;  %v3863_v5 = vld [vmem:[#allocation5 + $0x614] ss:$8 sps:$4 sm:$0xff]   ;;  %v3865_v6 = vld [vmem:[#allocation5 + $0x10] ss:$8 sps:$4 sm:$0xff]   ;;  %v3867_v8 = vld [vmem:[#allocation5 + $0x24] ss:$8 sps:$4 sm:$0xff]  }
  0x5e   :  { %2864 = vmatpush1.bf16.msra.mxu0 %v3860_v3  ;;  %2607 = vmatprep.subr.bf16.mxu1 %v3861_v4  ;;  %v3866_v7 = vld [vmem:[#allocation5 + $0x610] ss:$8 sps:$4 sm:$0xff]   ;;  %v3869_v9 = vld [vmem:[#allocation5 + $0x624] ss:$8 sps:$4 sm:$0xff]   ;;  %v3871_v10 = vld [vmem:[#allocation5 + $0x20] ss:$8 sps:$4 sm:$0xff]  }
  0x5f   :  { %2865 = vmatprep.subr.bf16.mxu0 %v3863_v5  ;;  %v3872_v11 = vld [vmem:[#allocation5 + $0x620] ss:$8 sps:$4 sm:$0xff]   ;;  %v3873_v12 = vld [vmem:[#allocation5 + $0x34] ss:$8 sps:$4 sm:$0xff]   ;;  %v3877_v14 = vld [vmem:[#allocation5 + $0x30] ss:$8 sps:$4 sm:$0xff]  }
  0x60   :  { %v3875_v13 = vld [vmem:[#allocation5 + $0x634] ss:$8 sps:$4 sm:$0xff]   ;;  %v3878_v15 = vld [vmem:[#allocation5 + $0x630] ss:$8 sps:$4 sm:$0xff]   ;;  %v3879_v16 = vld [vmem:[#allocation5 + $0x44] ss:$8 sps:$4 sm:$0xff]  }
  0x61   :  { %2608 = vmatpush1.bf16.msra.mxu1 %v3865_v6  ;;  %v3881_v17 = vld [vmem:[#allocation5 + $0x644] ss:$8 sps:$4 sm:$0xff]   ;;  %v3883_v18 = vld [vmem:[#allocation5 + $0x40] ss:$8 sps:$4 sm:$0xff]   ;;  %v3885_v20 = vld [vmem:[#allocation5 + $0x54] ss:$8 sps:$4 sm:$0xff]  }
  0x62   :  { %2866 = vmatpush1.bf16.msra.mxu0 %v3866_v7  ;;  %2609 = vmatprep.subr.bf16.mxu1 %v3867_v8  ;;  %v3884_v19 = vld [vmem:[#allocation5 + $0x640] ss:$8 sps:$4 sm:$0xff]   ;;  %v3887_v21 = vld [vmem:[#allocation5 + $0x654] ss:$8 sps:$4 sm:$0xff]   ;;  %v3889_v22 = vld [vmem:[#allocation5 + $0x50] ss:$8 sps:$4 sm:$0xff]  }
  0x63   :  { %2867 = vmatprep.subr.bf16.mxu0 %v3869_v9  ;;  %v3890_v23 = vld [vmem:[#allocation5 + $0x650] ss:$8 sps:$4 sm:$0xff]   ;;  %v3891_v24 = vld [vmem:[#allocation5 + $0x64] ss:$8 sps:$4 sm:$0xff]   ;;  %v3895_v26 = vld [vmem:[#allocation5 + $0x60] ss:$8 sps:$4 sm:$0xff]  }
  0x64   :  { %v3893_v25 = vld [vmem:[#allocation5 + $0x664] ss:$8 sps:$4 sm:$0xff]   ;;  %v3896_v27 = vld [vmem:[#allocation5 + $0x660] ss:$8 sps:$4 sm:$0xff]   ;;  %v3897_v28 = vld [vmem:[#allocation5 + $0x74] ss:$8 sps:$4 sm:$0xff]  }
  0x65   :  { %2610 = vmatpush1.bf16.msra.mxu1 %v3871_v10  ;;  %v3899_v29 = vld [vmem:[#allocation5 + $0x674] ss:$8 sps:$4 sm:$0xff]   ;;  %v3901_v30 = vld [vmem:[#allocation5 + $0x70] ss:$8 sps:$4 sm:$0xff]   ;;  %v3903_v32 = vld [vmem:[#allocation5 + $0x84] ss:$8 sps:$4 sm:$0xff]  }
  0x66   :  { %2868 = vmatpush1.bf16.msra.mxu0 %v3872_v11  ;;  %2611 = vmatprep.subr.bf16.mxu1 %v3873_v12  ;;  %v3902_v31 = vld [vmem:[#allocation5 + $0x670] ss:$8 sps:$4 sm:$0xff]   ;;  %v3905_v33 = vld [vmem:[#allocation5 + $0x684] ss:$8 sps:$4 sm:$0xff]   ;;  %v3907_v34 = vld [vmem:[#allocation5 + $0x80] ss:$8 sps:$4 sm:$0xff]  }
  0x67   :  { %2869 = vmatprep.subr.bf16.mxu0 %v3875_v13  ;;  %v3908_v35 = vld [vmem:[#allocation5 + $0x680] ss:$8 sps:$4 sm:$0xff]   ;;  %v3909_v36 = vld [vmem:[#allocation5 + $0x94] ss:$8 sps:$4 sm:$0xff]   ;;  %v3913_v38 = vld [vmem:[#allocation5 + $0x90] ss:$8 sps:$4 sm:$0xff]  }
  0x68   :  { %v3911_v37 = vld [vmem:[#allocation5 + $0x694] ss:$8 sps:$4 sm:$0xff]   ;;  %v3914_v39 = vld [vmem:[#allocation5 + $0x690] ss:$8 sps:$4 sm:$0xff]   ;;  %v3915_v40 = vld [vmem:[#allocation5 + $0xa4] ss:$8 sps:$4 sm:$0xff]  }
  0x69   :  { %2612 = vmatpush1.bf16.msra.mxu1 %v3877_v14  ;;  %v3917_v41 = vld [vmem:[#allocation5 + $0x6a4] ss:$8 sps:$4 sm:$0xff]   ;;  %v3919_v42 = vld [vmem:[#allocation5 + $0xa0] ss:$8 sps:$4 sm:$0xff]   ;;  %v3921_v44 = vld [vmem:[#allocation5 + $0xb4] ss:$8 sps:$4 sm:$0xff]  }
  0x6a   :  { %2870 = vmatpush1.bf16.msra.mxu0 %v3878_v15  ;;  %2613 = vmatprep.subr.bf16.mxu1 %v3879_v16  ;;  %v3920_v43 = vld [vmem:[#allocation5 + $0x6a0] ss:$8 sps:$4 sm:$0xff]   ;;  %v3923_v45 = vld [vmem:[#allocation5 + $0x6b4] ss:$8 sps:$4 sm:$0xff]   ;;  %v3925_v46 = vld [vmem:[#allocation5 + $0xb0] ss:$8 sps:$4 sm:$0xff]  }
  0x6b   :  { %2871 = vmatprep.subr.bf16.mxu0 %v3881_v17  ;;  %v3926_v47 = vld [vmem:[#allocation5 + $0x6b0] ss:$8 sps:$4 sm:$0xff]   ;;  %v3953_v48 = vld [vmem:[#allocation2 + $0x4] ss:$100 sps:$4 sm:$0xff]   ;;  %v3927_v49 = vld [vmem:[#allocation5 + $0xc4] ss:$8 sps:$4 sm:$0xff]  }
  0x6c   :  { %v3929_v50 = vld [vmem:[#allocation5 + $0x6c4] ss:$8 sps:$4 sm:$0xff]   ;;  %2637 = vmatprep.mubr.bf16.mxu1 %v3953_v48  ;;  %v3931_v52 = vld [vmem:[#allocation5 + $0xc0] ss:$8 sps:$4 sm:$0xff]   ;;  %v3933_v54 = vld [vmem:[#allocation5 + $0xd4] ss:$8 sps:$4 sm:$0xff]  }
  0x6d   :  { %2614 = vmatpush1.bf16.msra.mxu1 %v3883_v18  ;;  %v3959_v51 = vld [vmem:[#allocation2 + $0x34] ss:$100 sps:$4 sm:$0xff]   ;;  %v3932_v53 = vld [vmem:[#allocation5 + $0x6c0] ss:$8 sps:$4 sm:$0xff]   ;;  %v3935_v55 = vld [vmem:[#allocation5 + $0x6d4] ss:$8 sps:$4 sm:$0xff]  }
  0x6e   :  { %2872 = vmatpush1.bf16.msra.mxu0 %v3884_v19  ;;  %2615 = vmatprep.subr.bf16.mxu1 %v3885_v20  ;;  %v3937_v56 = vld [vmem:[#allocation5 + $0xd0] ss:$8 sps:$4 sm:$0xff]   ;;  %v3939_v58 = vld [vmem:[#allocation5 + $0xe4] ss:$8 sps:$4 sm:$0xff]   ;;  %v3943_v60 = vld [vmem:[#allocation5 + $0xe0] ss:$8 sps:$4 sm:$0xff]  }
  0x6f   :  { %2873 = vmatprep.subr.bf16.mxu0 %v3887_v21  ;;  %2895 = vmatprep.mubr.bf16.mxu0 %v3959_v51  ;;  %v3938_v57 = vld [vmem:[#allocation5 + $0x6d0] ss:$8 sps:$4 sm:$0xff]   ;;  %v3941_v59 = vld [vmem:[#allocation5 + $0x6e4] ss:$8 sps:$4 sm:$0xff]   ;;  %v3944_v61 = vld [vmem:[#allocation5 + $0x6e0] ss:$8 sps:$4 sm:$0xff]  }
  0x70   :  { %v3945_v62 = vld [vmem:[#allocation5 + $0xf4] ss:$8 sps:$4 sm:$0xff]   ;;  %v3949_v0 = vld [vmem:[#allocation5 + $0xf0] ss:$8 sps:$4 sm:$0xff]   ;;  %v3956_v2 = vld [vmem:[#allocation5 + $0x104] ss:$8 sps:$4 sm:$0xff]  }
  0x71   :  { %2616 = vmatpush1.bf16.msra.mxu1 %v3889_v22  ;;  %v3947_v63 = vld [vmem:[#allocation5 + $0x6f4] ss:$8 sps:$4 sm:$0xff]   ;;  %v3950_v1 = vld [vmem:[#allocation5 + $0x6f0] ss:$8 sps:$4 sm:$0xff]   ;;  %v3962_v3 = vld [vmem:[#allocation5 + $0x704] ss:$8 sps:$4 sm:$0xff]  }
  0x72   :  { %2874 = vmatpush1.bf16.msra.mxu0 %v3890_v23  ;;  %2617 = vmatprep.subr.bf16.mxu1 %v3891_v24  ;;  %v3951_v4 = vld [vmem:[#allocation2] ss:$100 sps:$4 sm:$0xff]   ;;  %v3954_v5 = vld [vmem:[#allocation5 + $0x100] ss:$8 sps:$4 sm:$0xff]   ;;  %v3971_v12 = vld [vmem:[#allocation5 + $0x124] ss:$8 sps:$4 sm:$0xff]  }
  0x73   :  { %2875 = vmatprep.subr.bf16.mxu0 %v3893_v25  ;;  %v3957_v6 = vld [vmem:[#allocation2 + $0x30] ss:$100 sps:$4 sm:$0xff]   ;;  %v3965_v8 = vld [vmem:[#allocation5 + $0x114] ss:$8 sps:$4 sm:$0xff]   ;;  %v3963_v10 = vld [vmem:[#allocation5 + $0x110] ss:$8 sps:$4 sm:$0xff]  }
  0x74   :  { %v3960_v7 = vld [vmem:[#allocation5 + $0x700] ss:$8 sps:$4 sm:$0xff]   ;;  %v3968_v9 = vld [vmem:[#allocation5 + $0x714] ss:$8 sps:$4 sm:$0xff]   ;;  %v3966_v11 = vld [vmem:[#allocation5 + $0x710] ss:$8 sps:$4 sm:$0xff]  }
  0x75   :  { %2618 = vmatpush1.bf16.msra.mxu1 %v3895_v26  ;;  %v3974_v13 = vld [vmem:[#allocation5 + $0x724] ss:$8 sps:$4 sm:$0xff]   ;;  %v3969_v14 = vld [vmem:[#allocation5 + $0x120] ss:$8 sps:$4 sm:$0xff]   ;;  %v3977_v16 = vld [vmem:[#allocation5 + $0x134] ss:$8 sps:$4 sm:$0xff]  }
  0x76   :  { %2876 = vmatpush1.bf16.msra.mxu0 %v3896_v27  ;;  %2619 = vmatprep.subr.bf16.mxu1 %v3897_v28  ;;  %v3972_v15 = vld [vmem:[#allocation5 + $0x720] ss:$8 sps:$4 sm:$0xff]   ;;  %v3980_v17 = vld [vmem:[#allocation5 + $0x734] ss:$8 sps:$4 sm:$0xff]   ;;  %v3975_v18 = vld [vmem:[#allocation5 + $0x130] ss:$8 sps:$4 sm:$0xff]  }
  0x77   :  { %2877 = vmatprep.subr.bf16.mxu0 %v3899_v29  ;;  %v3978_v19 = vld [vmem:[#allocation5 + $0x730] ss:$8 sps:$4 sm:$0xff]   ;;  %v3983_v20 = vld [vmem:[#allocation5 + $0x144] ss:$8 sps:$4 sm:$0xff]   ;;  %v3981_v22 = vld [vmem:[#allocation5 + $0x140] ss:$8 sps:$4 sm:$0xff]  }
  0x78   :  { %v3986_v21 = vld [vmem:[#allocation5 + $0x744] ss:$8 sps:$4 sm:$0xff]   ;;  %v3984_v23 = vld [vmem:[#allocation5 + $0x740] ss:$8 sps:$4 sm:$0xff]   ;;  %v3989_v24 = vld [vmem:[#allocation5 + $0x154] ss:$8 sps:$4 sm:$0xff]  }
  0x79   :  { %2620 = vmatpush1.bf16.msra.mxu1 %v3901_v30  ;;  %v3992_v25 = vld [vmem:[#allocation5 + $0x754] ss:$8 sps:$4 sm:$0xff]   ;;  %v3987_v26 = vld [vmem:[#allocation5 + $0x150] ss:$8 sps:$4 sm:$0xff]   ;;  %v3995_v28 = vld [vmem:[#allocation5 + $0x164] ss:$8 sps:$4 sm:$0xff]  }
  0x7a   :  { %2878 = vmatpush1.bf16.msra.mxu0 %v3902_v31  ;;  %2621 = vmatprep.subr.bf16.mxu1 %v3903_v32  ;;  %v3990_v27 = vld [vmem:[#allocation5 + $0x750] ss:$8 sps:$4 sm:$0xff]   ;;  %v3998_v29 = vld [vmem:[#allocation5 + $0x764] ss:$8 sps:$4 sm:$0xff]   ;;  %v3993_v30 = vld [vmem:[#allocation5 + $0x160] ss:$8 sps:$4 sm:$0xff]  }
  0x7b   :  { %2879 = vmatprep.subr.bf16.mxu0 %v3905_v33  ;;  %v3996_v31 = vld [vmem:[#allocation5 + $0x760] ss:$8 sps:$4 sm:$0xff]   ;;  %v4001_v32 = vld [vmem:[#allocation5 + $0x174] ss:$8 sps:$4 sm:$0xff]   ;;  %vm2601_vm0 = vcmask 523264   ;;  %s4630_s4 = smov [#allocation11]  }
  0x7c   :  { %v4004_v33 = vld [vmem:[#allocation5 + $0x774] ss:$8 sps:$4 sm:$0xff]   ;;  %v4017_v48 = vld [vmem:[#allocation5 + $0x1a0] ss:$8 sps:$4 sm:$0xff]   ;;  %s3289_s6 = sshll.u32 %s4630_s4, 4  ;;  %s3290_s6 = int_to_ptr.vmem [resolvable:$true] %s3289_s6 }
  0x7d   :  { %2622 = vmatpush1.bf16.msra.mxu1 %v3907_v34  ;;  %v4055_v34 = vld [vmem:[#allocation2 + $0xc] ss:$100 sps:$4 sm:$0xff]   ;;  %v4028_v51 = vld [vmem:[#allocation5 + $0x7b4] ss:$8 sps:$4 sm:$0xff]   ;;  %s4590_s7 = scalar_lea.vmem %s3290_s6, 256  ;;  %p4595_p13 = scmp.lt.s32.totalorder %s3290_s6, %s3290_s6 }
  0x7e   :  { %2880 = vmatpush1.bf16.msra.mxu0 %v3908_v35  ;;  %2623 = vmatprep.subr.bf16.mxu1 %v3909_v36  ;;  %v3999_v35 = vld [vmem:[#allocation5 + $0x170] ss:$8 sps:$4 sm:$0xff]   ;;  %p4591_p12 = scmp.ne.s32.totalorder %s3290_s6, %s4590_s7  ;;  %p4596_p0 = scmp.lt.s32.totalorder %s4590_s7, %s4590_s7 }
  0x7f   :  { %2881 = vmatprep.subr.bf16.mxu0 %v3911_v37  ;;  %v4002_v36 = vld [vmem:[#allocation5 + $0x770] ss:$8 sps:$4 sm:$0xff]  }
  0x80   :  { %v4061_v37 = vld [vmem:[#allocation2 + $0x3c] ss:$100 sps:$4 sm:$0xff]   ;;  %p4597_p1 = por %p4596_p0, %p4595_p13 }
  0x81   :  { %2624 = vmatpush1.bf16.msra.mxu1 %v3913_v38  ;;  %v4007_v38 = vld [vmem:[#allocation5 + $0x184] ss:$8 sps:$4 sm:$0xff]  }
  0x82   :  { %2882 = vmatpush1.bf16.msra.mxu0 %v3914_v39  ;;  %2625 = vmatprep.subr.bf16.mxu1 %v3915_v40  ;;  %v4010_v39 = vld [vmem:[#allocation5 + $0x784] ss:$8 sps:$4 sm:$0xff]   ;;  %v4005_v40 = vld [vmem:[#allocation5 + $0x180] ss:$8 sps:$4 sm:$0xff]   ;;  %p4598_p2 = pnand %p4597_p1, %p4591_p12 }
  0x83   :  { %2883 = vmatprep.subr.bf16.mxu0 %v3917_v41  ;;  %v4008_v41 = vld [vmem:[#allocation5 + $0x780] ss:$8 sps:$4 sm:$0xff]  }
  0x85   :  { %2626 = vmatpush1.bf16.msra.mxu1 %v3919_v42  ;;  %v4013_v42 = vld [vmem:[#allocation5 + $0x194] ss:$8 sps:$4 sm:$0xff]  }
  0x86   :  { %2884 = vmatpush1.bf16.msra.mxu0 %v3920_v43  ;;  %2627 = vmatprep.subr.bf16.mxu1 %v3921_v44  ;;  %v4016_v43 = vld [vmem:[#allocation5 + $0x794] ss:$8 sps:$4 sm:$0xff]   ;;  %v4011_v44 = vld [vmem:[#allocation5 + $0x190] ss:$8 sps:$4 sm:$0xff]  }
  0x87   :  { %2885 = vmatprep.subr.bf16.mxu0 %v3923_v45  ;;  %v4014_v45 = vld [vmem:[#allocation5 + $0x790] ss:$8 sps:$4 sm:$0xff]  }
  0x89   :  { %2628 = vmatpush1.bf16.msra.mxu1 %v3925_v46  ;;  %v4019_v46 = vld [vmem:[#allocation5 + $0x1a4] ss:$8 sps:$4 sm:$0xff]  }
  0x8a   :  { %2886 = vmatpush1.bf16.msra.mxu0 %v3926_v47  ;;  %2629 = vmatprep.subr.bf16.mxu1 %v3927_v49  ;;  %v4022_v47 = vld [vmem:[#allocation5 + $0x7a4] ss:$8 sps:$4 sm:$0xff]   ;;  %v4020_v49 = vld [vmem:[#allocation5 + $0x7a0] ss:$8 sps:$4 sm:$0xff]  }
  0x8b   :  { %2887 = vmatprep.subr.bf16.mxu0 %v3929_v50  ;;  %v4025_v50 = vld [vmem:[#allocation5 + $0x1b4] ss:$8 sps:$4 sm:$0xff]  }
  0x8d   :  { %2630 = vmatpush1.bf16.msra.mxu1 %v3931_v52  ;;  %v4023_v52 = vld [vmem:[#allocation5 + $0x1b0] ss:$8 sps:$4 sm:$0xff]  }
  0x8e   :  { %2888 = vmatpush1.bf16.msra.mxu0 %v3932_v53  ;;  %2631 = vmatprep.subr.bf16.mxu1 %v3933_v54  ;;  %v4026_v53 = vld [vmem:[#allocation5 + $0x7b0] ss:$8 sps:$4 sm:$0xff]   ;;  %v4031_v54 = vld [vmem:[#allocation5 + $0x1c4] ss:$8 sps:$4 sm:$0xff]  }
  0x8f   :  { %2889 = vmatprep.subr.bf16.mxu0 %v3935_v55  ;;  %v4034_v55 = vld [vmem:[#allocation5 + $0x7c4] ss:$8 sps:$4 sm:$0xff]  }
  0x91   :  { %2632 = vmatpush1.bf16.msra.mxu1 %v3937_v56  ;;  %v4029_v56 = vld [vmem:[#allocation5 + $0x1c0] ss:$8 sps:$4 sm:$0xff]  }
  0x92   :  { %2890 = vmatpush1.bf16.msra.mxu0 %v3938_v57  ;;  %2633 = vmatprep.subr.bf16.mxu1 %v3939_v58  ;;  %v4032_v57 = vld [vmem:[#allocation5 + $0x7c0] ss:$8 sps:$4 sm:$0xff]   ;;  %v4037_v58 = vld [vmem:[#allocation5 + $0x1d4] ss:$8 sps:$4 sm:$0xff]  }
  0x93   :  { %2891 = vmatprep.subr.bf16.mxu0 %v3941_v59  ;;  %v4040_v59 = vld [vmem:[#allocation5 + $0x7d4] ss:$8 sps:$4 sm:$0xff]  }
  0x95   :  { %2634 = vmatpush1.bf16.msra.mxu1 %v3943_v60  ;;  %v4035_v60 = vld [vmem:[#allocation5 + $0x1d0] ss:$8 sps:$4 sm:$0xff]  }
  0x96   :  { %2892 = vmatpush1.bf16.msra.mxu0 %v3944_v61  ;;  %2635 = vmatprep.subr.bf16.mxu1 %v3945_v62  ;;  %v4038_v61 = vld [vmem:[#allocation5 + $0x7d0] ss:$8 sps:$4 sm:$0xff]   ;;  %v4043_v62 = vld [vmem:[#allocation5 + $0x1e4] ss:$8 sps:$4 sm:$0xff]  }
  0x97   :  { %2893 = vmatprep.subr.bf16.mxu0 %v3947_v63  ;;  %v4046_v63 = vld [vmem:[#allocation5 + $0x7e4] ss:$8 sps:$4 sm:$0xff]  }
  0x99   :  { %2636 = vmatpush1.bf16.msra.mxu1 %v3949_v0  ;;  %v4041_v0 = vld [vmem:[#allocation5 + $0x1e0] ss:$8 sps:$4 sm:$0xff]  }
  0x9a   :  { %2894 = vmatpush1.bf16.msra.mxu0 %v3950_v1  ;;  %2648 = vmatprep.subr.bf16.mxu1 %v3956_v2  ;;  %v4044_v1 = vld [vmem:[#allocation5 + $0x7e0] ss:$8 sps:$4 sm:$0xff]   ;;  %v4049_v2 = vld [vmem:[#allocation5 + $0x1f4] ss:$8 sps:$4 sm:$0xff]  }
  0x9b   :  { %2906 = vmatprep.subr.bf16.mxu0 %v3962_v3  ;;  %v4052_v3 = vld [vmem:[#allocation5 + $0x7f4] ss:$8 sps:$4 sm:$0xff]  }
  0x9c   :  { %2638 = vmatmul.mubr.bf16.vlgmr.msra.gmra.mrb[0].mxu1 %v3951_v4  ;;  %v4047_v4 = vld [vmem:[#allocation5 + $0x1f0] ss:$8 sps:$4 sm:$0xff]  }
  0x9d   :  { %2896 = vmatmul.mubr.bf16.vlgmr.msra.gmra.mrb[0].mxu0 %v3957_v6  ;;  %2649 = vmatpush1.bf16.msra.mxu1 %v3954_v5  ;;  %v4050_v5 = vld [vmem:[#allocation5 + $0x7f0] ss:$8 sps:$4 sm:$0xff]   ;;  %v4058_v6 = vld [vmem:[#allocation5 + $0x204] ss:$8 sps:$4 sm:$0xff]  }
  0x9e   :  { %2907 = vmatpush1.bf16.msra.mxu0 %v3960_v7  ;;  %2650 = vmatprep.subr.bf16.mxu1 %v3965_v8  ;;  %v4064_v7 = vld [vmem:[#allocation5 + $0x804] ss:$8 sps:$4 sm:$0xff]  }
  0x9f   :  { %2908 = vmatprep.subr.bf16.mxu0 %v3968_v9  ;;  %2680 = vmatprep.mubr.bf16.mxu1 %v4055_v34  ;;  %v4053_v8 = vld [vmem:[#allocation2 + $0x8] ss:$100 sps:$4 sm:$0xff]  }
  0xa0   :  { %2938 = vmatprep.mubr.bf16.mxu0 %v4061_v37  ;;  %v4056_v9 = vld [vmem:[#allocation5 + $0x200] ss:$8 sps:$4 sm:$0xff]   ;;  %v4097_v34 = vld [vmem:[#allocation5 + $0x264] ss:$8 sps:$4 sm:$0xff]  }
  0xa1   :  { %2651 = vmatpush1.bf16.msra.mxu1 %v3963_v10  ;;  %v4059_v10 = vld [vmem:[#allocation2 + $0x38] ss:$100 sps:$4 sm:$0xff]   ;;  %v4098_v37 = vld [vmem:[#allocation5 + $0x860] ss:$8 sps:$4 sm:$0xff]  }
  0xa2   :  { %2909 = vmatpush1.bf16.msra.mxu0 %v3966_v11  ;;  %2652 = vmatprep.subr.bf16.mxu1 %v3971_v12  ;;  %v4062_v11 = vld [vmem:[#allocation5 + $0x800] ss:$8 sps:$4 sm:$0xff]   ;;  %v4067_v12 = vld [vmem:[#allocation5 + $0x214] ss:$8 sps:$4 sm:$0xff]  }
  0xa3   :  { %2910 = vmatprep.subr.bf16.mxu0 %v3974_v13  ;;  %v4070_v13 = vld [vmem:[#allocation5 + $0x814] ss:$8 sps:$4 sm:$0xff]  }
  0xa5   :  { %2653 = vmatpush1.bf16.msra.mxu1 %v3969_v14  ;;  %v4065_v14 = vld [vmem:[#allocation5 + $0x210] ss:$8 sps:$4 sm:$0xff]  }
  0xa6   :  { %2911 = vmatpush1.bf16.msra.mxu0 %v3972_v15  ;;  %2654 = vmatprep.subr.bf16.mxu1 %v3977_v16  ;;  %v4068_v15 = vld [vmem:[#allocation5 + $0x810] ss:$8 sps:$4 sm:$0xff]   ;;  %v4073_v16 = vld [vmem:[#allocation5 + $0x224] ss:$8 sps:$4 sm:$0xff]  }
  0xa7   :  { %2912 = vmatprep.subr.bf16.mxu0 %v3980_v17  ;;  %v4076_v17 = vld [vmem:[#allocation5 + $0x824] ss:$8 sps:$4 sm:$0xff]  }
  0xa9   :  { %2655 = vmatpush1.bf16.msra.mxu1 %v3975_v18  ;;  %v4071_v18 = vld [vmem:[#allocation5 + $0x220] ss:$8 sps:$4 sm:$0xff]  }
  0xaa   :  { %2913 = vmatpush1.bf16.msra.mxu0 %v3978_v19  ;;  %2656 = vmatprep.subr.bf16.mxu1 %v3983_v20  ;;  %v4157_v19 = vld [vmem:[#allocation2 + $0x14] ss:$100 sps:$4 sm:$0xff]   ;;  %v4074_v20 = vld [vmem:[#allocation5 + $0x820] ss:$8 sps:$4 sm:$0xff]  }
  0xab   :  { %2914 = vmatprep.subr.bf16.mxu0 %v3986_v21  ;;  %v4079_v21 = vld [vmem:[#allocation5 + $0x234] ss:$8 sps:$4 sm:$0xff]  }
  0xad   :  { %2657 = vmatpush1.bf16.msra.mxu1 %v3981_v22  ;;  %v4082_v22 = vld [vmem:[#allocation5 + $0x834] ss:$8 sps:$4 sm:$0xff]  }
  0xae   :  { %2915 = vmatpush1.bf16.msra.mxu0 %v3984_v23  ;;  %2658 = vmatprep.subr.bf16.mxu1 %v3989_v24  ;;  %v4163_v23 = vld [vmem:[#allocation2 + $0x44] ss:$100 sps:$4 sm:$0xff]   ;;  %v4077_v24 = vld [vmem:[#allocation5 + $0x230] ss:$8 sps:$4 sm:$0xff]  }
  0xaf   :  { %2916 = vmatprep.subr.bf16.mxu0 %v3992_v25  ;;  %v4080_v25 = vld [vmem:[#allocation5 + $0x830] ss:$8 sps:$4 sm:$0xff]  }
  0xb1   :  { %2659 = vmatpush1.bf16.msra.mxu1 %v3987_v26  ;;  %v4085_v26 = vld [vmem:[#allocation5 + $0x244] ss:$8 sps:$4 sm:$0xff]  }
  0xb2   :  { %2917 = vmatpush1.bf16.msra.mxu0 %v3990_v27  ;;  %2660 = vmatprep.subr.bf16.mxu1 %v3995_v28  ;;  %v4088_v27 = vld [vmem:[#allocation5 + $0x844] ss:$8 sps:$4 sm:$0xff]   ;;  %v4083_v28 = vld [vmem:[#allocation5 + $0x240] ss:$8 sps:$4 sm:$0xff]  }
  0xb3   :  { %2918 = vmatprep.subr.bf16.mxu0 %v3998_v29  ;;  %v4086_v29 = vld [vmem:[#allocation5 + $0x840] ss:$8 sps:$4 sm:$0xff]  }
  0xb5   :  { %2661 = vmatpush1.bf16.msra.mxu1 %v3993_v30  ;;  %v4091_v30 = vld [vmem:[#allocation5 + $0x254] ss:$8 sps:$4 sm:$0xff]  }
  0xb6   :  { %2919 = vmatpush1.bf16.msra.mxu0 %v3996_v31  ;;  %2662 = vmatprep.subr.bf16.mxu1 %v4001_v32  ;;  %v4094_v31 = vld [vmem:[#allocation5 + $0x854] ss:$8 sps:$4 sm:$0xff]   ;;  %v4089_v32 = vld [vmem:[#allocation5 + $0x250] ss:$8 sps:$4 sm:$0xff]  }
  0xb7   :  { %2920 = vmatprep.subr.bf16.mxu0 %v4004_v33  ;;  %v4092_v33 = vld [vmem:[#allocation5 + $0x850] ss:$8 sps:$4 sm:$0xff]  }
  0xb9   :  { %2663 = vmatpush1.bf16.msra.mxu1 %v3999_v35  ;;  %v4100_v35 = vld [vmem:[#allocation5 + $0x864] ss:$8 sps:$4 sm:$0xff]  }
  0xba   :  { %2921 = vmatpush1.bf16.msra.mxu0 %v4002_v36  ;;  %2664 = vmatprep.subr.bf16.mxu1 %v4007_v38  ;;  %v4095_v36 = vld [vmem:[#allocation5 + $0x260] ss:$8 sps:$4 sm:$0xff]   ;;  %v4103_v38 = vld [vmem:[#allocation5 + $0x274] ss:$8 sps:$4 sm:$0xff]  }
  0xbb   :  { %2922 = vmatprep.subr.bf16.mxu0 %v4010_v39  ;;  %v4106_v39 = vld [vmem:[#allocation5 + $0x874] ss:$8 sps:$4 sm:$0xff]  }
  0xbd   :  { %2665 = vmatpush1.bf16.msra.mxu1 %v4005_v40  ;;  %v4101_v40 = vld [vmem:[#allocation5 + $0x270] ss:$8 sps:$4 sm:$0xff]  }
  0xbe   :  { %2923 = vmatpush1.bf16.msra.mxu0 %v4008_v41  ;;  %2666 = vmatprep.subr.bf16.mxu1 %v4013_v42  ;;  %v4104_v41 = vld [vmem:[#allocation5 + $0x870] ss:$8 sps:$4 sm:$0xff]   ;;  %v4109_v42 = vld [vmem:[#allocation5 + $0x284] ss:$8 sps:$4 sm:$0xff]  }
  0xbf   :  { %2924 = vmatprep.subr.bf16.mxu0 %v4016_v43  ;;  %v4112_v43 = vld [vmem:[#allocation5 + $0x884] ss:$8 sps:$4 sm:$0xff]  }
  0xc1   :  { %2667 = vmatpush1.bf16.msra.mxu1 %v4011_v44  ;;  %v4107_v44 = vld [vmem:[#allocation5 + $0x280] ss:$8 sps:$4 sm:$0xff]  }
  0xc2   :  { %2925 = vmatpush1.bf16.msra.mxu0 %v4014_v45  ;;  %2668 = vmatprep.subr.bf16.mxu1 %v4019_v46  ;;  %v4110_v45 = vld [vmem:[#allocation5 + $0x880] ss:$8 sps:$4 sm:$0xff]   ;;  %v4115_v46 = vld [vmem:[#allocation5 + $0x294] ss:$8 sps:$4 sm:$0xff]  }
  0xc3   :  { %2926 = vmatprep.subr.bf16.mxu0 %v4022_v47  ;;  %v4118_v47 = vld [vmem:[#allocation5 + $0x894] ss:$8 sps:$4 sm:$0xff]  }
  0xc5   :  { %2669 = vmatpush1.bf16.msra.mxu1 %v4017_v48  ;;  %v4113_v48 = vld [vmem:[#allocation5 + $0x290] ss:$8 sps:$4 sm:$0xff]  }
  0xc6   :  { %2927 = vmatpush1.bf16.msra.mxu0 %v4020_v49  ;;  %2670 = vmatprep.subr.bf16.mxu1 %v4025_v50  ;;  %v4116_v49 = vld [vmem:[#allocation5 + $0x890] ss:$8 sps:$4 sm:$0xff]   ;;  %v4121_v50 = vld [vmem:[#allocation5 + $0x2a4] ss:$8 sps:$4 sm:$0xff]  }
  0xc7   :  { %2928 = vmatprep.subr.bf16.mxu0 %v4028_v51  ;;  %v4124_v51 = vld [vmem:[#allocation5 + $0x8a4] ss:$8 sps:$4 sm:$0xff]  }
  0xc9   :  { %2671 = vmatpush1.bf16.msra.mxu1 %v4023_v52  ;;  %v4119_v52 = vld [vmem:[#allocation5 + $0x2a0] ss:$8 sps:$4 sm:$0xff]  }
  0xca   :  { %2929 = vmatpush1.bf16.msra.mxu0 %v4026_v53  ;;  %2672 = vmatprep.subr.bf16.mxu1 %v4031_v54  ;;  %v4122_v53 = vld [vmem:[#allocation5 + $0x8a0] ss:$8 sps:$4 sm:$0xff]   ;;  %v4127_v54 = vld [vmem:[#allocation5 + $0x2b4] ss:$8 sps:$4 sm:$0xff]  }
  0xcb   :  { %2930 = vmatprep.subr.bf16.mxu0 %v4034_v55  ;;  %v4130_v55 = vld [vmem:[#allocation5 + $0x8b4] ss:$8 sps:$4 sm:$0xff]  }
  0xcd   :  { %2673 = vmatpush1.bf16.msra.mxu1 %v4029_v56  ;;  %v4125_v56 = vld [vmem:[#allocation5 + $0x2b0] ss:$8 sps:$4 sm:$0xff]  }
  0xce   :  { %2931 = vmatpush1.bf16.msra.mxu0 %v4032_v57  ;;  %2674 = vmatprep.subr.bf16.mxu1 %v4037_v58  ;;  %v4128_v57 = vld [vmem:[#allocation5 + $0x8b0] ss:$8 sps:$4 sm:$0xff]   ;;  %v4133_v58 = vld [vmem:[#allocation5 + $0x2c4] ss:$8 sps:$4 sm:$0xff]  }
  0xcf   :  { %2932 = vmatprep.subr.bf16.mxu0 %v4040_v59  ;;  %v4136_v59 = vld [vmem:[#allocation5 + $0x8c4] ss:$8 sps:$4 sm:$0xff]  }
  0xd1   :  { %2675 = vmatpush1.bf16.msra.mxu1 %v4035_v60  ;;  %v4131_v60 = vld [vmem:[#allocation5 + $0x2c0] ss:$8 sps:$4 sm:$0xff]  }
  0xd2   :  { %2933 = vmatpush1.bf16.msra.mxu0 %v4038_v61  ;;  %2676 = vmatprep.subr.bf16.mxu1 %v4043_v62  ;;  %v4134_v61 = vld [vmem:[#allocation5 + $0x8c0] ss:$8 sps:$4 sm:$0xff]   ;;  %v4139_v62 = vld [vmem:[#allocation5 + $0x2d4] ss:$8 sps:$4 sm:$0xff]  }
  0xd3   :  { %2934 = vmatprep.subr.bf16.mxu0 %v4046_v63  ;;  %v4142_v63 = vld [vmem:[#allocation5 + $0x8d4] ss:$8 sps:$4 sm:$0xff]  }
  0xd5   :  { %2677 = vmatpush1.bf16.msra.mxu1 %v4041_v0  ;;  %v4137_v0 = vld [vmem:[#allocation5 + $0x2d0] ss:$8 sps:$4 sm:$0xff]  }
  0xd6   :  { %2935 = vmatpush1.bf16.msra.mxu0 %v4044_v1  ;;  %2678 = vmatprep.subr.bf16.mxu1 %v4049_v2  ;;  %v4140_v1 = vld [vmem:[#allocation5 + $0x8d0] ss:$8 sps:$4 sm:$0xff]   ;;  %v4145_v2 = vld [vmem:[#allocation5 + $0x2e4] ss:$8 sps:$4 sm:$0xff]  }
  0xd7   :  { %2936 = vmatprep.subr.bf16.mxu0 %v4052_v3  ;;  %v4148_v3 = vld [vmem:[#allocation5 + $0x8e4] ss:$8 sps:$4 sm:$0xff]  }
  0xd9   :  { %2679 = vmatpush1.bf16.msra.mxu1 %v4047_v4  ;;  %v4143_v4 = vld [vmem:[#allocation5 + $0x2e0] ss:$8 sps:$4 sm:$0xff]  }
  0xda   :  { %2937 = vmatpush1.bf16.msra.mxu0 %v4050_v5  ;;  %2691 = vmatprep.subr.bf16.mxu1 %v4058_v6  ;;  %v4146_v5 = vld [vmem:[#allocation5 + $0x8e0] ss:$8 sps:$4 sm:$0xff]   ;;  %v4151_v6 = vld [vmem:[#allocation5 + $0x2f4] ss:$8 sps:$4 sm:$0xff]  }
  0xdb   :  { %2949 = vmatprep.subr.bf16.mxu0 %v4064_v7  ;;  %v4154_v7 = vld [vmem:[#allocation5 + $0x8f4] ss:$8 sps:$4 sm:$0xff]  }
  0xdc   :  { %2681 = vmatmul.mubr.bf16.vlgmr.msra.gmra.mrb[0].mxu1 %v4053_v8  ;;  %v4149_v8 = vld [vmem:[#allocation5 + $0x2f0] ss:$8 sps:$4 sm:$0xff]  }
  0xdd   :  { %2939 = vmatmul.mubr.bf16.vlgmr.msra.gmra.mrb[0].mxu0 %v4059_v10  ;;  %2692 = vmatpush1.bf16.msra.mxu1 %v4056_v9  ;;  %v4152_v9 = vld [vmem:[#allocation5 + $0x8f0] ss:$8 sps:$4 sm:$0xff]   ;;  %v4160_v10 = vld [vmem:[#allocation5 + $0x304] ss:$8 sps:$4 sm:$0xff]  }
  0xde   :  { %2950 = vmatpush1.bf16.msra.mxu0 %v4062_v11  ;;  %2693 = vmatprep.subr.bf16.mxu1 %v4067_v12  ;;  %v4166_v11 = vld [vmem:[#allocation5 + $0x904] ss:$8 sps:$4 sm:$0xff]  }
  0xdf   :  { %2951 = vmatprep.subr.bf16.mxu0 %v4070_v13  ;;  %2723 = vmatprep.mubr.bf16.mxu1 %v4157_v19  ;;  %v4155_v12 = vld [vmem:[#allocation2 + $0x10] ss:$100 sps:$4 sm:$0xff]  }
  0xe0   :  { %2981 = vmatprep.mubr.bf16.mxu0 %v4163_v23  ;;  %v4158_v13 = vld [vmem:[#allocation5 + $0x300] ss:$8 sps:$4 sm:$0xff]   ;;  %v4178_v23 = vld [vmem:[#allocation5 + $0x924] ss:$8 sps:$4 sm:$0xff]  }
  0xe1   :  { %2694 = vmatpush1.bf16.msra.mxu1 %v4065_v14  ;;  %v4161_v14 = vld [vmem:[#allocation2 + $0x40] ss:$100 sps:$4 sm:$0xff]   ;;  %v4265_v19 = vld [vmem:[#allocation2 + $0x4c] ss:$100 sps:$4 sm:$0xff]  }
  0xe2   :  { %2952 = vmatpush1.bf16.msra.mxu0 %v4068_v15  ;;  %2695 = vmatprep.subr.bf16.mxu1 %v4073_v16  ;;  %v4164_v15 = vld [vmem:[#allocation5 + $0x900] ss:$8 sps:$4 sm:$0xff]   ;;  %v4169_v16 = vld [vmem:[#allocation5 + $0x314] ss:$8 sps:$4 sm:$0xff]  }
  0xe3   :  { %2953 = vmatprep.subr.bf16.mxu0 %v4076_v17  ;;  %v4172_v17 = vld [vmem:[#allocation5 + $0x914] ss:$8 sps:$4 sm:$0xff]  }
  0xe5   :  { %2696 = vmatpush1.bf16.msra.mxu1 %v4071_v18  ;;  %v4259_v18 = vld [vmem:[#allocation2 + $0x1c] ss:$100 sps:$4 sm:$0xff]  }
  0xe6   :  { %2954 = vmatpush1.bf16.msra.mxu0 %v4074_v20  ;;  %2697 = vmatprep.subr.bf16.mxu1 %v4079_v21  ;;  %v4167_v20 = vld [vmem:[#allocation5 + $0x310] ss:$8 sps:$4 sm:$0xff]  }
  0xe7   :  { %2955 = vmatprep.subr.bf16.mxu0 %v4082_v22  ;;  %v4170_v21 = vld [vmem:[#allocation5 + $0x910] ss:$8 sps:$4 sm:$0xff]   ;;  %v4175_v22 = vld [vmem:[#allocation5 + $0x324] ss:$8 sps:$4 sm:$0xff]  }
  0xe9   :  { %2698 = vmatpush1.bf16.msra.mxu1 %v4077_v24  ;;  %v4173_v24 = vld [vmem:[#allocation5 + $0x320] ss:$8 sps:$4 sm:$0xff]  }
  0xea   :  { %2956 = vmatpush1.bf16.msra.mxu0 %v4080_v25  ;;  %2699 = vmatprep.subr.bf16.mxu1 %v4085_v26  ;;  %v4176_v25 = vld [vmem:[#allocation5 + $0x920] ss:$8 sps:$4 sm:$0xff]   ;;  %v4181_v26 = vld [vmem:[#allocation5 + $0x334] ss:$8 sps:$4 sm:$0xff]  }
  0xeb   :  { %2957 = vmatprep.subr.bf16.mxu0 %v4088_v27  ;;  %v4184_v27 = vld [vmem:[#allocation5 + $0x934] ss:$8 sps:$4 sm:$0xff]  }
  0xed   :  { %2700 = vmatpush1.bf16.msra.mxu1 %v4083_v28  ;;  %v4179_v28 = vld [vmem:[#allocation5 + $0x330] ss:$8 sps:$4 sm:$0xff]  }
  0xee   :  { %2958 = vmatpush1.bf16.msra.mxu0 %v4086_v29  ;;  %2701 = vmatprep.subr.bf16.mxu1 %v4091_v30  ;;  %v4182_v29 = vld [vmem:[#allocation5 + $0x930] ss:$8 sps:$4 sm:$0xff]   ;;  %v4187_v30 = vld [vmem:[#allocation5 + $0x344] ss:$8 sps:$4 sm:$0xff]  }
  0xef   :  { %2959 = vmatprep.subr.bf16.mxu0 %v4094_v31  ;;  %v4190_v31 = vld [vmem:[#allocation5 + $0x944] ss:$8 sps:$4 sm:$0xff]  }
  0xf1   :  { %2702 = vmatpush1.bf16.msra.mxu1 %v4089_v32  ;;  %v4185_v32 = vld [vmem:[#allocation5 + $0x340] ss:$8 sps:$4 sm:$0xff]  }
  0xf2   :  { %2960 = vmatpush1.bf16.msra.mxu0 %v4092_v33  ;;  %2703 = vmatprep.subr.bf16.mxu1 %v4097_v34  ;;  %v4188_v33 = vld [vmem:[#allocation5 + $0x940] ss:$8 sps:$4 sm:$0xff]   ;;  %v4193_v34 = vld [vmem:[#allocation5 + $0x354] ss:$8 sps:$4 sm:$0xff]  }
  0xf3   :  { %2961 = vmatprep.subr.bf16.mxu0 %v4100_v35  ;;  %v4196_v35 = vld [vmem:[#allocation5 + $0x954] ss:$8 sps:$4 sm:$0xff]  }
  0xf5   :  { %2704 = vmatpush1.bf16.msra.mxu1 %v4095_v36  ;;  %v4191_v36 = vld [vmem:[#allocation5 + $0x350] ss:$8 sps:$4 sm:$0xff]  }
  0xf6   :  { %2962 = vmatpush1.bf16.msra.mxu0 %v4098_v37  ;;  %2705 = vmatprep.subr.bf16.mxu1 %v4103_v38  ;;  %v4194_v37 = vld [vmem:[#allocation5 + $0x950] ss:$8 sps:$4 sm:$0xff]   ;;  %v4199_v38 = vld [vmem:[#allocation5 + $0x364] ss:$8 sps:$4 sm:$0xff]  }
  0xf7   :  { %2963 = vmatprep.subr.bf16.mxu0 %v4106_v39  ;;  %v4202_v39 = vld [vmem:[#allocation5 + $0x964] ss:$8 sps:$4 sm:$0xff]  }
  0xf9   :  { %2706 = vmatpush1.bf16.msra.mxu1 %v4101_v40  ;;  %v4197_v40 = vld [vmem:[#allocation5 + $0x360] ss:$8 sps:$4 sm:$0xff]  }
  0xfa   :  { %2964 = vmatpush1.bf16.msra.mxu0 %v4104_v41  ;;  %2707 = vmatprep.subr.bf16.mxu1 %v4109_v42  ;;  %v4200_v41 = vld [vmem:[#allocation5 + $0x960] ss:$8 sps:$4 sm:$0xff]   ;;  %v4205_v42 = vld [vmem:[#allocation5 + $0x374] ss:$8 sps:$4 sm:$0xff]  }
  0xfb   :  { %2965 = vmatprep.subr.bf16.mxu0 %v4112_v43  ;;  %v4208_v43 = vld [vmem:[#allocation5 + $0x974] ss:$8 sps:$4 sm:$0xff]  }
  0xfd   :  { %2708 = vmatpush1.bf16.msra.mxu1 %v4107_v44  ;;  %v4203_v44 = vld [vmem:[#allocation5 + $0x370] ss:$8 sps:$4 sm:$0xff]  }
  0xfe   :  { %2966 = vmatpush1.bf16.msra.mxu0 %v4110_v45  ;;  %2709 = vmatprep.subr.bf16.mxu1 %v4115_v46  ;;  %v4206_v45 = vld [vmem:[#allocation5 + $0x970] ss:$8 sps:$4 sm:$0xff]   ;;  %v4211_v46 = vld [vmem:[#allocation5 + $0x384] ss:$8 sps:$4 sm:$0xff]  }
  0xff   :  { %2967 = vmatprep.subr.bf16.mxu0 %v4118_v47  ;;  %v4214_v47 = vld [vmem:[#allocation5 + $0x984] ss:$8 sps:$4 sm:$0xff]  }
 0x101   :  { %2710 = vmatpush1.bf16.msra.mxu1 %v4113_v48  ;;  %v4209_v48 = vld [vmem:[#allocation5 + $0x380] ss:$8 sps:$4 sm:$0xff]  }
 0x102   :  { %2968 = vmatpush1.bf16.msra.mxu0 %v4116_v49  ;;  %2711 = vmatprep.subr.bf16.mxu1 %v4121_v50  ;;  %v4212_v49 = vld [vmem:[#allocation5 + $0x980] ss:$8 sps:$4 sm:$0xff]   ;;  %v4217_v50 = vld [vmem:[#allocation5 + $0x394] ss:$8 sps:$4 sm:$0xff]  }
 0x103   :  { %2969 = vmatprep.subr.bf16.mxu0 %v4124_v51  ;;  %v4220_v51 = vld [vmem:[#allocation5 + $0x994] ss:$8 sps:$4 sm:$0xff]  }
 0x105   :  { %2712 = vmatpush1.bf16.msra.mxu1 %v4119_v52  ;;  %v4215_v52 = vld [vmem:[#allocation5 + $0x390] ss:$8 sps:$4 sm:$0xff]  }
 0x106   :  { %2970 = vmatpush1.bf16.msra.mxu0 %v4122_v53  ;;  %2713 = vmatprep.subr.bf16.mxu1 %v4127_v54  ;;  %v4218_v53 = vld [vmem:[#allocation5 + $0x990] ss:$8 sps:$4 sm:$0xff]   ;;  %v4223_v54 = vld [vmem:[#allocation5 + $0x3a4] ss:$8 sps:$4 sm:$0xff]  }
 0x107   :  { %2971 = vmatprep.subr.bf16.mxu0 %v4130_v55  ;;  %v4226_v55 = vld [vmem:[#allocation5 + $0x9a4] ss:$8 sps:$4 sm:$0xff]  }
 0x109   :  { %2714 = vmatpush1.bf16.msra.mxu1 %v4125_v56  ;;  %v4221_v56 = vld [vmem:[#allocation5 + $0x3a0] ss:$8 sps:$4 sm:$0xff]  }
 0x10a   :  { %2972 = vmatpush1.bf16.msra.mxu0 %v4128_v57  ;;  %2715 = vmatprep.subr.bf16.mxu1 %v4133_v58  ;;  %v4224_v57 = vld [vmem:[#allocation5 + $0x9a0] ss:$8 sps:$4 sm:$0xff]   ;;  %v4229_v58 = vld [vmem:[#allocation5 + $0x3b4] ss:$8 sps:$4 sm:$0xff]  }
 0x10b   :  { %2973 = vmatprep.subr.bf16.mxu0 %v4136_v59  ;;  %v4232_v59 = vld [vmem:[#allocation5 + $0x9b4] ss:$8 sps:$4 sm:$0xff]  }
 0x10d   :  { %2716 = vmatpush1.bf16.msra.mxu1 %v4131_v60  ;;  %v4227_v60 = vld [vmem:[#allocation5 + $0x3b0] ss:$8 sps:$4 sm:$0xff]  }
 0x10e   :  { %2974 = vmatpush1.bf16.msra.mxu0 %v4134_v61  ;;  %2717 = vmatprep.subr.bf16.mxu1 %v4139_v62  ;;  %v4230_v61 = vld [vmem:[#allocation5 + $0x9b0] ss:$8 sps:$4 sm:$0xff]   ;;  %v4235_v62 = vld [vmem:[#allocation5 + $0x3c4] ss:$8 sps:$4 sm:$0xff]  }
 0x10f   :  { %2975 = vmatprep.subr.bf16.mxu0 %v4142_v63  ;;  %v4238_v63 = vld [vmem:[#allocation5 + $0x9c4] ss:$8 sps:$4 sm:$0xff]  }
 0x111   :  { %2718 = vmatpush1.bf16.msra.mxu1 %v4137_v0  ;;  %v4233_v0 = vld [vmem:[#allocation5 + $0x3c0] ss:$8 sps:$4 sm:$0xff]  }
 0x112   :  { %2976 = vmatpush1.bf16.msra.mxu0 %v4140_v1  ;;  %2719 = vmatprep.subr.bf16.mxu1 %v4145_v2  ;;  %v4236_v1 = vld [vmem:[#allocation5 + $0x9c0] ss:$8 sps:$4 sm:$0xff]   ;;  %v4241_v2 = vld [vmem:[#allocation5 + $0x3d4] ss:$8 sps:$4 sm:$0xff]  }
 0x113   :  { %2977 = vmatprep.subr.bf16.mxu0 %v4148_v3  ;;  %v4244_v3 = vld [vmem:[#allocation5 + $0x9d4] ss:$8 sps:$4 sm:$0xff]  }
 0x115   :  { %2720 = vmatpush1.bf16.msra.mxu1 %v4143_v4  ;;  %v4239_v4 = vld [vmem:[#allocation5 + $0x3d0] ss:$8 sps:$4 sm:$0xff]  }
 0x116   :  { %2978 = vmatpush1.bf16.msra.mxu0 %v4146_v5  ;;  %2721 = vmatprep.subr.bf16.mxu1 %v4151_v6  ;;  %v4242_v5 = vld [vmem:[#allocation5 + $0x9d0] ss:$8 sps:$4 sm:$0xff]   ;;  %v4247_v6 = vld [vmem:[#allocation5 + $0x3e4] ss:$8 sps:$4 sm:$0xff]  }
 0x117   :  { %2979 = vmatprep.subr.bf16.mxu0 %v4154_v7  ;;  %v4250_v7 = vld [vmem:[#allocation5 + $0x9e4] ss:$8 sps:$4 sm:$0xff]  }
 0x119   :  { %2722 = vmatpush1.bf16.msra.mxu1 %v4149_v8  ;;  %v4245_v8 = vld [vmem:[#allocation5 + $0x3e0] ss:$8 sps:$4 sm:$0xff]  }
 0x11a   :  { %2980 = vmatpush1.bf16.msra.mxu0 %v4152_v9  ;;  %2734 = vmatprep.subr.bf16.mxu1 %v4160_v10  ;;  %v4248_v9 = vld [vmem:[#allocation5 + $0x9e0] ss:$8 sps:$4 sm:$0xff]   ;;  %v4253_v10 = vld [vmem:[#allocation5 + $0x3f4] ss:$8 sps:$4 sm:$0xff]  }
 0x11b   :  { %2992 = vmatprep.subr.bf16.mxu0 %v4166_v11  ;;  %v4256_v11 = vld [vmem:[#allocation5 + $0x9f4] ss:$8 sps:$4 sm:$0xff]  }
 0x11c   :  { %2724 = vmatmul.mubr.bf16.vlgmr.msra.gmra.mrb[0].mxu1 %v4155_v12  ;;  %v4251_v12 = vld [vmem:[#allocation5 + $0x3f0] ss:$8 sps:$4 sm:$0xff]  }
 0x11d   :  { %2982 = vmatmul.mubr.bf16.vlgmr.msra.gmra.mrb[0].mxu0 %v4161_v14  ;;  %2735 = vmatpush1.bf16.msra.mxu1 %v4158_v13  ;;  %v4254_v13 = vld [vmem:[#allocation5 + $0x9f0] ss:$8 sps:$4 sm:$0xff]   ;;  %v4262_v14 = vld [vmem:[#allocation5 + $0x404] ss:$8 sps:$4 sm:$0xff]  }
 0x11e   :  { %2993 = vmatpush1.bf16.msra.mxu0 %v4164_v15  ;;  %2736 = vmatprep.subr.bf16.mxu1 %v4169_v16  ;;  %v4268_v15 = vld [vmem:[#allocation5 + $0xa04] ss:$8 sps:$4 sm:$0xff]   ;;  %v4257_v16 = vld [vmem:[#allocation2 + $0x18] ss:$100 sps:$4 sm:$0xff]  }
 0x11f   :  { %2994 = vmatprep.subr.bf16.mxu0 %v4172_v17  ;;  %2766 = vmatprep.mubr.bf16.mxu1 %v4259_v18  ;;  %v4260_v17 = vld [vmem:[#allocation5 + $0x400] ss:$8 sps:$4 sm:$0xff]  }
 0x120   :  { %3024 = vmatprep.mubr.bf16.mxu0 %v4265_v19  ;;  %v4263_v18 = vld [vmem:[#allocation2 + $0x48] ss:$100 sps:$4 sm:$0xff]  }
 0x121   :  { %2737 = vmatpush1.bf16.msra.mxu1 %v4167_v20  ;;  %v4266_v19 = vld [vmem:[#allocation5 + $0xa00] ss:$8 sps:$4 sm:$0xff]   ;;  %v4271_v20 = vld [vmem:[#allocation5 + $0x414] ss:$8 sps:$4 sm:$0xff]  }
 0x122   :  { %2995 = vmatpush1.bf16.msra.mxu0 %v4170_v21  ;;  %2738 = vmatprep.subr.bf16.mxu1 %v4175_v22  ;;  %v4274_v21 = vld [vmem:[#allocation5 + $0xa14] ss:$8 sps:$4 sm:$0xff]  }
 0x123   :  { %2996 = vmatprep.subr.bf16.mxu0 %v4178_v23  ;;  %v4361_v22 = vld [vmem:[#allocation2 + $0x24] ss:$100 sps:$4 sm:$0xff]   ;;  %v4367_v23 = vld [vmem:[#allocation2 + $0x54] ss:$100 sps:$4 sm:$0xff]  }
 0x125   :  { %2739 = vmatpush1.bf16.msra.mxu1 %v4173_v24  ;;  %v4269_v24 = vld [vmem:[#allocation5 + $0x410] ss:$8 sps:$4 sm:$0xff]  }
 0x126   :  { %2997 = vmatpush1.bf16.msra.mxu0 %v4176_v25  ;;  %2740 = vmatprep.subr.bf16.mxu1 %v4181_v26  ;;  %v4272_v25 = vld [vmem:[#allocation5 + $0xa10] ss:$8 sps:$4 sm:$0xff]   ;;  %v4277_v26 = vld [vmem:[#allocation5 + $0x424] ss:$8 sps:$4 sm:$0xff]  }
 0x127   :  { %2998 = vmatprep.subr.bf16.mxu0 %v4184_v27  ;;  %v4280_v27 = vld [vmem:[#allocation5 + $0xa24] ss:$8 sps:$4 sm:$0xff]  }
 0x129   :  { %2741 = vmatpush1.bf16.msra.mxu1 %v4179_v28  ;;  %v4275_v28 = vld [vmem:[#allocation5 + $0x420] ss:$8 sps:$4 sm:$0xff]  }
 0x12a   :  { %2999 = vmatpush1.bf16.msra.mxu0 %v4182_v29  ;;  %2742 = vmatprep.subr.bf16.mxu1 %v4187_v30  ;;  %v4278_v29 = vld [vmem:[#allocation5 + $0xa20] ss:$8 sps:$4 sm:$0xff]   ;;  %v4283_v30 = vld [vmem:[#allocation5 + $0x434] ss:$8 sps:$4 sm:$0xff]  }
 0x12b   :  { %3000 = vmatprep.subr.bf16.mxu0 %v4190_v31  ;;  %v4286_v31 = vld [vmem:[#allocation5 + $0xa34] ss:$8 sps:$4 sm:$0xff]  }
 0x12d   :  { %2743 = vmatpush1.bf16.msra.mxu1 %v4185_v32  ;;  %v4281_v32 = vld [vmem:[#allocation5 + $0x430] ss:$8 sps:$4 sm:$0xff]  }
 0x12e   :  { %3001 = vmatpush1.bf16.msra.mxu0 %v4188_v33  ;;  %2744 = vmatprep.subr.bf16.mxu1 %v4193_v34  ;;  %v4284_v33 = vld [vmem:[#allocation5 + $0xa30] ss:$8 sps:$4 sm:$0xff]   ;;  %v4289_v34 = vld [vmem:[#allocation5 + $0x444] ss:$8 sps:$4 sm:$0xff]  }
 0x12f   :  { %3002 = vmatprep.subr.bf16.mxu0 %v4196_v35  ;;  %v4292_v35 = vld [vmem:[#allocation5 + $0xa44] ss:$8 sps:$4 sm:$0xff]  }
 0x131   :  { %2745 = vmatpush1.bf16.msra.mxu1 %v4191_v36  ;;  %v4287_v36 = vld [vmem:[#allocation5 + $0x440] ss:$8 sps:$4 sm:$0xff]  }
 0x132   :  { %3003 = vmatpush1.bf16.msra.mxu0 %v4194_v37  ;;  %2746 = vmatprep.subr.bf16.mxu1 %v4199_v38  ;;  %v4290_v37 = vld [vmem:[#allocation5 + $0xa40] ss:$8 sps:$4 sm:$0xff]   ;;  %v4295_v38 = vld [vmem:[#allocation5 + $0x454] ss:$8 sps:$4 sm:$0xff]  }
 0x133   :  { %3004 = vmatprep.subr.bf16.mxu0 %v4202_v39  ;;  %v4298_v39 = vld [vmem:[#allocation5 + $0xa54] ss:$8 sps:$4 sm:$0xff]  }
 0x135   :  { %2747 = vmatpush1.bf16.msra.mxu1 %v4197_v40  ;;  %v4293_v40 = vld [vmem:[#allocation5 + $0x450] ss:$8 sps:$4 sm:$0xff]  }
 0x136   :  { %3005 = vmatpush1.bf16.msra.mxu0 %v4200_v41  ;;  %2748 = vmatprep.subr.bf16.mxu1 %v4205_v42  ;;  %v4296_v41 = vld [vmem:[#allocation5 + $0xa50] ss:$8 sps:$4 sm:$0xff]   ;;  %v4301_v42 = vld [vmem:[#allocation5 + $0x464] ss:$8 sps:$4 sm:$0xff]  }
 0x137   :  { %3006 = vmatprep.subr.bf16.mxu0 %v4208_v43  ;;  %v4304_v43 = vld [vmem:[#allocation5 + $0xa64] ss:$8 sps:$4 sm:$0xff]  }
 0x139   :  { %2749 = vmatpush1.bf16.msra.mxu1 %v4203_v44  ;;  %v4299_v44 = vld [vmem:[#allocation5 + $0x460] ss:$8 sps:$4 sm:$0xff]  }
 0x13a   :  { %3007 = vmatpush1.bf16.msra.mxu0 %v4206_v45  ;;  %2750 = vmatprep.subr.bf16.mxu1 %v4211_v46  ;;  %v4302_v45 = vld [vmem:[#allocation5 + $0xa60] ss:$8 sps:$4 sm:$0xff]   ;;  %v4307_v46 = vld [vmem:[#allocation5 + $0x474] ss:$8 sps:$4 sm:$0xff]  }
 0x13b   :  { %3008 = vmatprep.subr.bf16.mxu0 %v4214_v47  ;;  %v4310_v47 = vld [vmem:[#allocation5 + $0xa74] ss:$8 sps:$4 sm:$0xff]  }
 0x13d   :  { %2751 = vmatpush1.bf16.msra.mxu1 %v4209_v48  ;;  %v4305_v48 = vld [vmem:[#allocation5 + $0x470] ss:$8 sps:$4 sm:$0xff]  }
 0x13e   :  { %3009 = vmatpush1.bf16.msra.mxu0 %v4212_v49  ;;  %2752 = vmatprep.subr.bf16.mxu1 %v4217_v50  ;;  %v4308_v49 = vld [vmem:[#allocation5 + $0xa70] ss:$8 sps:$4 sm:$0xff]   ;;  %v4313_v50 = vld [vmem:[#allocation5 + $0x484] ss:$8 sps:$4 sm:$0xff]  }
 0x13f   :  { %3010 = vmatprep.subr.bf16.mxu0 %v4220_v51  ;;  %v4316_v51 = vld [vmem:[#allocation5 + $0xa84] ss:$8 sps:$4 sm:$0xff]  }
 0x141   :  { %2753 = vmatpush1.bf16.msra.mxu1 %v4215_v52  ;;  %v4311_v52 = vld [vmem:[#allocation5 + $0x480] ss:$8 sps:$4 sm:$0xff]  }
 0x142   :  { %3011 = vmatpush1.bf16.msra.mxu0 %v4218_v53  ;;  %2754 = vmatprep.subr.bf16.mxu1 %v4223_v54  ;;  %v4314_v53 = vld [vmem:[#allocation5 + $0xa80] ss:$8 sps:$4 sm:$0xff]   ;;  %v4319_v54 = vld [vmem:[#allocation5 + $0x494] ss:$8 sps:$4 sm:$0xff]  }
 0x143   :  { %3012 = vmatprep.subr.bf16.mxu0 %v4226_v55  ;;  %v4322_v55 = vld [vmem:[#allocation5 + $0xa94] ss:$8 sps:$4 sm:$0xff]  }
 0x145   :  { %2755 = vmatpush1.bf16.msra.mxu1 %v4221_v56  ;;  %v4317_v56 = vld [vmem:[#allocation5 + $0x490] ss:$8 sps:$4 sm:$0xff]  }
 0x146   :  { %3013 = vmatpush1.bf16.msra.mxu0 %v4224_v57  ;;  %2756 = vmatprep.subr.bf16.mxu1 %v4229_v58  ;;  %v4320_v57 = vld [vmem:[#allocation5 + $0xa90] ss:$8 sps:$4 sm:$0xff]   ;;  %v4325_v58 = vld [vmem:[#allocation5 + $0x4a4] ss:$8 sps:$4 sm:$0xff]  }
 0x147   :  { %3014 = vmatprep.subr.bf16.mxu0 %v4232_v59  ;;  %v4328_v59 = vld [vmem:[#allocation5 + $0xaa4] ss:$8 sps:$4 sm:$0xff]  }
 0x149   :  { %2757 = vmatpush1.bf16.msra.mxu1 %v4227_v60  ;;  %v4323_v60 = vld [vmem:[#allocation5 + $0x4a0] ss:$8 sps:$4 sm:$0xff]  }
 0x14a   :  { %3015 = vmatpush1.bf16.msra.mxu0 %v4230_v61  ;;  %2758 = vmatprep.subr.bf16.mxu1 %v4235_v62  ;;  %v4326_v61 = vld [vmem:[#allocation5 + $0xaa0] ss:$8 sps:$4 sm:$0xff]   ;;  %v4331_v62 = vld [vmem:[#allocation5 + $0x4b4] ss:$8 sps:$4 sm:$0xff]  }
 0x14b   :  { %3016 = vmatprep.subr.bf16.mxu0 %v4238_v63  ;;  %v4334_v63 = vld [vmem:[#allocation5 + $0xab4] ss:$8 sps:$4 sm:$0xff]  }
 0x14d   :  { %2759 = vmatpush1.bf16.msra.mxu1 %v4233_v0  ;;  %v4329_v0 = vld [vmem:[#allocation5 + $0x4b0] ss:$8 sps:$4 sm:$0xff]  }
 0x14e   :  { %3017 = vmatpush1.bf16.msra.mxu0 %v4236_v1  ;;  %2760 = vmatprep.subr.bf16.mxu1 %v4241_v2  ;;  %v4332_v1 = vld [vmem:[#allocation5 + $0xab0] ss:$8 sps:$4 sm:$0xff]   ;;  %v4337_v2 = vld [vmem:[#allocation5 + $0x4c4] ss:$8 sps:$4 sm:$0xff]  }
 0x14f   :  { %3018 = vmatprep.subr.bf16.mxu0 %v4244_v3  ;;  %v4340_v3 = vld [vmem:[#allocation5 + $0xac4] ss:$8 sps:$4 sm:$0xff]  }
 0x151   :  { %2761 = vmatpush1.bf16.msra.mxu1 %v4239_v4  ;;  %v4335_v4 = vld [vmem:[#allocation5 + $0x4c0] ss:$8 sps:$4 sm:$0xff]  }
 0x152   :  { %3019 = vmatpush1.bf16.msra.mxu0 %v4242_v5  ;;  %2762 = vmatprep.subr.bf16.mxu1 %v4247_v6  ;;  %v4338_v5 = vld [vmem:[#allocation5 + $0xac0] ss:$8 sps:$4 sm:$0xff]   ;;  %v4343_v6 = vld [vmem:[#allocation5 + $0x4d4] ss:$8 sps:$4 sm:$0xff]  }
 0x153   :  { %3020 = vmatprep.subr.bf16.mxu0 %v4250_v7  ;;  %v4346_v7 = vld [vmem:[#allocation5 + $0xad4] ss:$8 sps:$4 sm:$0xff]  }
 0x155   :  { %2763 = vmatpush1.bf16.msra.mxu1 %v4245_v8  ;;  %v4341_v8 = vld [vmem:[#allocation5 + $0x4d0] ss:$8 sps:$4 sm:$0xff]  }
 0x156   :  { %3021 = vmatpush1.bf16.msra.mxu0 %v4248_v9  ;;  %2764 = vmatprep.subr.bf16.mxu1 %v4253_v10  ;;  %v4344_v9 = vld [vmem:[#allocation5 + $0xad0] ss:$8 sps:$4 sm:$0xff]   ;;  %v4349_v10 = vld [vmem:[#allocation5 + $0x4e4] ss:$8 sps:$4 sm:$0xff]  }
 0x157   :  { %3022 = vmatprep.subr.bf16.mxu0 %v4256_v11  ;;  %v4352_v11 = vld [vmem:[#allocation5 + $0xae4] ss:$8 sps:$4 sm:$0xff]  }
 0x159   :  { %2765 = vmatpush1.bf16.msra.mxu1 %v4251_v12  ;;  %v4347_v12 = vld [vmem:[#allocation5 + $0x4e0] ss:$8 sps:$4 sm:$0xff]  }
 0x15a   :  { %3023 = vmatpush1.bf16.msra.mxu0 %v4254_v13  ;;  %2777 = vmatprep.subr.bf16.mxu1 %v4262_v14  ;;  %v4350_v13 = vld [vmem:[#allocation5 + $0xae0] ss:$8 sps:$4 sm:$0xff]   ;;  %v4355_v14 = vld [vmem:[#allocation5 + $0x4f4] ss:$8 sps:$4 sm:$0xff]  }
 0x15b   :  { %3035 = vmatprep.subr.bf16.mxu0 %v4268_v15  ;;  %v4358_v15 = vld [vmem:[#allocation5 + $0xaf4] ss:$8 sps:$4 sm:$0xff]  }
 0x15c   :  { %2767 = vmatmul.mubr.bf16.vlgmr.msra.gmra.mrb[0].mxu1 %v4257_v16  ;;  %v4353_v16 = vld [vmem:[#allocation5 + $0x4f0] ss:$8 sps:$4 sm:$0xff]  }
 0x15d   :  { %3025 = vmatmul.mubr.bf16.vlgmr.msra.gmra.mrb[0].mxu0 %v4263_v18  ;;  %2778 = vmatpush1.bf16.msra.mxu1 %v4260_v17  ;;  %v4356_v17 = vld [vmem:[#allocation5 + $0xaf0] ss:$8 sps:$4 sm:$0xff]   ;;  %v4364_v18 = vld [vmem:[#allocation5 + $0x504] ss:$8 sps:$4 sm:$0xff]  }
 0x15e   :  { %3036 = vmatpush1.bf16.msra.mxu0 %v4266_v19  ;;  %2779 = vmatprep.subr.bf16.mxu1 %v4271_v20  ;;  %v4370_v19 = vld [vmem:[#allocation5 + $0xb04] ss:$8 sps:$4 sm:$0xff]   ;;  %v4359_v20 = vld [vmem:[#allocation2 + $0x20] ss:$100 sps:$4 sm:$0xff]  }
 0x15f   :  { %3037 = vmatprep.subr.bf16.mxu0 %v4274_v21  ;;  %2809 = vmatprep.mubr.bf16.mxu1 %v4361_v22  ;;  %v4365_v21 = vld [vmem:[#allocation2 + $0x50] ss:$100 sps:$4 sm:$0xff]  }
 0x160   :  { %3067 = vmatprep.mubr.bf16.mxu0 %v4367_v23  ;;  %v4362_v22 = vld [vmem:[#allocation5 + $0x500] ss:$8 sps:$4 sm:$0xff]  }
 0x161   :  { %2780 = vmatpush1.bf16.msra.mxu1 %v4269_v24  ;;  %v4368_v23 = vld [vmem:[#allocation5 + $0xb00] ss:$8 sps:$4 sm:$0xff]   ;;  %v4373_v24 = vld [vmem:[#allocation5 + $0x514] ss:$8 sps:$4 sm:$0xff]  }
 0x162   :  { %3038 = vmatpush1.bf16.msra.mxu0 %v4272_v25  ;;  %2781 = vmatprep.subr.bf16.mxu1 %v4277_v26  ;;  %v4376_v25 = vld [vmem:[#allocation5 + $0xb14] ss:$8 sps:$4 sm:$0xff]   ;;  %v4463_v26 = vld [vmem:[#allocation2 + $0x2c] ss:$100 sps:$4 sm:$0xff]  }
 0x163   :  { %3039 = vmatprep.subr.bf16.mxu0 %v4280_v27  ;;  %v4466_v27 = vld [vmem:[#allocation2 + $0x5c] ss:$100 sps:$4 sm:$0xff]  }
 0x165   :  { %2782 = vmatpush1.bf16.msra.mxu1 %v4275_v28  ;;  %v4371_v28 = vld [vmem:[#allocation5 + $0x510] ss:$8 sps:$4 sm:$0xff]  }
 0x166   :  { %3040 = vmatpush1.bf16.msra.mxu0 %v4278_v29  ;;  %2783 = vmatprep.subr.bf16.mxu1 %v4283_v30  ;;  %v4374_v29 = vld [vmem:[#allocation5 + $0xb10] ss:$8 sps:$4 sm:$0xff]   ;;  %v4379_v30 = vld [vmem:[#allocation5 + $0x524] ss:$8 sps:$4 sm:$0xff]  }
 0x167   :  { %3041 = vmatprep.subr.bf16.mxu0 %v4286_v31  ;;  %v4382_v31 = vld [vmem:[#allocation5 + $0xb24] ss:$8 sps:$4 sm:$0xff]  }
 0x169   :  { %2784 = vmatpush1.bf16.msra.mxu1 %v4281_v32  ;;  %v4377_v32 = vld [vmem:[#allocation5 + $0x520] ss:$8 sps:$4 sm:$0xff]  }
 0x16a   :  { %3042 = vmatpush1.bf16.msra.mxu0 %v4284_v33  ;;  %2785 = vmatprep.subr.bf16.mxu1 %v4289_v34  ;;  %v4380_v33 = vld [vmem:[#allocation5 + $0xb20] ss:$8 sps:$4 sm:$0xff]   ;;  %v4385_v34 = vld [vmem:[#allocation5 + $0x534] ss:$8 sps:$4 sm:$0xff]  }
 0x16b   :  { %3043 = vmatprep.subr.bf16.mxu0 %v4292_v35  ;;  %v4388_v35 = vld [vmem:[#allocation5 + $0xb34] ss:$8 sps:$4 sm:$0xff]  }
 0x16d   :  { %2786 = vmatpush1.bf16.msra.mxu1 %v4287_v36  ;;  %v4383_v36 = vld [vmem:[#allocation5 + $0x530] ss:$8 sps:$4 sm:$0xff]  }
 0x16e   :  { %3044 = vmatpush1.bf16.msra.mxu0 %v4290_v37  ;;  %2787 = vmatprep.subr.bf16.mxu1 %v4295_v38  ;;  %v4386_v37 = vld [vmem:[#allocation5 + $0xb30] ss:$8 sps:$4 sm:$0xff]   ;;  %v4391_v38 = vld [vmem:[#allocation5 + $0x544] ss:$8 sps:$4 sm:$0xff]  }
 0x16f   :  { %3045 = vmatprep.subr.bf16.mxu0 %v4298_v39  ;;  %v4394_v39 = vld [vmem:[#allocation5 + $0xb44] ss:$8 sps:$4 sm:$0xff]  }
 0x171   :  { %2788 = vmatpush1.bf16.msra.mxu1 %v4293_v40  ;;  %v4389_v40 = vld [vmem:[#allocation5 + $0x540] ss:$8 sps:$4 sm:$0xff]  }
 0x172   :  { %3046 = vmatpush1.bf16.msra.mxu0 %v4296_v41  ;;  %2789 = vmatprep.subr.bf16.mxu1 %v4301_v42  ;;  %v4392_v41 = vld [vmem:[#allocation5 + $0xb40] ss:$8 sps:$4 sm:$0xff]   ;;  %v4397_v42 = vld [vmem:[#allocation5 + $0x554] ss:$8 sps:$4 sm:$0xff]  }
 0x173   :  { %3047 = vmatprep.subr.bf16.mxu0 %v4304_v43  ;;  %v4400_v43 = vld [vmem:[#allocation5 + $0xb54] ss:$8 sps:$4 sm:$0xff]  }
 0x175   :  { %2790 = vmatpush1.bf16.msra.mxu1 %v4299_v44  ;;  %v4395_v44 = vld [vmem:[#allocation5 + $0x550] ss:$8 sps:$4 sm:$0xff]  }
 0x176   :  { %3048 = vmatpush1.bf16.msra.mxu0 %v4302_v45  ;;  %2791 = vmatprep.subr.bf16.mxu1 %v4307_v46  ;;  %v4398_v45 = vld [vmem:[#allocation5 + $0xb50] ss:$8 sps:$4 sm:$0xff]   ;;  %v4403_v46 = vld [vmem:[#allocation5 + $0x564] ss:$8 sps:$4 sm:$0xff]  }
 0x177   :  { %3049 = vmatprep.subr.bf16.mxu0 %v4310_v47  ;;  %v4406_v47 = vld [vmem:[#allocation5 + $0xb64] ss:$8 sps:$4 sm:$0xff]  }
 0x179   :  { %2792 = vmatpush1.bf16.msra.mxu1 %v4305_v48  ;;  %v4401_v48 = vld [vmem:[#allocation5 + $0x560] ss:$8 sps:$4 sm:$0xff]  }
 0x17a   :  { %3050 = vmatpush1.bf16.msra.mxu0 %v4308_v49  ;;  %2793 = vmatprep.subr.bf16.mxu1 %v4313_v50  ;;  %v4404_v49 = vld [vmem:[#allocation5 + $0xb60] ss:$8 sps:$4 sm:$0xff]   ;;  %v4409_v50 = vld [vmem:[#allocation5 + $0x574] ss:$8 sps:$4 sm:$0xff]  }
 0x17b   :  { %3051 = vmatprep.subr.bf16.mxu0 %v4316_v51  ;;  %v4412_v51 = vld [vmem:[#allocation5 + $0xb74] ss:$8 sps:$4 sm:$0xff]  }
 0x17d   :  { %2794 = vmatpush1.bf16.msra.mxu1 %v4311_v52  ;;  %v4407_v52 = vld [vmem:[#allocation5 + $0x570] ss:$8 sps:$4 sm:$0xff]  }
 0x17e   :  { %3052 = vmatpush1.bf16.msra.mxu0 %v4314_v53  ;;  %2795 = vmatprep.subr.bf16.mxu1 %v4319_v54  ;;  %v4410_v53 = vld [vmem:[#allocation5 + $0xb70] ss:$8 sps:$4 sm:$0xff]   ;;  %v4415_v54 = vld [vmem:[#allocation5 + $0x584] ss:$8 sps:$4 sm:$0xff]  }
 0x17f   :  { %3053 = vmatprep.subr.bf16.mxu0 %v4322_v55  ;;  %v4418_v55 = vld [vmem:[#allocation5 + $0xb84] ss:$8 sps:$4 sm:$0xff]  }
 0x181   :  { %2796 = vmatpush1.bf16.msra.mxu1 %v4317_v56  ;;  %v4413_v56 = vld [vmem:[#allocation5 + $0x580] ss:$8 sps:$4 sm:$0xff]  }
 0x182   :  { %3054 = vmatpush1.bf16.msra.mxu0 %v4320_v57  ;;  %2797 = vmatprep.subr.bf16.mxu1 %v4325_v58  ;;  %v4416_v57 = vld [vmem:[#allocation5 + $0xb80] ss:$8 sps:$4 sm:$0xff]   ;;  %v4421_v58 = vld [vmem:[#allocation5 + $0x594] ss:$8 sps:$4 sm:$0xff]  }
 0x183   :  { %3055 = vmatprep.subr.bf16.mxu0 %v4328_v59  ;;  %v4424_v59 = vld [vmem:[#allocation5 + $0xb94] ss:$8 sps:$4 sm:$0xff]  }
 0x185   :  { %2798 = vmatpush1.bf16.msra.mxu1 %v4323_v60  ;;  %v4419_v60 = vld [vmem:[#allocation5 + $0x590] ss:$8 sps:$4 sm:$0xff]  }
 0x186   :  { %3056 = vmatpush1.bf16.msra.mxu0 %v4326_v61  ;;  %2799 = vmatprep.subr.bf16.mxu1 %v4331_v62  ;;  %v4422_v61 = vld [vmem:[#allocation5 + $0xb90] ss:$8 sps:$4 sm:$0xff]   ;;  %v4427_v62 = vld [vmem:[#allocation5 + $0x5a4] ss:$8 sps:$4 sm:$0xff]  }
 0x187   :  { %3057 = vmatprep.subr.bf16.mxu0 %v4334_v63  ;;  %v4430_v63 = vld [vmem:[#allocation5 + $0xba4] ss:$8 sps:$4 sm:$0xff]  }
 0x189   :  { %2800 = vmatpush1.bf16.msra.mxu1 %v4329_v0  ;;  %v4425_v0 = vld [vmem:[#allocation5 + $0x5a0] ss:$8 sps:$4 sm:$0xff]  }
 0x18a   :  { %3058 = vmatpush1.bf16.msra.mxu0 %v4332_v1  ;;  %2801 = vmatprep.subr.bf16.mxu1 %v4337_v2  ;;  %v4428_v1 = vld [vmem:[#allocation5 + $0xba0] ss:$8 sps:$4 sm:$0xff]   ;;  %v4433_v2 = vld [vmem:[#allocation5 + $0x5b4] ss:$8 sps:$4 sm:$0xff]  }
 0x18b   :  { %3059 = vmatprep.subr.bf16.mxu0 %v4340_v3  ;;  %v4436_v3 = vld [vmem:[#allocation5 + $0xbb4] ss:$8 sps:$4 sm:$0xff]  }
 0x18d   :  { %2802 = vmatpush1.bf16.msra.mxu1 %v4335_v4  ;;  %v4431_v4 = vld [vmem:[#allocation5 + $0x5b0] ss:$8 sps:$4 sm:$0xff]  }
 0x18e   :  { %3060 = vmatpush1.bf16.msra.mxu0 %v4338_v5  ;;  %2803 = vmatprep.subr.bf16.mxu1 %v4343_v6  ;;  %v4434_v5 = vld [vmem:[#allocation5 + $0xbb0] ss:$8 sps:$4 sm:$0xff]   ;;  %v4439_v6 = vld [vmem:[#allocation5 + $0x5c4] ss:$8 sps:$4 sm:$0xff]  }
 0x18f   :  { %3061 = vmatprep.subr.bf16.mxu0 %v4346_v7  ;;  %v4442_v7 = vld [vmem:[#allocation5 + $0xbc4] ss:$8 sps:$4 sm:$0xff]  }
 0x191   :  { %2804 = vmatpush1.bf16.msra.mxu1 %v4341_v8  ;;  %v4437_v8 = vld [vmem:[#allocation5 + $0x5c0] ss:$8 sps:$4 sm:$0xff]  }
 0x192   :  { %3062 = vmatpush1.bf16.msra.mxu0 %v4344_v9  ;;  %2805 = vmatprep.subr.bf16.mxu1 %v4349_v10  ;;  %v4440_v9 = vld [vmem:[#allocation5 + $0xbc0] ss:$8 sps:$4 sm:$0xff]   ;;  %v4445_v10 = vld [vmem:[#allocation5 + $0x5d4] ss:$8 sps:$4 sm:$0xff]  }
 0x193   :  { %3063 = vmatprep.subr.bf16.mxu0 %v4352_v11  ;;  %v4448_v11 = vld [vmem:[#allocation5 + $0xbd4] ss:$8 sps:$4 sm:$0xff]  }
 0x195   :  { %2806 = vmatpush1.bf16.msra.mxu1 %v4347_v12  ;;  %v4443_v12 = vld [vmem:[#allocation5 + $0x5d0] ss:$8 sps:$4 sm:$0xff]  }
 0x196   :  { %3064 = vmatpush1.bf16.msra.mxu0 %v4350_v13  ;;  %2807 = vmatprep.subr.bf16.mxu1 %v4355_v14  ;;  %v4446_v13 = vld [vmem:[#allocation5 + $0xbd0] ss:$8 sps:$4 sm:$0xff]   ;;  %v4451_v14 = vld [vmem:[#allocation5 + $0x5e4] ss:$8 sps:$4 sm:$0xff]  }
 0x197   :  { %3065 = vmatprep.subr.bf16.mxu0 %v4358_v15  ;;  %v4454_v15 = vld [vmem:[#allocation5 + $0xbe4] ss:$8 sps:$4 sm:$0xff]  }
 0x199   :  { %2808 = vmatpush1.bf16.msra.mxu1 %v4353_v16  ;;  %v4449_v16 = vld [vmem:[#allocation5 + $0x5e0] ss:$8 sps:$4 sm:$0xff]  }
 0x19a   :  { %3066 = vmatpush1.bf16.msra.mxu0 %v4356_v17  ;;  %2820 = vmatprep.subr.bf16.mxu1 %v4364_v18  ;;  %v4452_v17 = vld [vmem:[#allocation5 + $0xbe0] ss:$8 sps:$4 sm:$0xff]   ;;  %v4457_v18 = vld [vmem:[#allocation5 + $0x5f4] ss:$8 sps:$4 sm:$0xff]  }
 0x19b   :  { %3078 = vmatprep.subr.bf16.mxu0 %v4370_v19  ;;  %v4460_v19 = vld [vmem:[#allocation5 + $0xbf4] ss:$8 sps:$4 sm:$0xff]  }
 0x19c   :  { %2810 = vmatmul.mubr.bf16.vlgmr.msra.gmra.mrb[0].mxu1 %v4359_v20  ;;  %v3184_v20 = vld [vmem:[#allocation8 + $0x80] sm:$0xff] }
 0x19d   :  { %3068 = vmatmul.mubr.bf16.vlgmr.msra.gmra.mrb[0].mxu0 %v4365_v21  ;;  %2821 = vmatpush1.bf16.msra.mxu1 %v4362_v22  ;;  %v3185_v21 = vld [vmem:[#allocation8 + $0x88] sm:$0xff] }
 0x19e   :  { %3079 = vmatpush1.bf16.msra.mxu0 %v4368_v23  ;;  %2822 = vmatprep.subr.bf16.mxu1 %v4373_v24  ;;  %v4455_v22 = vld [vmem:[#allocation5 + $0x5f0] ss:$8 sps:$4 sm:$0xff]   ;;  %v4469_v24 = vld [vmem:[#allocation5 + $0xc04] ss:$8 sps:$4 sm:$0xff]  }
 0x19f   :  { %3080 = vmatprep.subr.bf16.mxu0 %v4376_v25  ;;  %2852 = vmatprep.mubr.bf16.mxu1 %v4463_v26  ;;  %v4458_v23 = vld [vmem:[#allocation5 + $0xbf0] ss:$8 sps:$4 sm:$0xff]   ;;  %v3760_v25 = vpack.c.bf16 %v3185_v21, %v3184_v20  ;;  %v4461_v26 = vld [vmem:[#allocation2 + $0x28] ss:$100 sps:$4 sm:$0xff]  }
 0x1a0   :  { %3110 = vmatprep.mubr.bf16.mxu0 %v4466_v27  ;;  %v3168_v27 = vld [vmem:[#allocation8] sm:$0xff] }
 0x1a1   :  { %2823 = vmatpush1.bf16.msra.mxu1 %v4371_v28  ;;  %v3169_v28 = vld [vmem:[#allocation8 + $0x8] sm:$0xff] }
 0x1a2   :  { %3081 = vmatpush1.bf16.msra.mxu0 %v4374_v29  ;;  %2824 = vmatprep.subr.bf16.mxu1 %v4379_v30  ;;  %v4464_v29 = vld [vmem:[#allocation2 + $0x58] ss:$100 sps:$4 sm:$0xff]  }
 0x1a3   :  { %3082 = vmatprep.subr.bf16.mxu0 %v4382_v31  ;;  %v3186_v30 = vld [vmem:[#allocation8 + $0x90] sm:$0xff]  ;;  %v3187_v31 = vld [vmem:[#allocation8 + $0x98] sm:$0xff] }
 0x1a5   :  { %2825 = vmatpush1.bf16.msra.mxu1 %v4377_v32  ;;  %v4467_v32 = vld [vmem:[#allocation5 + $0xc00] ss:$8 sps:$4 sm:$0xff]  }
 0x1a6   :  { %3083 = vmatpush1.bf16.msra.mxu0 %v4380_v33  ;;  %2826 = vmatprep.subr.bf16.mxu1 %v4385_v34  ;;  %v4472_v33 = vld [vmem:[#allocation5 + $0xc14] ss:$8 sps:$4 sm:$0xff]   ;;  %v3762_v34 = vpack.c.bf16 %v3169_v28, %v3168_v27 }
 0x1a7   :  { %3084 = vmatprep.subr.bf16.mxu0 %v4388_v35  ;;  %v3764_v35 = vpack.c.bf16 %v3187_v31, %v3186_v30 }
 0x1a9   :  { %2827 = vmatpush1.bf16.msra.mxu1 %v4383_v36  ;;  %v3170_v36 = vld [vmem:[#allocation8 + $0x10] sm:$0xff] }
 0x1aa   :  { %3085 = vmatpush1.bf16.msra.mxu0 %v4386_v37  ;;  %2828 = vmatprep.subr.bf16.mxu1 %v4391_v38  ;;  %v3171_v37 = vld [vmem:[#allocation8 + $0x18] sm:$0xff]  ;;  %v3188_v38 = vld [vmem:[#allocation8 + $0xa0] sm:$0xff] }
 0x1ab   :  { %3086 = vmatprep.subr.bf16.mxu0 %v4394_v39  ;;  %v3189_v39 = vld [vmem:[#allocation8 + $0xa8] sm:$0xff] }
 0x1ad   :  { %2829 = vmatpush1.bf16.msra.mxu1 %v4389_v40  ;;  %v4470_v40 = vld [vmem:[#allocation5 + $0xc10] ss:$8 sps:$4 sm:$0xff]  }
 0x1ae   :  { %3087 = vmatpush1.bf16.msra.mxu0 %v4392_v41  ;;  %2830 = vmatprep.subr.bf16.mxu1 %v4397_v42  ;;  %v4629_v41 = vmov 0   ;;  %v4475_v42 = vld [vmem:[#allocation5 + $0xc24] ss:$8 sps:$4 sm:$0xff]  }
 0x1af   :  { %3088 = vmatprep.subr.bf16.mxu0 %v4400_v43  ;;  %v3766_v43 = vpack.c.bf16 %v3171_v37, %v3170_v36 }
 0x1b1   :  { %2831 = vmatpush1.bf16.msra.mxu1 %v4395_v44  ;;  %v3768_v44 = vpack.c.bf16 %v3189_v39, %v3188_v38 }
 0x1b2   :  { %3089 = vmatpush1.bf16.msra.mxu0 %v4398_v45  ;;  %2832 = vmatprep.subr.bf16.mxu1 %v4403_v46  ;;  %v4473_v45 = vld [vmem:[#allocation5 + $0xc20] ss:$8 sps:$4 sm:$0xff]   ;;  %v4478_v46 = vld [vmem:[#allocation5 + $0xc34] ss:$8 sps:$4 sm:$0xff]  }
 0x1b3   :  { %3090 = vmatprep.subr.bf16.mxu0 %v4406_v47  ;;  %v4476_v47 = vld [vmem:[#allocation5 + $0xc30] ss:$8 sps:$4 sm:$0xff]  }
 0x1b5   :  { %2833 = vmatpush1.bf16.msra.mxu1 %v4401_v48  ;;  %v4479_v48 = vld [vmem:[#allocation2 + $0x60] ss:$100 sps:$4 sm:$0xff]  }
 0x1b6   :  { %3091 = vmatpush1.bf16.msra.mxu0 %v4404_v49  ;;  %2834 = vmatprep.subr.bf16.mxu1 %v4409_v50  ;;  %v3172_v49 = vld [vmem:[#allocation8 + $0x20] sm:$0xff]  ;;  %v3173_v50 = vld [vmem:[#allocation8 + $0x28] sm:$0xff] }
 0x1b7   :  { %3092 = vmatprep.subr.bf16.mxu0 %v4412_v51  ;;  %v3770_v51 = vpack.c.bf16 %v3173_v50, %v3172_v49 }
 0x1b9   :  { %2835 = vmatpush1.bf16.msra.mxu1 %v4407_v52  ;;  %v3190_v52 = vld [vmem:[#allocation8 + $0xb0] sm:$0xff] }
 0x1ba   :  { %3093 = vmatpush1.bf16.msra.mxu0 %v4410_v53  ;;  %2836 = vmatprep.subr.bf16.mxu1 %v4415_v54  ;;  %v3191_v53 = vld [vmem:[#allocation8 + $0xb8] sm:$0xff] }
 0x1bb   :  { %3094 = vmatprep.subr.bf16.mxu0 %v4418_v55  ;;  %v3772_v54 = vpack.c.bf16 %v3191_v53, %v3190_v52  ;;  %v3174_v55 = vld [vmem:[#allocation8 + $0x30] sm:$0xff] }
 0x1bd   :  { %2837 = vmatpush1.bf16.msra.mxu1 %v4413_v56  ;;  %v3175_v56 = vld [vmem:[#allocation8 + $0x38] sm:$0xff] }
 0x1be   :  { %3095 = vmatpush1.bf16.msra.mxu0 %v4416_v57  ;;  %2838 = vmatprep.subr.bf16.mxu1 %v4421_v58  ;;  %v3774_v57 = vpack.c.bf16 %v3175_v56, %v3174_v55  ;;  %v3192_v58 = vld [vmem:[#allocation8 + $0xc0] sm:$0xff] }
 0x1bf   :  { %3096 = vmatprep.subr.bf16.mxu0 %v4424_v59  ;;  %v3193_v59 = vld [vmem:[#allocation8 + $0xc8] sm:$0xff] }
 0x1c1   :  { %2839 = vmatpush1.bf16.msra.mxu1 %v4419_v60  ;;  %v3176_v60 = vld [vmem:[#allocation8 + $0x40] sm:$0xff] }
 0x1c2   :  { %3097 = vmatpush1.bf16.msra.mxu0 %v4422_v61  ;;  %2840 = vmatprep.subr.bf16.mxu1 %v4427_v62  ;;  %v3776_v61 = vpack.c.bf16 %v3193_v59, %v3192_v58  ;;  %v3177_v62 = vld [vmem:[#allocation8 + $0x48] sm:$0xff] }
 0x1c3   :  { %3098 = vmatprep.subr.bf16.mxu0 %v4430_v63  ;;  %v3194_v63 = vld [vmem:[#allocation8 + $0xd0] sm:$0xff] }
 0x1c5   :  { %2841 = vmatpush1.bf16.msra.mxu1 %v4425_v0  ;;  %v3195_v0 = vld [vmem:[#allocation8 + $0xd8] sm:$0xff] }
 0x1c6   :  { %3099 = vmatpush1.bf16.msra.mxu0 %v4428_v1  ;;  %2842 = vmatprep.subr.bf16.mxu1 %v4433_v2  ;;  %v3778_v1 = vpack.c.bf16 %v3177_v62, %v3176_v60  ;;  %v3780_v2 = vpack.c.bf16 %v3195_v0, %v3194_v63 }
 0x1c7   :  { %3100 = vmatprep.subr.bf16.mxu0 %v4436_v3  ;;  %v3178_v3 = vld [vmem:[#allocation8 + $0x50] sm:$0xff] }
 0x1c9   :  { %2843 = vmatpush1.bf16.msra.mxu1 %v4431_v4  ;;  %v3179_v4 = vld [vmem:[#allocation8 + $0x58] sm:$0xff] }
 0x1ca   :  { %3101 = vmatpush1.bf16.msra.mxu0 %v4434_v5  ;;  %2844 = vmatprep.subr.bf16.mxu1 %v4439_v6  ;;  %v3196_v5 = vld [vmem:[#allocation8 + $0xe0] sm:$0xff]  ;;  %v3197_v6 = vld [vmem:[#allocation8 + $0xe8] sm:$0xff] }
 0x1cb   :  { %3102 = vmatprep.subr.bf16.mxu0 %v4442_v7  ;;  %v3782_v7 = vpack.c.bf16 %v3179_v4, %v3178_v3 }
 0x1cd   :  { %2845 = vmatpush1.bf16.msra.mxu1 %v4437_v8  ;;  %v3784_v8 = vpack.c.bf16 %v3197_v6, %v3196_v5 }
 0x1ce   :  { %3103 = vmatpush1.bf16.msra.mxu0 %v4440_v9  ;;  %2846 = vmatprep.subr.bf16.mxu1 %v4445_v10  ;;  %v3180_v9 = vld [vmem:[#allocation8 + $0x60] sm:$0xff]  ;;  %v3181_v10 = vld [vmem:[#allocation8 + $0x68] sm:$0xff] }
 0x1cf   :  { %3104 = vmatprep.subr.bf16.mxu0 %v4448_v11  ;;  %v3786_v11 = vpack.c.bf16 %v3181_v10, %v3180_v9 }
 0x1d1   :  { %2847 = vmatpush1.bf16.msra.mxu1 %v4443_v12  ;;  %v3198_v12 = vld [vmem:[#allocation8 + $0xf0] sm:$0xff] }
 0x1d2   :  { %3105 = vmatpush1.bf16.msra.mxu0 %v4446_v13  ;;  %2848 = vmatprep.subr.bf16.mxu1 %v4451_v14  ;;  %v3199_v13 = vld [vmem:[#allocation8 + $0xf8] sm:$0xff] }
 0x1d3   :  { %3106 = vmatprep.subr.bf16.mxu0 %v4454_v15  ;;  %v3788_v14 = vpack.c.bf16 %v3199_v13, %v3198_v12  ;;  %v3182_v15 = vld [vmem:[#allocation8 + $0x70] sm:$0xff] }
 0x1d5   :  { %2849 = vmatpush1.bf16.msra.mxu1 %v4449_v16  ;;  %v3183_v16 = vld [vmem:[#allocation8 + $0x78] sm:$0xff] }
 0x1d6   :  { %3107 = vmatpush1.bf16.msra.mxu0 %v4452_v17  ;;  %2850 = vmatprep.subr.bf16.mxu1 %v4457_v18  ;;  %v3790_v17 = vpack.c.bf16 %v3183_v16, %v3182_v15  ;;  %v506_v18 = vlaneseq }
 0x1d7   :  { %3108 = vmatprep.subr.bf16.mxu0 %v4460_v19 }
 0x1d9   :  { %2851 = vmatpush1.bf16.msra.mxu1 %v4455_v22  ;;  %v507_v22 = vshrl.u32 %v506_v18, 7 }
 0x1da   :  { %3109 = vmatpush1.bf16.msra.mxu0 %v4458_v23  ;;  %3761 = vmatprep.subr.bf16.mxu1 %v3760_v25  ;;  %v504_v25 = vld [vmem:[#allocation7] sm:$0x3] }
 0x1db   :  { %3121 = vmatprep.subr.bf16.mxu0 %v4469_v24  ;;  %v508_v24 = vsub.s32 0, %v507_v22 }
 0x1dc   :  { %2853 = vmatmul.mubr.bf16.vlgmr.msra.gmra.mrb[0].mxu1 %v4461_v26  ;;  %v512_v26 = vsub.s32 1, %v507_v22 }
 0x1dd   :  { %3111 = vmatmul.mubr.bf16.vlgmr.msra.gmra.mrb[0].mxu0 %v4464_v29  ;;  %3763 = vmatpush3.bf16.msra.mxu1 %v3762_v34  ;;  %v509_v27 = vrot.slane %v504_v25, %v508_v24 }
 0x1de   :  { %3122 = vmatpush1.bf16.msra.mxu0 %v4467_v32  ;;  %3153 = vmatprep.mubr.bf16.mxu0 %v4629_v41  ;;  %v513_v28 = vrot.slane %v504_v25, %v512_v26 }
 0x1df   :  { %3123 = vmatprep.subr.bf16.mxu0 %v4472_v33  ;;  %3765 = vmatprep.subr.bf16.mxu1 %v3764_v35 }
 0x1e1   :  { %3767 = vmatpush3.bf16.msra.mxu1 %v3766_v43 }
 0x1e2   :  { %3124 = vmatpush1.bf16.msra.mxu0 %v4470_v40  ;;  %3769 = vmatprep.subr.bf16.mxu1 %v3768_v44 }
 0x1e3   :  { %3125 = vmatprep.subr.bf16.mxu0 %v4475_v42 }
 0x1e5   :  { %3771 = vmatpush3.bf16.msra.mxu1 %v3770_v51 }
 0x1e6   :  { %3126 = vmatpush1.bf16.msra.mxu0 %v4473_v45  ;;  %3773 = vmatprep.subr.bf16.mxu1 %v3772_v54 }
 0x1e7   :  { %3127 = vmatprep.subr.bf16.mxu0 %v4478_v46  ;;  %v3721_v46 = vld [vmem:[#allocation10] ss:$0 sm:$0xff] }
 0x1e9   :  { %3775 = vmatpush3.bf16.msra.mxu1 %v3774_v57 }
 0x1ea   :  { %3128 = vmatpush1.bf16.msra.mxu0 %v4476_v47  ;;  %3777 = vmatprep.subr.bf16.mxu1 %v3776_v61 }
 0x1ed   :  { %3720 = vmatmul.mubr.msk.bf16.vlgmr.msra.gmra.mrb[0].mxu0 %vm2601_vm0, %v4479_v48  ;;  %3779 = vmatpush3.bf16.msra.mxu1 %v3778_v1 }
 0x1ee   :  { %3781 = vmatprep.subr.bf16.mxu1 %v3780_v2 }
 0x1f1   :  { %3783 = vmatpush3.bf16.msra.mxu1 %v3782_v7 }
 0x1f2   :  { %3785 = vmatprep.subr.bf16.mxu1 %v3784_v8 }
 0x1f5   :  { %3787 = vmatpush3.bf16.msra.mxu1 %v3786_v11 }
 0x1f6   :  { %3789 = vmatprep.subr.bf16.mxu1 %v3788_v14 }
 0x1f9   :  { %3791 = vmatpush3.bf16.msra.mxu1 %v3790_v17 }
 0x2af   :  { %v2854_v19 = vpop.f32.mrb[0].mxu1 }
 0x2b0   :  { %v2856_v20 = vpop.f32.mrb[1].mxu1  ;;  %v3792_v29 = vadd.f32 %v2854_v19, %v509_v27 }
 0x2b1   :  { %v2858_v21 = vpop.f32.mrb[2].mxu1  ;;  %v3794_v30 = vadd.f32 %v2856_v20, %v513_v28 }
 0x2b2   :  { %v2860_v23 = vpop.f32.mrb[3].mxu1  ;;  %v3796_v32 = vadd.f32 %v2858_v21, %v509_v27 }
 0x2b3   :  { %v3798_v35 = vadd.f32 %v2860_v23, %v513_v28 }
 0x2c0   :  { %v3155_v31 = vpop.f32.mrb[0].mxu0 }
 0x2c1   :  { %v3793_v33 = vadd.f32 %v3792_v29, %v3155_v31  ;;  %v3157_v34 = vpop.f32.mrb[1].mxu0 }
 0x2c2   :  { %v3795_v36 = vadd.f32 %v3794_v30, %v3157_v34  ;;  %v3159_v37 = vpop.f32.mrb[2].mxu0 }
 0x2c3   :  { %v3797_v38 = vadd.f32 %v3796_v32, %v3159_v37  ;;  %v3161_v39 = vpop.f32.mrb[3].mxu0  ;;  %v3164_v42 = vmax.f32 %v3793_v33, 0.0 }
 0x2c4   :  { %v3165_v40 = vmax.f32 %v3795_v36, 0.0  ;;  %v3799_v41 = vadd.f32 %v3798_v35, %v3161_v39 }
 0x2c5   :  { %v3166_v44 = vmax.f32 %v3797_v38, 0.0 }
 0x2c6   :  { %v3167_v43 = vmax.f32 %v3799_v41, 0.0  ;;  %3271 = vmatprep.mubr.f32.mxu1 %v3165_v40 }
 0x2c7   :  { %3272 = vmatmul.mubr.f32.vlgmr.msra.gmra.mrb[4].mxu1 %v3164_v42 }
 0x2c8   :  { %3276 = vmatprep.mubr.f32.mxu1 %v3167_v43 }
 0x2cb   :  { %3277 = vmatmul.mubr.f32.gmra.mrb[6].mxu1 %v3166_v44 }
 0x39a   :  { %v3754_v45 = vpop.f32.mrb[4].mxu1 }
 0x39b   :  { %v3755_v47 = vpop.f32.mrb[5].mxu1 }
 0x39c   :  { %v3756_v48 = vadd.f32 %v3755_v47, %v3754_v45 }
 0x39e   :  { %v3274_v49 = vadd.f32 %v3756_v48, %v3721_v46  ;;  %v3757_v50 = vpop.f32.mrb[6].mxu1 }
 0x39f   :  { %v3758_v51 = vpop.f32.mrb[7].mxu1 }
 0x3a0   :  { %3282 = vst [vmem:[#allocation11] sm:$0xff] %v3274_v49  ;;  %v3759_v52 = vadd.f32 %v3758_v51, %v3757_v50 }
 0x3a2   :  { %v3279_v53 = vadd.f32 %v3759_v52, %v3721_v46 }
 0x3a4   :  { %3283 = vst [vmem:[#allocation11 + $0x8] sm:$0xff] %v3279_v53 }
 0x3a5   :  { %4601 = shalt.err (!%p4598_p2)
}
 0x3a6   :  { %s4602_s11 = scalar_lea.hbm %s4747_s5, 256 }
 0x3a7   :  { %p4603_p3 = scmp.ne.s32.totalorder %s4747_s5, %s4602_s11  ;;  %p4606_p4 = scmp.lt.u32.totalorder %s4602_s11, %s4747_s5 }
 0x3a9   :  { %p4608_p5 = pnand %p4606_p4, %p4603_p3 }
 0x3ab   :  { %4611 = shalt.err (!%p4608_p5)
}
 0x3ac   :  { %3295 = dma.vmem_to_hbm [thread:$0]  %s3290_s6, 256, %s4747_s5, [#allocation4], %s4621_s28, %s4621_s28, %s4622_s29  }
 0x3ad   :  { %4618 = dma.done.wait [#allocation4], 256  }
 0x3ae   :  { %4619 = vsyncadd [#allocation4], 4294967040 }
 0x3af   :  { %3299 = vsyncpa [#allocation3], 1 }
 0x3b0   :  { %3300 = vsyncpa [#allocation6], 1 }
 0x3b1   :  { %3301 = vsyncpa [#allocation9], 1 }
 0x3b2   :  { %3302 = vsyncpa [#allocation4], 1 }

</bundles_post_ra>
